<compile_context>
chip_gen: v6e
topology: v6e:2x2x1
jax: 0.10.0
libtpu: 0.0.40
codegen_flags: <defaults>
</compile_context>

<pallas_src>
import numpy as np
import jax
import jax.numpy as jnp
from jax import lax
from jax.experimental import pallas as pl
from jax.experimental.pallas import tpu as pltpu

NUM_CLASSES = 256
LANE = 128
_TILE_CANDIDATES = (8192, 4096, 2048, 1024)   # powers-of-two * 1024


def _round_up(x, m):
    return (x + m - 1) // m * m


def _choose_tile(batch, n):
    """Sequence tile (rows) per grid step: big enough to amortize per-step
    overhead, small enough for VMEM, and shrunk so B*steps >= 4 when possible
    (keeps both v7x TensorCores busy).  Always a multiple of 1024."""
    cap = _round_up(min(n, _TILE_CANDIDATES[0]), 1024)
    tn = next(t for t in _TILE_CANDIDATES if t <= cap)
    while tn > 1024 and batch * pl.cdiv(n, tn) < 4:
        tn //= 2
    return tn


def _onehot_kernel(x_ref, o_ref):
    """x_ref: (1, J, 128) int32  shifted/clamped class indices, lane-dense.
       o_ref: (1, J*128, 256) f32 one-hot rows, classes on the lane axis.

    Per 128-chunk: move the 128 lane-resident indices onto sublanes with a
    masked-diagonal reduce (cheap VPU/XLU work), then compare against a class
    iota to produce a (128, 256) one-hot slab and store it lane-dense."""
    nj = x_ref.shape[1]
    cls = lax.broadcasted_iota(jnp.int32, (1, NUM_CLASSES), 1)          # (1, 256)
    eye = (lax.broadcasted_iota(jnp.int32, (LANE, LANE), 0)
           == lax.broadcasted_iota(jnp.int32, (LANE, LANE), 1))         # (128, 128) bool

    for j in range(nj):                                  # static unroll (<= 64 iters)
        chunk = x_ref[0, j:j + 1, :]                     # (1, 128) int32, seq on lanes
        big = jnp.broadcast_to(chunk, (LANE, LANE))      # big[k, l] = chunk[l]
        # col[k] = chunk[k]  (lane -> sublane via masked diagonal sum)
        col = jnp.where(eye, big, 0).sum(axis=1, keepdims=True)         # (128, 1) int32
        o_ref[0, pl.ds(j * LANE, LANE), :] = (col == cls).astype(jnp.float32)


@jax.jit
def model_mock_forward(inputs):
    """inputs: (B, ...) integer array (e.g. NCHW). Returns (B, N, 256) float32."""
    B = inputs.shape[0]
    N = int(np.prod(inputs.shape[1:]))
    x = inputs.reshape(B, N).astype(jnp.int32)

    # Tiny (B, N) int32 index math in the wrapper (negligible vs 256x writeback):
    # shift-left by one, append last+1, clamp >255 -> 0.
    shifted = jnp.concatenate([x[:, 1:], x[:, -1:] + 1], axis=1)
    shifted = jnp.where(shifted > NUM_CLASSES - 1, 0, shifted)

    tn = _choose_tile(B, N)
    steps = pl.cdiv(N, tn)
    n_in = steps * tn                      # index input padded to a tile multiple
    n_out = N if N >= tn else tn           # output only padded in the tiny-N case

    if n_in > N:
        shifted = jnp.pad(shifted, ((0, 0), (0, n_in - N)))
    x_blocks = shifted.reshape(B, n_in // LANE, LANE)    # lane-dense index layout

    J = tn // LANE
    cost = pl.CostEstimate(
        flops=0,
        transcendentals=0,
        bytes_accessed=B * n_in * 4 + B * n_out * NUM_CLASSES * 4,
    )

    out = pl.pallas_call(
        _onehot_kernel,
        out_shape=jax.ShapeDtypeStruct((B, n_out, NUM_CLASSES), jnp.float32),
        grid=(B, steps),
        in_specs=[pl.BlockSpec((1, J, LANE), lambda b, t: (b, t, 0))],
        out_specs=pl.BlockSpec((1, tn, NUM_CLASSES), lambda b, t: (b, t, 0)),
        compiler_params=pltpu.CompilerParams(
            dimension_semantics=("parallel", "parallel"),
            vmem_limit_bytes=32 * 1024 * 1024,
        ),
        cost_estimate=cost,
    )(x_blocks)

    if n_out != N:                         # only for N < 1024 (cheap)
        out = out[:, :N, :]
    return out


def _reference(inputs):
    """Pure-JAX reference mirroring the PyTorch module."""
    B = inputs.shape[0]
    xf = inputs.reshape(B, -1).astype(jnp.int32)
    shifted = jnp.concatenate([xf[:, 1:], xf[:, -1:] + 1], axis=1)
    shifted = jnp.where(shifted > NUM_CLASSES - 1, 0, shifted)
    return jax.nn.one_hot(shifted, NUM_CLASSES, dtype=jnp.float32)


if __name__ == "__main__":
    key = jax.random.PRNGKey(0)
    # Small NCHW integer input, consistent with the flatten->one_hot(256) forward.
    x = jax.random.randint(key, (2, 4, 16, 16), 0, 256, dtype=jnp.int32)
    # Force the "last value + 1 > 255 -> 0" clamp path on one batch element.
    x = x.at[-1, -1, -1, -1].set(255)

    out = jax.block_until_ready(model_mock_forward(x))
    ref = jax.block_until_ready(_reference(x))

    assert out.shape == (2, 4 * 16 * 16, 256), out.shape
    assert out.dtype == jnp.float32
    np.testing.assert_array_equal(np.asarray(out), np.asarray(ref))

    print("KERNEL_OK")
</pallas_src>

<mosaic_0001>
module attributes {stable_mosaic.version = 11 : i64} {
  func.func @_onehot_kernel(%arg0: i32, %arg1: i32, %arg2: memref<1x8x128xi32, #tpu.memory_space<vmem>>, %arg3: memref<1x1024x256xf32, #tpu.memory_space<vmem>>) attributes {dimension_semantics = [#tpu.dimension_semantics<parallel>, #tpu.dimension_semantics<parallel>], iteration_bounds = array<i64: 2, 1>, scalar_prefetch = 0 : i64, scratch_operands = 0 : i64, tpu.core_type = #tpu.core_type<tc>, window_params = [{transform_indices = @transform_0, window_bounds = array<i64: 1, 8, 128>}, {transform_indices = @transform_1, window_bounds = array<i64: 1, 1024, 256>}]} {
    %0 = tpu.iota {dimensions = array<i32: 1>} : vector<1x256xi32>
    %1 = tpu.iota {dimensions = array<i32: 0>} : vector<128x128xi32>
    %2 = tpu.iota {dimensions = array<i32: 1>} : vector<128x128xi32>
    %3 = arith.cmpi eq, %1, %2 : vector<128x128xi32>
    %c0 = arith.constant 0 : index
    %c0_0 = arith.constant 0 : index
    %c0_1 = arith.constant 0 : index
    %4 = vector.load %arg2[%c0, %c0_0, %c0_1] : memref<1x8x128xi32, #tpu.memory_space<vmem>>, vector<1x1x128xi32>
    %5 = vector.shape_cast %4 : vector<1x1x128xi32> to vector<1x128xi32>
    %6 = vector.shape_cast %5 : vector<1x128xi32> to vector<1x128xi32>
    %7 = vector.broadcast %6 : vector<1x128xi32> to vector<128x128xi32>
    %c0_i32 = arith.constant 0 : i32
    %8 = vector.broadcast %c0_i32 : i32 to vector<128x128xi32>
    %9 = arith.select %3, %7, %8 : vector<128x128xi1>, vector<128x128xi32>
    %cst = arith.constant dense<0> : vector<128xi32>
    %10 = vector.multi_reduction <add>, %9, %cst [1] : vector<128x128xi32> to vector<128xi32>
    %11 = vector.shape_cast %10 : vector<128xi32> to vector<128x1xi32>
    %12 = vector.broadcast %11 : vector<128x1xi32> to vector<128x256xi32>
    %13 = vector.broadcast %0 : vector<1x256xi32> to vector<128x256xi32>
    %14 = arith.cmpi eq, %12, %13 : vector<128x256xi32>
    %15 = arith.extui %14 : vector<128x256xi1> to vector<128x256xi32>
    %16 = arith.sitofp %15 : vector<128x256xi32> to vector<128x256xf32>
    %c0_2 = arith.constant 0 : index
    %c0_3 = arith.constant 0 : index
    %c0_4 = arith.constant 0 : index
    %17 = vector.load %arg3[%c0_2, %c0_3, %c0_4] : memref<1x1024x256xf32, #tpu.memory_space<vmem>>, vector<1x128x256xf32>
    %18 = vector.shape_cast %17 : vector<1x128x256xf32> to vector<128x256xf32>
    %19 = vector.shape_cast %16 : vector<128x256xf32> to vector<1x128x256xf32>
    tpu.vector_store %arg3[%c0_2, %c0_3, %c0_4], %19 {strides = array<i32>} : memref<1x1024x256xf32, #tpu.memory_space<vmem>>, vector<1x128x256xf32>,
    %c0_5 = arith.constant 0 : index
    %c1 = arith.constant 1 : index
    %c0_6 = arith.constant 0 : index
    %20 = vector.load %arg2[%c0_5, %c1, %c0_6] : memref<1x8x128xi32, #tpu.memory_space<vmem>>, vector<1x1x128xi32>
    %21 = vector.shape_cast %20 : vector<1x1x128xi32> to vector<1x128xi32>
    %22 = vector.shape_cast %21 : vector<1x128xi32> to vector<1x128xi32>
    %23 = vector.broadcast %22 : vector<1x128xi32> to vector<128x128xi32>
    %c0_i32_7 = arith.constant 0 : i32
    %24 = vector.broadcast %c0_i32_7 : i32 to vector<128x128xi32>
    %25 = arith.select %3, %23, %24 : vector<128x128xi1>, vector<128x128xi32>
    %cst_8 = arith.constant dense<0> : vector<128xi32>
    %26 = vector.multi_reduction <add>, %25, %cst_8 [1] : vector<128x128xi32> to vector<128xi32>
    %27 = vector.shape_cast %26 : vector<128xi32> to vector<128x1xi32>
    %28 = vector.broadcast %27 : vector<128x1xi32> to vector<128x256xi32>
    %29 = vector.broadcast %0 : vector<1x256xi32> to vector<128x256xi32>
    %30 = arith.cmpi eq, %28, %29 : vector<128x256xi32>
    %31 = arith.extui %30 : vector<128x256xi1> to vector<128x256xi32>
    %32 = arith.sitofp %31 : vector<128x256xi32> to vector<128x256xf32>
    %c0_9 = arith.constant 0 : index
    %c128 = arith.constant 128 : index
    %c0_10 = arith.constant 0 : index
    %33 = vector.load %arg3[%c0_9, %c128, %c0_10] : memref<1x1024x256xf32, #tpu.memory_space<vmem>>, vector<1x128x256xf32>
    %34 = vector.shape_cast %33 : vector<1x128x256xf32> to vector<128x256xf32>
    %35 = vector.shape_cast %32 : vector<128x256xf32> to vector<1x128x256xf32>
    tpu.vector_store %arg3[%c0_9, %c128, %c0_10], %35 {strides = array<i32>} : memref<1x1024x256xf32, #tpu.memory_space<vmem>>, vector<1x128x256xf32>,
    %c0_11 = arith.constant 0 : index
    %c2 = arith.constant 2 : index
    %c0_12 = arith.constant 0 : index
    %36 = vector.load %arg2[%c0_11, %c2, %c0_12] : memref<1x8x128xi32, #tpu.memory_space<vmem>>, vector<1x1x128xi32>
    %37 = vector.shape_cast %36 : vector<1x1x128xi32> to vector<1x128xi32>
    %38 = vector.shape_cast %37 : vector<1x128xi32> to vector<1x128xi32>
    %39 = vector.broadcast %38 : vector<1x128xi32> to vector<128x128xi32>
    %c0_i32_13 = arith.constant 0 : i32
    %40 = vector.broadcast %c0_i32_13 : i32 to vector<128x128xi32>
    %41 = arith.select %3, %39, %40 : vector<128x128xi1>, vector<128x128xi32>
    %cst_14 = arith.constant dense<0> : vector<128xi32>
    %42 = vector.multi_reduction <add>, %41, %cst_14 [1] : vector<128x128xi32> to vector<128xi32>
    %43 = vector.shape_cast %42 : vector<128xi32> to vector<128x1xi32>
    %44 = vector.broadcast %43 : vector<128x1xi32> to vector<128x256xi32>
    %45 = vector.broadcast %0 : vector<1x256xi32> to vector<128x256xi32>
    %46 = arith.cmpi eq, %44, %45 : vector<128x256xi32>
    %47 = arith.extui %46 : vector<128x256xi1> to vector<128x256xi32>
    %48 = arith.sitofp %47 : vector<128x256xi32> to vector<128x256xf32>
    %c0_15 = arith.constant 0 : index
    %c256 = arith.constant 256 : index
    %c0_16 = arith.constant 0 : index
    %49 = vector.load %arg3[%c0_15, %c256, %c0_16] : memref<1x1024x256xf32, #tpu.memory_space<vmem>>, vector<1x128x256xf32>
    %50 = vector.shape_cast %49 : vector<1x128x256xf32> to vector<128x256xf32>
    %51 = vector.shape_cast %48 : vector<128x256xf32> to vector<1x128x256xf32>
    tpu.vector_store %arg3[%c0_15, %c256, %c0_16], %51 {strides = array<i32>} : memref<1x1024x256xf32, #tpu.memory_space<vmem>>, vector<1x128x256xf32>,
    %c0_17 = arith.constant 0 : index
    %c3 = arith.constant 3 : index
    %c0_18 = arith.constant 0 : index
    %52 = vector.load %arg2[%c0_17, %c3, %c0_18] : memref<1x8x128xi32, #tpu.memory_space<vmem>>, vector<1x1x128xi32>
    %53 = vector.shape_cast %52 : vector<1x1x128xi32> to vector<1x128xi32>
    %54 = vector.shape_cast %53 : vector<1x128xi32> to vector<1x128xi32>
    %55 = vector.broadcast %54 : vector<1x128xi32> to vector<128x128xi32>
    %c0_i32_19 = arith.constant 0 : i32
    %56 = vector.broadcast %c0_i32_19 : i32 to vector<128x128xi32>
    %57 = arith.select %3, %55, %56 : vector<128x128xi1>, vector<128x128xi32>
    %cst_20 = arith.constant dense<0> : vector<128xi32>
    %58 = vector.multi_reduction <add>, %57, %cst_20 [1] : vector<128x128xi32> to vector<128xi32>
    %59 = vector.shape_cast %58 : vector<128xi32> to vector<128x1xi32>
    %60 = vector.broadcast %59 : vector<128x1xi32> to vector<128x256xi32>
    %61 = vector.broadcast %0 : vector<1x256xi32> to vector<128x256xi32>
    %62 = arith.cmpi eq, %60, %61 : vector<128x256xi32>
    %63 = arith.extui %62 : vector<128x256xi1> to vector<128x256xi32>
    %64 = arith.sitofp %63 : vector<128x256xi32> to vector<128x256xf32>
    %c0_21 = arith.constant 0 : index
    %c384 = arith.constant 384 : index
    %c0_22 = arith.constant 0 : index
    %65 = vector.load %arg3[%c0_21, %c384, %c0_22] : memref<1x1024x256xf32, #tpu.memory_space<vmem>>, vector<1x128x256xf32>
    %66 = vector.shape_cast %65 : vector<1x128x256xf32> to vector<128x256xf32>
    %67 = vector.shape_cast %64 : vector<128x256xf32> to vector<1x128x256xf32>
    tpu.vector_store %arg3[%c0_21, %c384, %c0_22], %67 {strides = array<i32>} : memref<1x1024x256xf32, #tpu.memory_space<vmem>>, vector<1x128x256xf32>,
    %c0_23 = arith.constant 0 : index
    %c4 = arith.constant 4 : index
    %c0_24 = arith.constant 0 : index
    %68 = vector.load %arg2[%c0_23, %c4, %c0_24] : memref<1x8x128xi32, #tpu.memory_space<vmem>>, vector<1x1x128xi32>
    %69 = vector.shape_cast %68 : vector<1x1x128xi32> to vector<1x128xi32>
    %70 = vector.shape_cast %69 : vector<1x128xi32> to vector<1x128xi32>
    %71 = vector.broadcast %70 : vector<1x128xi32> to vector<128x128xi32>
    %c0_i32_25 = arith.constant 0 : i32
    %72 = vector.broadcast %c0_i32_25 : i32 to vector<128x128xi32>
    %73 = arith.select %3, %71, %72 : vector<128x128xi1>, vector<128x128xi32>
    %cst_26 = arith.constant dense<0> : vector<128xi32>
    %74 = vector.multi_reduction <add>, %73, %cst_26 [1] : vector<128x128xi32> to vector<128xi32>
    %75 = vector.shape_cast %74 : vector<128xi32> to vector<128x1xi32>
    %76 = vector.broadcast %75 : vector<128x1xi32> to vector<128x256xi32>
    %77 = vector.broadcast %0 : vector<1x256xi32> to vector<128x256xi32>
    %78 = arith.cmpi eq, %76, %77 : vector<128x256xi32>
    %79 = arith.extui %78 : vector<128x256xi1> to vector<128x256xi32>
    %80 = arith.sitofp %79 : vector<128x256xi32> to vector<128x256xf32>
    %c0_27 = arith.constant 0 : index
    %c512 = arith.constant 512 : index
    %c0_28 = arith.constant 0 : index
    %81 = vector.load %arg3[%c0_27, %c512, %c0_28] : memref<1x1024x256xf32, #tpu.memory_space<vmem>>, vector<1x128x256xf32>
    %82 = vector.shape_cast %81 : vector<1x128x256xf32> to vector<128x256xf32>
    %83 = vector.shape_cast %80 : vector<128x256xf32> to vector<1x128x256xf32>
    tpu.vector_store %arg3[%c0_27, %c512, %c0_28], %83 {strides = array<i32>} : memref<1x1024x256xf32, #tpu.memory_space<vmem>>, vector<1x128x256xf32>,
    %c0_29 = arith.constant 0 : index
    %c5 = arith.constant 5 : index
    %c0_30 = arith.constant 0 : index
    %84 = vector.load %arg2[%c0_29, %c5, %c0_30] : memref<1x8x128xi32, #tpu.memory_space<vmem>>, vector<1x1x128xi32>
    %85 = vector.shape_cast %84 : vector<1x1x128xi32> to vector<1x128xi32>
    %86 = vector.shape_cast %85 : vector<1x128xi32> to vector<1x128xi32>
    %87 = vector.broadcast %86 : vector<1x128xi32> to vector<128x128xi32>
    %c0_i32_31 = arith.constant 0 : i32
    %88 = vector.broadcast %c0_i32_31 : i32 to vector<128x128xi32>
    %89 = arith.select %3, %87, %88 : vector<128x128xi1>, vector<128x128xi32>
    %cst_32 = arith.constant dense<0> : vector<128xi32>
    %90 = vector.multi_reduction <add>, %89, %cst_32 [1] : vector<128x128xi32> to vector<128xi32>
    %91 = vector.shape_cast %90 : vector<128xi32> to vector<128x1xi32>
    %92 = vector.broadcast %91 : vector<128x1xi32> to vector<128x256xi32>
    %93 = vector.broadcast %0 : vector<1x256xi32> to vector<128x256xi32>
    %94 = arith.cmpi eq, %92, %93 : vector<128x256xi32>
    %95 = arith.extui %94 : vector<128x256xi1> to vector<128x256xi32>
    %96 = arith.sitofp %95 : vector<128x256xi32> to vector<128x256xf32>
    %c0_33 = arith.constant 0 : index
    %c640 = arith.constant 640 : index
    %c0_34 = arith.constant 0 : index
    %97 = vector.load %arg3[%c0_33, %c640, %c0_34] : memref<1x1024x256xf32, #tpu.memory_space<vmem>>, vector<1x128x256xf32>
    %98 = vector.shape_cast %97 : vector<1x128x256xf32> to vector<128x256xf32>
    %99 = vector.shape_cast %96 : vector<128x256xf32> to vector<1x128x256xf32>
    tpu.vector_store %arg3[%c0_33, %c640, %c0_34], %99 {strides = array<i32>} : memref<1x1024x256xf32, #tpu.memory_space<vmem>>, vector<1x128x256xf32>,
    %c0_35 = arith.constant 0 : index
    %c6 = arith.constant 6 : index
    %c0_36 = arith.constant 0 : index
    %100 = vector.load %arg2[%c0_35, %c6, %c0_36] : memref<1x8x128xi32, #tpu.memory_space<vmem>>, vector<1x1x128xi32>
    %101 = vector.shape_cast %100 : vector<1x1x128xi32> to vector<1x128xi32>
    %102 = vector.shape_cast %101 : vector<1x128xi32> to vector<1x128xi32>
    %103 = vector.broadcast %102 : vector<1x128xi32> to vector<128x128xi32>
    %c0_i32_37 = arith.constant 0 : i32
    %104 = vector.broadcast %c0_i32_37 : i32 to vector<128x128xi32>
    %105 = arith.select %3, %103, %104 : vector<128x128xi1>, vector<128x128xi32>
    %cst_38 = arith.constant dense<0> : vector<128xi32>
    %106 = vector.multi_reduction <add>, %105, %cst_38 [1] : vector<128x128xi32> to vector<128xi32>
    %107 = vector.shape_cast %106 : vector<128xi32> to vector<128x1xi32>
    %108 = vector.broadcast %107 : vector<128x1xi32> to vector<128x256xi32>
    %109 = vector.broadcast %0 : vector<1x256xi32> to vector<128x256xi32>
    %110 = arith.cmpi eq, %108, %109 : vector<128x256xi32>
    %111 = arith.extui %110 : vector<128x256xi1> to vector<128x256xi32>
    %112 = arith.sitofp %111 : vector<128x256xi32> to vector<128x256xf32>
    %c0_39 = arith.constant 0 : index
    %c768 = arith.constant 768 : index
    %c0_40 = arith.constant 0 : index
    %113 = vector.load %arg3[%c0_39, %c768, %c0_40] : memref<1x1024x256xf32, #tpu.memory_space<vmem>>, vector<1x128x256xf32>
    %114 = vector.shape_cast %113 : vector<1x128x256xf32> to vector<128x256xf32>
    %115 = vector.shape_cast %112 : vector<128x256xf32> to vector<1x128x256xf32>
    tpu.vector_store %arg3[%c0_39, %c768, %c0_40], %115 {strides = array<i32>} : memref<1x1024x256xf32, #tpu.memory_space<vmem>>, vector<1x128x256xf32>,
    %c0_41 = arith.constant 0 : index
    %c7 = arith.constant 7 : index
    %c0_42 = arith.constant 0 : index
    %116 = vector.load %arg2[%c0_41, %c7, %c0_42] : memref<1x8x128xi32, #tpu.memory_space<vmem>>, vector<1x1x128xi32>
    %117 = vector.shape_cast %116 : vector<1x1x128xi32> to vector<1x128xi32>
    %118 = vector.shape_cast %117 : vector<1x128xi32> to vector<1x128xi32>
    %119 = vector.broadcast %118 : vector<1x128xi32> to vector<128x128xi32>
    %c0_i32_43 = arith.constant 0 : i32
    %120 = vector.broadcast %c0_i32_43 : i32 to vector<128x128xi32>
    %121 = arith.select %3, %119, %120 : vector<128x128xi1>, vector<128x128xi32>
    %cst_44 = arith.constant dense<0> : vector<128xi32>
    %122 = vector.multi_reduction <add>, %121, %cst_44 [1] : vector<128x128xi32> to vector<128xi32>
    %123 = vector.shape_cast %122 : vector<128xi32> to vector<128x1xi32>
    %124 = vector.broadcast %123 : vector<128x1xi32> to vector<128x256xi32>
    %125 = vector.broadcast %0 : vector<1x256xi32> to vector<128x256xi32>
    %126 = arith.cmpi eq, %124, %125 : vector<128x256xi32>
    %127 = arith.extui %126 : vector<128x256xi1> to vector<128x256xi32>
    %128 = arith.sitofp %127 : vector<128x256xi32> to vector<128x256xf32>
    %c0_45 = arith.constant 0 : index
    %c896 = arith.constant 896 : index
    %c0_46 = arith.constant 0 : index
    %129 = vector.load %arg3[%c0_45, %c896, %c0_46] : memref<1x1024x256xf32, #tpu.memory_space<vmem>>, vector<1x128x256xf32>
    %130 = vector.shape_cast %129 : vector<1x128x256xf32> to vector<128x256xf32>
    %131 = vector.shape_cast %128 : vector<128x256xf32> to vector<1x128x256xf32>
    tpu.vector_store %arg3[%c0_45, %c896, %c0_46], %131 {strides = array<i32>} : memref<1x1024x256xf32, #tpu.memory_space<vmem>>, vector<1x128x256xf32>,
    return
  }
  func.func @transform_0(%arg0: i32, %arg1: i32) -> (i32, i32, i32) {
    %c0_i32 = arith.constant 0 : i32
    %c0_i32_0 = arith.constant 0 : i32
    return %arg0, %arg1, %c0_i32 : i32, i32, i32
  }
  func.func @transform_1(%arg0: i32, %arg1: i32) -> (i32, i32, i32) {
    %c0_i32 = arith.constant 0 : i32
    %c0_i32_0 = arith.constant 0 : i32
    return %arg0, %arg1, %c0_i32 : i32, i32, i32
  }
}

</mosaic_0001>

<bundles_post_ra>
// kernel: model_mock_forward.1
= control target key start
LH: loop header
LB: loop body
LE: loop exit
PB: predicated region body
PF: predicated region fallthrough
CT: control target
= control target key end

     0   :  { %6 = vsyncpa [#allocation3], 0  ;;  %s4937_s0 = inlined_call_operand.vmem [shape: s32[2,8,128], index: 0, kind: input, shape index: {}]   ;;  %s4938_s1 = inlined_call_operand.hbm [shape: f32[2,1024,256], index: 1, kind: output, shape index: {}]  }
   0x1   :  { %8 = vsyncpa [#allocation3 + $0x1], 0  ;;  %s3422_s6 = smov 0   ;;  %s3424_s7 = smov 0  }
   0x2   :  { %s3426_s8 = smov 0   ;;  %s3428_s9 = smov 0  }
   0x3   :  { %s3430_s10 = smov 0   ;;  %s3432_s11 = smov 0  }
   0x4 LB: > { %s2995_s12 = sadd.s32 4294967295, %s3406_s11   ;;  %s2996_s13 = sadd.s32 4294967294, %s3406_s11   ;;  %s3406_s11 = sphi %s3432_s11, %s14_s11   ;;  %s3402_s10 = sphi %s3430_s10, %s5001_s10   ;;  %s3398_s9 = sphi %s3428_s9, %s5000_s9   ;;  %s3394_s8 = sphi %s3426_s8, %s4999_s8   ;;  %s3390_s7 = sphi %s3424_s7, %s4998_s7   ;;  %s3386_s6 = sphi %s3422_s6, %s4997_s6  }
   0x5   : > { %s26_s14 = sadd.s32 1, %s3402_s10  ;;  %s63_s15 = sadd.s32 1, %s3394_s8 }
   0x6   : > { %p28_p0 = scmp.ge.s32.totalorder %s26_s14, 2  ;;  %p73_p1 = scmp.ne.s32.totalorder %s3394_s8, %s3390_s7 }
   0x7   : > { %p74_p2 = scmp.eq.s32.totalorder %s2995_s12, 1  ;;  %p79_p3 = scmp.ne.s32.totalorder %s3390_s7, %s3386_s6 }
   0x8   : > { %s5003_s14 = smov (%p28_p0, %s26_s14), 0  ;;  %p80_p5 = scmp.eq.s32.totalorder %s2996_s13, 1 }
   0x9   : > { %p3462_p4 = por %p74_p2, %p73_p1  ;;  %s58_s17 = ssub.s32 %s3402_s10, %s5003_s14 }
   0xa   : > { %p2999_p6 = scmp.ge.s32.totalorder %s3406_s11, 1  ;;  %p61_p7 = scmp.eq.s32.totalorder %s58_s17, 0 }
   0xb   : > { %p3469_p8 = por %p80_p5, %p79_p3  ;;  %p108_p9 = scmp.lt.s32.totalorder %s3406_s11, 3 }
   0xc   : > { %s3475_s19 = scalar_select %p61_p7, %s3394_s8, %s63_s15  }
   0xd   : > { %p109_p10 = pnand %p2999_p6, %p108_p9 }
   0xe   : > { %p130_p11 = scmp.lt.s32.totalorder (!%p109_p10), %s3398_s9, 1  ;;  %s127_s25 = sand.u32 (!%p109_p10), 1, %s3390_s7  }
   0xf   : > { %112 = sbr.rel (%p109_p10) target bundleno = 698 (0x2ba), region = 24  ;;  %s3000_s26 = sshll.u32 (!%p109_p10), %s127_s25, 11 }
  0x10   : > { %s3733_s27 = scalar_lea.vmem (!%p109_p10), [#allocation2], %s3000_s26  ;;  %s3271_s28 = sshll.u32 (!%p109_p10), %s3398_s9, 15 }
  0x11   : > { %s2919_s29 = sshll.u32 (!%p109_p10), %s3733_s27, 4  ;;  %s4876_s3 = scalar_lea.hbm (!%p109_p10), %s4938_s1, %s3271_s28  ;;  %s4878_s29 = int_to_ptr.vmem [resolvable:$true] %s2919_s29 }
  0x12   : > { %s4892_s4 = scalar_lea.sflag (!%p109_p10), [#allocation3], %s127_s25  ;;  %s3330_s5 = scalar_lea.vmem (!%p109_p10), %s4878_s29, 32768 }
  0x13   : > { %p3331_p12 = scmp.ne.s32.totalorder (!%p109_p10), %s4878_s29, %s3330_s5 }
  0x14   : > { %v138_v0 = vlaneseq  ;;  %s131_s20 = scalar_select %p130_p11, %s3398_s9, 1  ;;  %v4959_v19 = vmov 0  ;;  %v4961_v26 = vmov 0  ;;  %v4963_v33 = vmov 0 }
  0x15   : > { %v4965_v40 = vmov 0  ;;  %v4967_v47 = vmov 0  ;;  %v4969_v54 = vmov 0  ;;  %p3332_p13 = pnand %p3331_p12, %p3462_p4  ;;  %s3409_s9 = smov [#allocation2]  }
  0x16   : > { %v3479_v1 = vand.u32 127, %v138_v0  ;;  %v3481_v2 = vshrl.u32 %v138_v0, 7  ;;  %s3001_s21 = sshll.u32 %s131_s20, 3  ;;  %s3334_s12 = sshll.u32 %s3409_s9, 4  ;;  %s3335_s12 = int_to_ptr.vmem [resolvable:$false] %s3334_s12 }
  0x17   : > { %s3494_s24 = scalar_lea.vmem %s4937_s0, %s3001_s21  ;;  %p3333_p0 = pneg %p3332_p13 }
  0x18   : > { %v143_v3 = vadd.s32 8, %v3481_v2  ;;  %vm3486_vm0 = vcmp.eq.s32.totalorder %v3481_v2, %v3479_v1  ;;  %v144_v5 = vadd.s32 16, %v3481_v2  ;;  %v3502_v7 = vld [vmem:[%s3494_s24] ss:$0 sm:$0xff]  ;;  %v145_v9 = vadd.s32 24, %v3481_v2  ;;  %s3336_s13 = scalar_lea.vmem %s3335_s12, 65536  ;;  %p3337_p1 = scmp.lt.s32.totalorder %s4878_s29, %s3335_s12 }
  0x19   : > { %v179_v11 = vsel %vm3486_vm0, %v3502_v7, 0  ;;  %v146_v20 = vadd.s32 32, %v3481_v2  ;;  %v147_v27 = vadd.s32 40, %v3481_v2  ;;  %v148_v34 = vadd.s32 48, %v3481_v2  ;;  %p3338_p2 = scmp.lt.s32.totalorder %s3336_s13, %s3330_s5 }
  0x1a   : > { %vm3497_vm1 = vcmp.eq.s32.totalorder %v143_v3, %v3479_v1  ;;  %vm3505_vm2 = vcmp.eq.s32.totalorder %v144_v5, %v3479_v1  ;;  %v195_v13 = vand.u32 65535, %v179_v11  ;;  %v196_v15 = vshrl.u32 %v179_v11, 16 }
  0x1b   : > { %v180_v10 = vsel %vm3497_vm1, %v3502_v7, 0  ;;  %v181_v16 = vsel %vm3505_vm2, %v3502_v7, 0  ;;  %vm3520_vm3 = vcmp.eq.s32.totalorder %v145_v9, %v3479_v1  ;;  %vm3529_vm4 = vcmp.eq.s32.totalorder %v146_v20, %v3479_v1  ;;  %p3339_p3 = por %p3338_p2, %p3337_p1 }
  0x1c   : > { %v207_v12 = vand.u32 65535, %v180_v10  ;;  %v208_v14 = vshrl.u32 %v180_v10, 16  ;;  %v197_v18 = vcvt.s32.f32 %v195_v13  ;;  %v4960_v19 = vsel %vm3520_vm3, 4294967295, %v4959_v19 }
  0x1d   : > { %v198_v22 = vcvt.s32.f32 %v196_v15  ;;  %v220_v23 = vshrl.u32 %v181_v16, 16  ;;  %v219_v24 = vand.u32 65535, %v181_v16  ;;  %v182_v25 = vsel %vm3520_vm3, %v3502_v7, 0  ;;  %p3340_p5 = pnand %p3339_p3, %p3333_p0 }
  0x1e   : > { %v209_v17 = vcvt.s32.f32 %v207_v12  ;;  %199 = vadd.xlane.f32.xlu0 %v197_v18  ;;  %v210_v21 = vcvt.s32.f32 %v208_v14  ;;  %v4962_v26 = vsel %vm3529_vm4, 4294967295, %v4961_v26  ;;  %v232_v30 = vshrl.u32 %v182_v25, 16 }
  0x1f   : > { %v222_v28 = vcvt.s32.f32 %v220_v23  ;;  %v221_v29 = vcvt.s32.f32 %v219_v24  ;;  %v231_v31 = vand.u32 65535, %v182_v25  ;;  %v183_v32 = vsel %vm3529_vm4, %v3502_v7, 0 }
  0x20   : > { %211 = vadd.xlane.f32.xlu1 %v209_v17  ;;  %vm3538_vm5 = vcmp.eq.s32.totalorder %v147_v27, %v3479_v1  ;;  %v234_v35 = vcvt.s32.f32 %v232_v30  ;;  %v244_v37 = vshrl.u32 %v183_v32, 16  ;;  %v243_v38 = vand.u32 65535, %v183_v32 }
  0x21   : > { %v4964_v33 = vsel %vm3538_vm5, 4294967295, %v4963_v33  ;;  %v233_v36 = vcvt.s32.f32 %v231_v31  ;;  %v184_v39 = vsel %vm3538_vm5, %v3502_v7, 0  ;;  %vm3547_vm6 = vcmp.eq.s32.totalorder %v148_v34, %v3479_v1 }
  0x22   : > { %201 = vadd.xlane.f32.xlu0 %v198_v22  ;;  %v4966_v40 = vsel %vm3547_vm6, 4294967295, %v4965_v40  ;;  %v149_v41 = vadd.s32 56, %v3481_v2  ;;  %v246_v42 = vcvt.s32.f32 %v244_v37  ;;  %v245_v43 = vcvt.s32.f32 %v243_v38 }
  0x23   : > { %v256_v44 = vshrl.u32 %v184_v39, 16  ;;  %v255_v45 = vand.u32 65535, %v184_v39  ;;  %v185_v46 = vsel %vm3547_vm6, %v3502_v7, 0  ;;  %v150_v48 = vadd.s32 64, %v3481_v2 }
  0x24   : > { %213 = vadd.xlane.f32.xlu1 %v210_v21  ;;  %vm3556_vm7 = vcmp.eq.s32.totalorder %v149_v41, %v3479_v1  ;;  %v268_v51 = vshrl.u32 %v185_v46, 16  ;;  %v267_v52 = vand.u32 65535, %v185_v46  ;;  %v151_v55 = vadd.s32 72, %v3481_v2 }
  0x25   : > { %v4968_v47 = vsel %vm3556_vm7, 4294967295, %v4967_v47  ;;  %v258_v49 = vcvt.s32.f32 %v256_v44  ;;  %v257_v50 = vcvt.s32.f32 %v255_v45  ;;  %v186_v53 = vsel %vm3556_vm7, %v3502_v7, 0 }
  0x26   : > { %223 = vadd.xlane.f32.xlu0 %v221_v29  ;;  %vm3565_vm8 = vcmp.eq.s32.totalorder %v150_v48, %v3479_v1  ;;  %v270_v56 = vcvt.s32.f32 %v268_v51  ;;  %v269_v57 = vcvt.s32.f32 %v267_v52  ;;  %v280_v58 = vshrl.u32 %v186_v53, 16 }
  0x27   : > { %v4970_v54 = vsel %vm3565_vm8, 4294967295, %v4969_v54  ;;  %v279_v59 = vand.u32 65535, %v186_v53  ;;  %v187_v60 = vsel %vm3565_vm8, %v3502_v7, 0  ;;  %vm3574_vm9 = vcmp.eq.s32.totalorder %v151_v55, %v3479_v1 }
  0x28   : > { %225 = vadd.xlane.f32.xlu1 %v222_v28  ;;  %v152_v62 = vadd.s32 80, %v3481_v2  ;;  %v282_v63 = vcvt.s32.f32 %v280_v58  ;;  %v292_v3 = vshrl.u32 %v187_v60, 16  ;;  %v291_v5 = vand.u32 65535, %v187_v60 }
  0x29   : > { %v281_v0 = vcvt.s32.f32 %v279_v59  ;;  %v188_v9 = vsel %vm3574_vm9, %v3502_v7, 0  ;;  %v153_v11 = vadd.s32 88, %v3481_v2  ;;  %v154_v18 = vadd.s32 96, %v3481_v2 }
  0x2a   : > { %235 = vadd.xlane.f32.xlu0 %v233_v36  ;;  %vm3583_vm10 = vcmp.eq.s32.totalorder %v152_v62, %v3479_v1  ;;  %v294_v12 = vcvt.s32.f32 %v292_v3  ;;  %v293_v13 = vcvt.s32.f32 %v291_v5  ;;  %v304_v14 = vshrl.u32 %v188_v9, 16 }
  0x2b   : > { %v303_v15 = vand.u32 65535, %v188_v9  ;;  %v189_v16 = vsel %vm3583_vm10, %v3502_v7, 0  ;;  %vm3592_vm11 = vcmp.eq.s32.totalorder %v153_v11, %v3479_v1  ;;  %vm3601_vm12 = vcmp.eq.s32.totalorder %v154_v18, %v3479_v1 }
  0x2c   : > { %237 = vadd.xlane.f32.xlu1 %v234_v35  ;;  %v306_v20 = vcvt.s32.f32 %v304_v14  ;;  %v316_v22 = vshrl.u32 %v189_v16, 16  ;;  %v315_v23 = vand.u32 65535, %v189_v16  ;;  %v190_v24 = vsel %vm3592_vm11, %v3502_v7, 0 }
  0x2d   : > { %v305_v21 = vcvt.s32.f32 %v303_v15  ;;  %v155_v27 = vadd.s32 104, %v3481_v2  ;;  %v328_v30 = vshrl.u32 %v190_v24, 16  ;;  %v327_v31 = vand.u32 65535, %v190_v24 }
  0x2e   : > { %247 = vadd.xlane.f32.xlu0 %v245_v43  ;;  %v318_v28 = vcvt.s32.f32 %v316_v22  ;;  %v317_v29 = vcvt.s32.f32 %v315_v23  ;;  %v191_v32 = vsel %vm3601_vm12, %v3502_v7, 0  ;;  %v156_v35 = vadd.s32 112, %v3481_v2 }
  0x2f   : > { %vm3610_vm13 = vcmp.eq.s32.totalorder %v155_v27, %v3479_v1  ;;  %v330_v36 = vcvt.s32.f32 %v328_v30  ;;  %v329_v37 = vcvt.s32.f32 %v327_v31  ;;  %v340_v38 = vshrl.u32 %v191_v32, 16 }
  0x30   : > { %249 = vadd.xlane.f32.xlu1 %v246_v42  ;;  %v339_v39 = vand.u32 65535, %v191_v32  ;;  %v192_v41 = vsel %vm3610_vm13, %v3502_v7, 0  ;;  %vm3619_vm14 = vcmp.eq.s32.totalorder %v156_v35, %v3479_v1  ;;  %v157_v43 = vadd.s32 120, %v3481_v2 }
  0x31   : > { %v342_v44 = vcvt.s32.f32 %v340_v38  ;;  %v352_v46 = vshrl.u32 %v192_v41, 16  ;;  %v351_v48 = vand.u32 65535, %v192_v41 }
  0x32   : > { %259 = vadd.xlane.f32.xlu0 %v257_v50  ;;  %v341_v45 = vcvt.s32.f32 %v339_v39  ;;  %vm3628_vm15 = vcmp.eq.s32.totalorder %v157_v43, %v3479_v1 }
  0x33   : > { %v354_v51 = vcvt.s32.f32 %v352_v46  ;;  %v353_v2 = vcvt.s32.f32 %v351_v48  ;;  %v194_v55 = vsel %vm3628_vm15, %v3502_v7, 0 }
  0x34   : > { %261 = vadd.xlane.f32.xlu1 %v258_v49  ;;  %v193_v49 = vsel %vm3619_vm14, %v3502_v7, 0  ;;  %v376_v59 = vshrl.u32 %v194_v55, 16  ;;  %v375_v60 = vand.u32 65535, %v194_v55 }
  0x35   : > { %v364_v52 = vshrl.u32 %v193_v49, 16  ;;  %v363_v53 = vand.u32 65535, %v193_v49 }
  0x36   : > { %271 = vadd.xlane.f32.xlu0 %v269_v57 }
  0x37   : > { %v366_v57 = vcvt.s32.f32 %v364_v52  ;;  %v365_v58 = vcvt.s32.f32 %v363_v53 }
  0x38   : > { %273 = vadd.xlane.f32.xlu1 %v270_v56  ;;  %v3636_v56 = vld [vmem:[%s3494_s24 + $0x1] ss:$0 sm:$0xff] }
  0x39   : > { %v520_v62 = vsel %vm3486_vm0, %v3636_v56, 0  ;;  %v521_v7 = vsel %vm3497_vm1, %v3636_v56, 0  ;;  %v522_v14 = vsel %vm3505_vm2, %v3636_v56, 0  ;;  %v525_v35 = vsel %vm3538_vm5, %v3636_v56, 0 }
  0x3a   : > { %283 = vadd.xlane.f32.xlu0 %v281_v0  ;;  %v377_v0 = vcvt.s32.f32 %v375_v60  ;;  %v537_v3 = vshrl.u32 %v520_v62, 16  ;;  %v536_v5 = vand.u32 65535, %v520_v62  ;;  %v561_v18 = vshrl.u32 %v522_v14, 16 }
  0x3b   : > { %v597_v38 = vshrl.u32 %v525_v35, 16  ;;  %v596_v39 = vand.u32 65535, %v525_v35  ;;  %v526_v41 = vsel %vm3547_vm6, %v3636_v56, 0  ;;  %v527_v48 = vsel %vm3556_vm7, %v3636_v56, 0 }
  0x3c   : > { %285 = vadd.xlane.f32.xlu1 %v282_v63  ;;  %v378_v63 = vcvt.s32.f32 %v376_v59  ;;  %v539_v9 = vcvt.s32.f32 %v537_v3  ;;  %v538_v11 = vcvt.s32.f32 %v536_v5  ;;  %v563_v22 = vcvt.s32.f32 %v561_v18 }
  0x3d   : > { %v599_v43 = vcvt.s32.f32 %v597_v38  ;;  %v608_v46 = vand.u32 65535, %v526_v41  ;;  %v620_v52 = vand.u32 65535, %v527_v48  ;;  %v528_v53 = vsel %vm3565_vm8, %v3636_v56, 0 }
  0x3e   : > { %295 = vadd.xlane.f32.xlu0 %v293_v13  ;;  %v548_v13 = vand.u32 65535, %v521_v7  ;;  %v632_v59 = vand.u32 65535, %v528_v53  ;;  %v529_v60 = vsel %vm3574_vm9, %v3636_v56, 0  ;;  %v530_v5 = vsel %vm3583_vm10, %v3636_v56, 0 }
  0x3f   : > { %v644_v3 = vand.u32 65535, %v529_v60 }
  0x40   : > { %297 = vadd.xlane.f32.xlu1 %v294_v12  ;;  %v549_v12 = vshrl.u32 %v521_v7, 16  ;;  %v550_v16 = vcvt.s32.f32 %v548_v13  ;;  %v531_v13 = vsel %vm3592_vm11, %v3636_v56, 0 }
  0x41   : > { %v668_v18 = vand.u32 65535, %v531_v13 }
  0x42   : > { %307 = vadd.xlane.f32.xlu0 %v305_v21  ;;  %v551_v15 = vcvt.s32.f32 %v549_v12  ;;  %v523_v21 = vsel %vm3520_vm3, %v3636_v56, 0  ;;  %v656_v12 = vand.u32 65535, %v530_v5 }
  0x43   : > { %v573_v24 = vshrl.u32 %v523_v21, 16  ;;  %v572_v27 = vand.u32 65535, %v523_v21 }
  0x44   : > { %309 = vadd.xlane.f32.xlu1 %v306_v20  ;;  %v560_v20 = vand.u32 65535, %v522_v14 }
  0x45   : > { %v574_v30 = vcvt.s32.f32 %v572_v27  ;;  %v533_v27 = vsel %vm3610_vm13, %v3636_v56, 0 }
  0x46   : > { %319 = vadd.xlane.f32.xlu0 %v317_v29  ;;  %v562_v23 = vcvt.s32.f32 %v560_v20  ;;  %v575_v29 = vcvt.s32.f32 %v573_v24  ;;  %v532_v20 = vsel %vm3601_vm12, %v3636_v56, 0 }
  0x47   : > { %v680_v24 = vand.u32 65535, %v532_v20 }
  0x48   : > { %321 = vadd.xlane.f32.xlu1 %v318_v28  ;;  %v524_v28 = vsel %vm3529_vm4, %v3636_v56, 0 }
  0x49   : > { %v585_v31 = vshrl.u32 %v524_v28, 16  ;;  %v584_v32 = vand.u32 65535, %v524_v28 }
  0x4a   : > { %331 = vadd.xlane.f32.xlu0 %v329_v37 }
  0x4b   : > { %v586_v37 = vcvt.s32.f32 %v584_v32  ;;  %v534_v32 = vsel %vm3619_vm14, %v3636_v56, 0 }
  0x4c   : > { %333 = vadd.xlane.f32.xlu1 %v330_v36  ;;  %v587_v36 = vcvt.s32.f32 %v585_v31  ;;  %v692_v31 = vand.u32 65535, %v533_v27  ;;  %v704_v38 = vand.u32 65535, %v534_v32 }
  0x4e   : > { %343 = vadd.xlane.f32.xlu0 %v341_v45  ;;  %v609_v45 = vshrl.u32 %v526_v41, 16  ;;  %v3687_v41 = vld [vmem:[%s3494_s24 + $0x2] ss:$0 sm:$0xff] }
  0x50   : > { %345 = vadd.xlane.f32.xlu1 %v342_v44  ;;  %v598_v44 = vcvt.s32.f32 %v596_v39  ;;  %v611_v49 = vcvt.s32.f32 %v609_v45  ;;  %v535_v39 = vsel %vm3628_vm15, %v3636_v56, 0  ;;  %v862_v56 = vsel %vm3497_vm1, %v3687_v41, 0 }
  0x51   : > { %v717_v45 = vshrl.u32 %v535_v39, 16 }
  0x52   : > { %355 = vadd.xlane.f32.xlu0 %v353_v2  ;;  %v621_v2 = vshrl.u32 %v527_v48, 16  ;;  %v861_v48 = vsel %vm3486_vm0, %v3687_v41, 0 }
  0x54   : > { %357 = vadd.xlane.f32.xlu1 %v354_v51  ;;  %v610_v51 = vcvt.s32.f32 %v608_v46  ;;  %v623_v55 = vcvt.s32.f32 %v621_v2  ;;  %v716_v46 = vand.u32 65535, %v535_v39  ;;  %v878_v2 = vshrl.u32 %v861_v48, 16 }
  0x56   : > { %367 = vadd.xlane.f32.xlu0 %v365_v58  ;;  %v633_v58 = vshrl.u32 %v528_v53, 16  ;;  %v880_v53 = vcvt.s32.f32 %v878_v2 }
  0x58   : > { %369 = vadd.xlane.f32.xlu1 %v366_v57  ;;  %v622_v57 = vcvt.s32.f32 %v620_v52  ;;  %v635_v62 = vcvt.s32.f32 %v633_v58  ;;  %v877_v52 = vand.u32 65535, %v861_v48  ;;  %v889_v58 = vand.u32 65535, %v862_v56 }
  0x5a   : > { %379 = vadd.xlane.f32.xlu0 %v377_v0  ;;  %v645_v0 = vshrl.u32 %v529_v60, 16  ;;  %v864_v60 = vsel %vm3520_vm3, %v3687_v41, 0 }
  0x5c   : > { %381 = vadd.xlane.f32.xlu1 %v378_v63  ;;  %v634_v63 = vcvt.s32.f32 %v632_v59  ;;  %v647_v7 = vcvt.s32.f32 %v645_v0  ;;  %v863_v59 = vsel %vm3505_vm2, %v3687_v41, 0 }
  0x5d   : > { %v902_v0 = vshrl.u32 %v863_v59, 16 }
  0x5e   : > { %540 = vadd.xlane.f32.xlu0 %v538_v11  ;;  %v657_v11 = vshrl.u32 %v530_v5, 16  ;;  %v914_v5 = vshrl.u32 %v864_v60, 16 }
  0x60   : > { %542 = vadd.xlane.f32.xlu1 %v539_v9  ;;  %v646_v9 = vcvt.s32.f32 %v644_v3  ;;  %v659_v14 = vcvt.s32.f32 %v657_v11  ;;  %v901_v3 = vand.u32 65535, %v863_v59  ;;  %v913_v11 = vand.u32 65535, %v864_v60 }
  0x62   : > { %552 = vadd.xlane.f32.xlu0 %v550_v16  ;;  %v669_v16 = vshrl.u32 %v531_v13, 16  ;;  %v916_v13 = vcvt.s32.f32 %v914_v5 }
  0x64   : > { %554 = vadd.xlane.f32.xlu1 %v551_v15  ;;  %v658_v15 = vcvt.s32.f32 %v656_v12  ;;  %v671_v21 = vcvt.s32.f32 %v669_v16  ;;  %v865_v12 = vsel %vm3529_vm4, %v3687_v41, 0 }
  0x65   : > { %v925_v16 = vand.u32 65535, %v865_v12 }
  0x66   : > { %564 = vadd.xlane.f32.xlu0 %v562_v23  ;;  %v681_v23 = vshrl.u32 %v532_v20, 16 }
  0x68   : > { %566 = vadd.xlane.f32.xlu1 %v563_v22  ;;  %v670_v22 = vcvt.s32.f32 %v668_v18  ;;  %v683_v28 = vcvt.s32.f32 %v681_v23  ;;  %v866_v18 = vsel %vm3538_vm5, %v3687_v41, 0 }
  0x6a   : > { %576 = vadd.xlane.f32.xlu0 %v574_v30  ;;  %v693_v30 = vshrl.u32 %v533_v27, 16  ;;  %v867_v27 = vsel %vm3547_vm6, %v3687_v41, 0 }
  0x6b   : > { %v949_v39 = vand.u32 65535, %v867_v27 }
  0x6c   : > { %578 = vadd.xlane.f32.xlu1 %v575_v29  ;;  %v682_v29 = vcvt.s32.f32 %v680_v24  ;;  %v695_v35 = vcvt.s32.f32 %v693_v30  ;;  %v927_v24 = vcvt.s32.f32 %v925_v16  ;;  %v937_v30 = vand.u32 65535, %v866_v18 }
  0x6e   : > { %588 = vadd.xlane.f32.xlu0 %v586_v37  ;;  %v705_v37 = vshrl.u32 %v534_v32, 16  ;;  %v939_v2 = vcvt.s32.f32 %v937_v30 }
  0x70   : > { %590 = vadd.xlane.f32.xlu1 %v587_v36  ;;  %v694_v36 = vcvt.s32.f32 %v692_v31  ;;  %v3712_v31 = vadd.s32 128, %v3479_v1 }
  0x72   : > { %600 = vadd.xlane.f32.xlu0 %v598_v44  ;;  %v706_v44 = vcvt.s32.f32 %v704_v38  ;;  %v950_v38 = vshrl.u32 %v867_v27, 16 }
  0x74   : > { %602 = vadd.xlane.f32.xlu1 %v599_v43  ;;  %v707_v43 = vcvt.s32.f32 %v705_v37 }
  0x76   : > { %612 = vadd.xlane.f32.xlu0 %v610_v51  ;;  %v718_v51 = vcvt.s32.f32 %v716_v46 }
  0x78   : > { %614 = vadd.xlane.f32.xlu1 %v611_v49  ;;  %v719_v49 = vcvt.s32.f32 %v717_v45 }
  0x7a   : > { %624 = vadd.xlane.f32.xlu0 %v622_v57  ;;  %v890_v57 = vshrl.u32 %v862_v56, 16 }
  0x7c   : > { %626 = vadd.xlane.f32.xlu1 %v623_v55  ;;  %v879_v55 = vcvt.s32.f32 %v877_v52 }
  0x7e   : > { %636 = vadd.xlane.f32.xlu0 %v634_v63  ;;  %v891_v63 = vcvt.s32.f32 %v889_v58  ;;  %v951_v58 = vcvt.s32.f32 %v949_v39 }
  0x80   : > { %638 = vadd.xlane.f32.xlu1 %v635_v62  ;;  %v892_v62 = vcvt.s32.f32 %v890_v57  ;;  %v952_v57 = vcvt.s32.f32 %v950_v38 }
  0x82   : > { %648 = vadd.xlane.f32.xlu0 %v646_v9  ;;  %v903_v9 = vcvt.s32.f32 %v901_v3 }
  0x84   : > { %650 = vadd.xlane.f32.xlu1 %v647_v7  ;;  %v904_v7 = vcvt.s32.f32 %v902_v0 }
  0x86   : > { %660 = vadd.xlane.f32.xlu0 %v658_v15  ;;  %v926_v15 = vshrl.u32 %v865_v12, 16 }
  0x88   : > { %662 = vadd.xlane.f32.xlu1 %v659_v14  ;;  %v915_v14 = vcvt.s32.f32 %v913_v11  ;;  %v928_v23 = vcvt.s32.f32 %v926_v15 }
  0x8a   : > { %672 = vadd.xlane.f32.xlu0 %v670_v22  ;;  %v938_v22 = vshrl.u32 %v866_v18, 16 }
  0x8c   : > { %674 = vadd.xlane.f32.xlu1 %v671_v21  ;;  %v940_v37 = vcvt.s32.f32 %v938_v22 }
  0x8e   : > { %684 = vadd.xlane.f32.xlu0 %v682_v29 }
  0x90   : > { %686 = vadd.xlane.f32.xlu1 %v683_v28 }
  0x92   : > { %696 = vadd.xlane.f32.xlu0 %v694_v36  ;;  %v868_v36 = vsel %vm3556_vm7, %v3687_v41, 0 }
  0x93   : > { %v961_v59 = vand.u32 65535, %v868_v36 }
  0x94   : > { %698 = vadd.xlane.f32.xlu1 %v695_v35 }
  0x96   : > { %708 = vadd.xlane.f32.xlu0 %v706_v44 }
  0x98   : > { %710 = vadd.xlane.f32.xlu1 %v707_v43  ;;  %v3720_v43 = vsel %vm3565_vm8, %v3687_v41, 0 }
  0x99   : > { %v974_v60 = vshrl.u32 %v3720_v43, 16  ;;  %v973_v27 = vand.u32 65535, %v3720_v43 }
  0x9a   : > { %720 = vadd.xlane.f32.xlu0 %v718_v51 }
  0x9c   : > { %722 = vadd.xlane.f32.xlu1 %v719_v49 }
  0x9e   : > { %881 = vadd.xlane.f32.xlu0 %v879_v55  ;;  %v962_v55 = vshrl.u32 %v868_v36, 16  ;;  %v871_v36 = vsel %vm3583_vm10, %v3687_v41, 0 }
  0xa0   : > { %883 = vadd.xlane.f32.xlu1 %v880_v53 }
  0xa2   : > { %893 = vadd.xlane.f32.xlu0 %v891_v63 }
  0xa4   : > { %895 = vadd.xlane.f32.xlu1 %v892_v62  ;;  %v3408_v62 = vmov 0.0  }
  0xa6   : > { %905 = vadd.xlane.f32.xlu0 %v903_v9 }
  0xa7   : > { %v200_v21 = vpop.xlane.xlu0 %199 }
  0xa8   : > { %907 = vadd.xlane.f32.xlu1 %v904_v7  ;;  %v203_v45 = vcvt.f32.s32 %v200_v21 }
  0xa9   : > { %v212_v20 = vpop.xlane.xlu1 %211 }
  0xaa   : > { %917 = vadd.xlane.f32.xlu0 %v915_v14  ;;  %v215_v44 = vcvt.f32.s32 %v212_v20  ;;  %v964_v14 = vcvt.s32.f32 %v962_v55  ;;  %v870_v20 = vsel %vm3574_vm9, %v3687_v41, 0 }
  0xab   : > { %v202_v29 = vpop.xlane.xlu0 %201 }
  0xac   : > { %919 = vadd.xlane.f32.xlu1 %v916_v13  ;;  %v204_v35 = vcvt.f32.s32 %v202_v29 }
  0xad   : > { %v214_v28 = vpop.xlane.xlu1 %213 }
  0xae   : > { %v216_v32 = vcvt.f32.s32 %v214_v28  ;;  %v205_v48 = vshll.u32 %v204_v35, 16  ;;  %929 = vadd.xlane.f32.xlu0 %v927_v24  ;;  %v976_v24 = vcvt.s32.f32 %v974_v60  ;;  %v986_v35 = vshrl.u32 %v870_v20, 16 }
  0xaf   : > { %v224_v51 = vpop.xlane.xlu0 %223 }
  0xb0   : > { %v217_v46 = vshll.u32 %v216_v32, 16  ;;  %931 = vadd.xlane.f32.xlu1 %v928_v23  ;;  %v206_v56 = vadd.s32 %v205_v48, %v203_v45  ;;  %v227_v12 = vcvt.f32.s32 %v224_v51  ;;  %v963_v23 = vcvt.s32.f32 %v961_v59 }
  0xb1   : > { %v226_v49 = vpop.xlane.xlu1 %225  ;;  %v985_v48 = vand.u32 65535, %v870_v20 }
  0xb2   : > { %v218_v52 = vadd.s32 %v217_v46, %v215_v44  ;;  %v228_v53 = vcvt.f32.s32 %v226_v49  ;;  %vm387_vm6 = vcmp.eq.s32.totalorder %v206_v56, %v3479_v1  ;;  %vm388_vm5 = vcmp.eq.s32.totalorder %v206_v56, %v3712_v31  ;;  %941 = vadd.xlane.f32.xlu0 %v939_v2 }
  0xb3   : > { %v3003_v3 = vsel %vm387_vm6, 1.0, %v3408_v62  ;;  %v3004_v5 = vsel %vm388_vm5, 1.0, %v3408_v62  ;;  %v236_v9 = vpop.xlane.xlu0 %235  ;;  %v975_v46 = vcvt.s32.f32 %v973_v27  ;;  %v988_v2 = vcvt.s32.f32 %v986_v35 }
  0xb4   : > { %vm389_vm8 = vcmp.eq.s32.totalorder %v218_v52, %v3479_v1  ;;  %vm390_vm7 = vcmp.eq.s32.totalorder %v218_v52, %v3712_v31  ;;  %943 = vadd.xlane.f32.xlu1 %v940_v37  ;;  %483 = vst [vmem:[%s3733_s27] sm:$0xff] %v3003_v3  ;;  %484 = vst [vmem:[%s3733_s27 + $0x8] sm:$0xff] %v3004_v5  ;;  %v229_v11 = vshll.u32 %v228_v53, 16  ;;  %v239_v18 = vcvt.f32.s32 %v236_v9 }
  0xb5   : > { %v3005_v63 = vsel %vm389_vm8, 1.0, %v3408_v62  ;;  %v3006_v0 = vsel %vm390_vm7, 1.0, %v3408_v62  ;;  %v238_v7 = vpop.xlane.xlu1 %237  ;;  %v998_v52 = vshrl.u32 %v871_v36, 16  ;;  %v872_v56 = vsel %vm3592_vm11, %v3687_v41, 0 }
  0xb6   : > { %485 = vst [vmem:[%s3733_s27 + $0x10] sm:$0xff] %v3005_v63  ;;  %486 = vst [vmem:[%s3733_s27 + $0x18] sm:$0xff] %v3006_v0  ;;  %v240_v13 = vcvt.f32.s32 %v238_v7  ;;  %v230_v15 = vadd.s32 %v229_v11, %v227_v12  ;;  %953 = vadd.xlane.f32.xlu0 %v951_v58  ;;  %v987_v63 = vcvt.s32.f32 %v985_v48  ;;  %v997_v0 = vand.u32 65535, %v871_v36 }
  0xb7   : > { %v248_v22 = vpop.xlane.xlu0 %247  ;;  %v1000_v7 = vcvt.s32.f32 %v998_v52  ;;  %v1010_v9 = vshrl.u32 %v872_v56, 16  ;;  %v873_v11 = vsel %vm3601_vm12, %v3687_v41, 0  ;;  %v875_v48 = vsel %vm3619_vm14, %v3687_v41, 0 }
  0xb8   : > { %v241_v16 = vshll.u32 %v240_v13, 16  ;;  %955 = vadd.xlane.f32.xlu1 %v952_v57  ;;  %vm391_vm5 = vcmp.eq.s32.totalorder %v230_v15, %v3479_v1  ;;  %vm392_vm6 = vcmp.eq.s32.totalorder %v230_v15, %v3712_v31  ;;  %v251_v38 = vcvt.f32.s32 %v248_v22 }
  0xb9   : > { %v250_v21 = vpop.xlane.xlu1 %249  ;;  %v3007_v30 = vsel %vm391_vm5, 1.0, %v3408_v62  ;;  %v3008_v32 = vsel %vm392_vm6, 1.0, %v3408_v62  ;;  %v999_v20 = vcvt.s32.f32 %v997_v0  ;;  %v1022_v27 = vshrl.u32 %v873_v11, 16 }
  0xba   : > { %v242_v28 = vadd.s32 %v241_v16, %v239_v18  ;;  %v252_v29 = vcvt.f32.s32 %v250_v21  ;;  %487 = vst [vmem:[%s3733_s27 + $0x20] sm:$0xff] %v3007_v30  ;;  %488 = vst [vmem:[%s3733_s27 + $0x28] sm:$0xff] %v3008_v32  ;;  %965 = vadd.xlane.f32.xlu0 %v963_v23  ;;  %v1009_v21 = vand.u32 65535, %v872_v56  ;;  %v876_v0 = vsel %vm3628_vm15, %v3687_v41, 0 }
  0xbb   : > { %v260_v45 = vpop.xlane.xlu0 %259 }
  0xbc   : > { %vm393_vm7 = vcmp.eq.s32.totalorder %v242_v28, %v3479_v1  ;;  %vm394_vm8 = vcmp.eq.s32.totalorder %v242_v28, %v3712_v31  ;;  %v253_v37 = vshll.u32 %v252_v29, 16  ;;  %967 = vadd.xlane.f32.xlu1 %v964_v14  ;;  %v263_v55 = vcvt.f32.s32 %v260_v45 }
  0xbd   : > { %v3009_v39 = vsel %vm393_vm7, 1.0, %v3408_v62  ;;  %v3010_v43 = vsel %vm394_vm8, 1.0, %v3408_v62  ;;  %v262_v44 = vpop.xlane.xlu1 %261  ;;  %v874_v28 = vsel %vm3610_vm13, %v3687_v41, 0  ;;  %v1024_v45 = vcvt.s32.f32 %v1022_v27 }
  0xbe   : > { %489 = vst [vmem:[%s3733_s27 + $0x30] sm:$0xff] %v3009_v39  ;;  %490 = vst [vmem:[%s3733_s27 + $0x38] sm:$0xff] %v3010_v43  ;;  %v254_v49 = vadd.s32 %v253_v37, %v251_v38  ;;  %v264_v51 = vcvt.f32.s32 %v262_v44  ;;  %977 = vadd.xlane.f32.xlu0 %v975_v46  ;;  %v1011_v38 = vcvt.s32.f32 %v1009_v21  ;;  %v1021_v39 = vand.u32 65535, %v873_v11 }
  0xbf   : > { %v272_v60 = vpop.xlane.xlu0 %271  ;;  %v1034_v46 = vshrl.u32 %v874_v28, 16 }
  0xc0   : > { %vm395_vm5 = vcmp.eq.s32.totalorder %v254_v49, %v3479_v1  ;;  %vm396_vm6 = vcmp.eq.s32.totalorder %v254_v49, %v3712_v31  ;;  %v265_v53 = vshll.u32 %v264_v51, 16  ;;  %979 = vadd.xlane.f32.xlu1 %v976_v24  ;;  %v275_v13 = vcvt.f32.s32 %v272_v60 }
  0xc1   : > { %v3011_v57 = vsel %vm395_vm5, 1.0, %v3408_v62  ;;  %v3012_v58 = vsel %vm396_vm6, 1.0, %v3408_v62  ;;  %v274_v59 = vpop.xlane.xlu1 %273  ;;  %v1012_v24 = vcvt.s32.f32 %v1010_v9  ;;  %v1036_v60 = vcvt.s32.f32 %v1034_v46 }
  0xc2   : > { %491 = vst [vmem:[%s3733_s27 + $0x40] sm:$0xff] %v3011_v57  ;;  %492 = vst [vmem:[%s3733_s27 + $0x48] sm:$0xff] %v3012_v58  ;;  %v266_v3 = vadd.s32 %v265_v53, %v263_v55  ;;  %v276_v5 = vcvt.f32.s32 %v274_v59  ;;  %989 = vadd.xlane.f32.xlu0 %v987_v63  ;;  %v1023_v55 = vcvt.s32.f32 %v1021_v39  ;;  %v1033_v57 = vand.u32 65535, %v874_v28 }
  0xc3   : > { %v284_v18 = vpop.xlane.xlu0 %283  ;;  %v1046_v63 = vshrl.u32 %v875_v48, 16 }
  0xc4   : > { %vm397_vm7 = vcmp.eq.s32.totalorder %v266_v3, %v3479_v1  ;;  %vm398_vm8 = vcmp.eq.s32.totalorder %v266_v3, %v3712_v31  ;;  %v277_v12 = vshll.u32 %v276_v5, 16  ;;  %991 = vadd.xlane.f32.xlu1 %v988_v2  ;;  %v287_v30 = vcvt.f32.s32 %v284_v18 }
  0xc5   : > { %v3013_v14 = vsel %vm397_vm7, 1.0, %v3408_v62  ;;  %v3014_v15 = vsel %vm398_vm8, 1.0, %v3408_v62  ;;  %v286_v16 = vpop.xlane.xlu1 %285  ;;  %v1048_v18 = vcvt.s32.f32 %v1046_v63 }
  0xc6   : > { %493 = vst [vmem:[%s3733_s27 + $0x50] sm:$0xff] %v3013_v14  ;;  %494 = vst [vmem:[%s3733_s27 + $0x58] sm:$0xff] %v3014_v15  ;;  %v278_v22 = vadd.s32 %v277_v12, %v275_v13  ;;  %v288_v23 = vcvt.f32.s32 %v286_v16  ;;  %1001 = vadd.xlane.f32.xlu0 %v999_v20  ;;  %v1035_v14 = vcvt.s32.f32 %v1033_v57  ;;  %v1045_v15 = vand.u32 65535, %v875_v48 }
  0xc7   : > { %v296_v37 = vpop.xlane.xlu0 %295  ;;  %v1058_v20 = vshrl.u32 %v876_v0, 16 }
  0xc8   : > { %vm399_vm5 = vcmp.eq.s32.totalorder %v278_v22, %v3479_v1  ;;  %vm400_vm6 = vcmp.eq.s32.totalorder %v278_v22, %v3712_v31  ;;  %v289_v29 = vshll.u32 %v288_v23, 16  ;;  %1003 = vadd.xlane.f32.xlu1 %v1000_v7  ;;  %v299_v51 = vcvt.f32.s32 %v296_v37  ;;  %v3800_v7 = vld [vmem:[%s3494_s24 + $0x3] ss:$0 sm:$0xff] }
  0xc9   : > { %v3015_v32 = vsel %vm399_vm5, 1.0, %v3408_v62  ;;  %v3016_v35 = vsel %vm400_vm6, 1.0, %v3408_v62  ;;  %v298_v36 = vpop.xlane.xlu1 %297  ;;  %v1202_v21 = vsel %vm3486_vm0, %v3800_v7, 0  ;;  %v1060_v37 = vcvt.s32.f32 %v1058_v20 }
  0xca   : > { %495 = vst [vmem:[%s3733_s27 + $0x60] sm:$0xff] %v3015_v32  ;;  %496 = vst [vmem:[%s3733_s27 + $0x68] sm:$0xff] %v3016_v35  ;;  %v290_v43 = vadd.s32 %v289_v29, %v287_v30  ;;  %v300_v44 = vcvt.f32.s32 %v298_v36  ;;  %1013 = vadd.xlane.f32.xlu0 %v1011_v38  ;;  %v1047_v30 = vcvt.s32.f32 %v1045_v15  ;;  %v1057_v32 = vand.u32 65535, %v876_v0 }
  0xcb   : > { %v308_v53 = vpop.xlane.xlu0 %307  ;;  %v1219_v38 = vshrl.u32 %v1202_v21, 16  ;;  %v1203_v39 = vsel %vm3497_vm1, %v3800_v7, 0  ;;  %v1204_v57 = vsel %vm3505_vm2, %v3800_v7, 0  ;;  %v1205_v15 = vsel %vm3520_vm3, %v3800_v7, 0 }
  0xcc   : > { %vm401_vm7 = vcmp.eq.s32.totalorder %v290_v43, %v3479_v1  ;;  %vm402_vm8 = vcmp.eq.s32.totalorder %v290_v43, %v3712_v31  ;;  %v301_v49 = vshll.u32 %v300_v44, 16  ;;  %1015 = vadd.xlane.f32.xlu1 %v1012_v24  ;;  %v311_v5 = vcvt.f32.s32 %v308_v53 }
  0xcd   : > { %v3017_v2 = vsel %vm401_vm7, 1.0, %v3408_v62  ;;  %v3018_v52 = vsel %vm402_vm8, 1.0, %v3408_v62  ;;  %v310_v56 = vpop.xlane.xlu1 %309  ;;  %v1221_v53 = vcvt.s32.f32 %v1219_v38 }
  0xce   : > { %497 = vst [vmem:[%s3733_s27 + $0x70] sm:$0xff] %v3017_v2  ;;  %498 = vst [vmem:[%s3733_s27 + $0x78] sm:$0xff] %v3018_v52  ;;  %v302_v58 = vadd.s32 %v301_v49, %v299_v51  ;;  %v312_v59 = vcvt.f32.s32 %v310_v56  ;;  %1025 = vadd.xlane.f32.xlu0 %v1023_v55  ;;  %v1059_v51 = vcvt.s32.f32 %v1057_v32  ;;  %v1218_v2 = vand.u32 65535, %v1202_v21 }
  0xcf   : > { %v320_v13 = vpop.xlane.xlu0 %319  ;;  %v1231_v55 = vshrl.u32 %v1203_v39, 16  ;;  %v1206_v32 = vsel %vm3529_vm4, %v3800_v7, 0 }
  0xd0   : > { %vm403_vm5 = vcmp.eq.s32.totalorder %v302_v58, %v3479_v1  ;;  %vm404_vm6 = vcmp.eq.s32.totalorder %v302_v58, %v3712_v31  ;;  %v313_v3 = vshll.u32 %v312_v59, 16  ;;  %1027 = vadd.xlane.f32.xlu1 %v1024_v45  ;;  %v323_v23 = vcvt.f32.s32 %v320_v13 }
  0xd1   : > { %v3019_v9 = vsel %vm403_vm5, 1.0, %v3408_v62  ;;  %v3020_v11 = vsel %vm404_vm6, 1.0, %v3408_v62  ;;  %v322_v12 = vpop.xlane.xlu1 %321  ;;  %v1233_v13 = vcvt.s32.f32 %v1231_v55 }
  0xd2   : > { %499 = vst [vmem:[%s3733_s27 + $0x80] sm:$0xff] %v3019_v9  ;;  %500 = vst [vmem:[%s3733_s27 + $0x88] sm:$0xff] %v3020_v11  ;;  %v314_v41 = vadd.s32 %v313_v3, %v311_v5  ;;  %v324_v16 = vcvt.f32.s32 %v322_v12  ;;  %1037 = vadd.xlane.f32.xlu0 %v1035_v14  ;;  %v1220_v5 = vcvt.s32.f32 %v1218_v2  ;;  %v1230_v9 = vand.u32 65535, %v1203_v39 }
  0xd3   : > { %v332_v29 = vpop.xlane.xlu0 %331  ;;  %v1243_v14 = vshrl.u32 %v1204_v57, 16 }
  0xd4   : > { %vm405_vm7 = vcmp.eq.s32.totalorder %v314_v41, %v3479_v1  ;;  %vm406_vm8 = vcmp.eq.s32.totalorder %v314_v41, %v3712_v31  ;;  %v325_v22 = vshll.u32 %v324_v16, 16  ;;  %1039 = vadd.xlane.f32.xlu1 %v1036_v60  ;;  %v335_v44 = vcvt.f32.s32 %v332_v29 }
  0xd5   : > { %v3021_v24 = vsel %vm405_vm7, 1.0, %v3408_v62  ;;  %v3022_v27 = vsel %vm406_vm8, 1.0, %v3408_v62  ;;  %v334_v28 = vpop.xlane.xlu1 %333  ;;  %v1245_v29 = vcvt.s32.f32 %v1243_v14 }
  0xd6   : > { %501 = vst [vmem:[%s3733_s27 + $0x90] sm:$0xff] %v3021_v24  ;;  %502 = vst [vmem:[%s3733_s27 + $0x98] sm:$0xff] %v3022_v27  ;;  %v326_v35 = vadd.s32 %v325_v22, %v323_v23  ;;  %v336_v36 = vcvt.f32.s32 %v334_v28  ;;  %1049 = vadd.xlane.f32.xlu0 %v1047_v30  ;;  %v1232_v23 = vcvt.s32.f32 %v1230_v9  ;;  %v1242_v24 = vand.u32 65535, %v1204_v57 }
  0xd7   : > { %v344_v49 = vpop.xlane.xlu0 %343  ;;  %v1255_v30 = vshrl.u32 %v1205_v15, 16 }
  0xd8   : > { %vm407_vm5 = vcmp.eq.s32.totalorder %v326_v35, %v3479_v1  ;;  %vm408_vm6 = vcmp.eq.s32.totalorder %v326_v35, %v3712_v31  ;;  %v337_v43 = vshll.u32 %v336_v36, 16  ;;  %1051 = vadd.xlane.f32.xlu1 %v1048_v18  ;;  %v347_v59 = vcvt.f32.s32 %v344_v49 }
  0xd9   : > { %v3023_v45 = vsel %vm407_vm5, 1.0, %v3408_v62  ;;  %v3024_v46 = vsel %vm408_vm6, 1.0, %v3408_v62  ;;  %v346_v48 = vpop.xlane.xlu1 %345  ;;  %v1257_v49 = vcvt.s32.f32 %v1255_v30 }
  0xda   : > { %503 = vst [vmem:[%s3733_s27 + $0xa0] sm:$0xff] %v3023_v45  ;;  %504 = vst [vmem:[%s3733_s27 + $0xa8] sm:$0xff] %v3024_v46  ;;  %v338_v52 = vadd.s32 %v337_v43, %v335_v44  ;;  %v348_v56 = vcvt.f32.s32 %v346_v48  ;;  %1061 = vadd.xlane.f32.xlu0 %v1059_v51  ;;  %v1244_v44 = vcvt.s32.f32 %v1242_v24  ;;  %v1254_v45 = vand.u32 65535, %v1205_v15 }
  0xdb   : > { %v356_v3 = vpop.xlane.xlu0 %355  ;;  %v1267_v51 = vshrl.u32 %v1206_v32, 16 }
  0xdc   : > { %vm409_vm7 = vcmp.eq.s32.totalorder %v338_v52, %v3479_v1  ;;  %vm410_vm8 = vcmp.eq.s32.totalorder %v338_v52, %v3712_v31  ;;  %v349_v58 = vshll.u32 %v348_v56, 16  ;;  %1063 = vadd.xlane.f32.xlu1 %v1060_v37  ;;  %v359_v16 = vcvt.f32.s32 %v356_v3 }
  0xdd   : > { %v3025_v60 = vsel %vm409_vm7, 1.0, %v3408_v62  ;;  %v3026_v63 = vsel %vm410_vm8, 1.0, %v3408_v62  ;;  %v358_v0 = vpop.xlane.xlu1 %357  ;;  %v1269_v3 = vcvt.s32.f32 %v1267_v51 }
  0xde   : > { %505 = vst [vmem:[%s3733_s27 + $0xb0] sm:$0xff] %v3025_v60  ;;  %506 = vst [vmem:[%s3733_s27 + $0xb8] sm:$0xff] %v3026_v63  ;;  %v350_v11 = vadd.s32 %v349_v58, %v347_v59  ;;  %v360_v12 = vcvt.f32.s32 %v358_v0  ;;  %1222 = vadd.xlane.f32.xlu0 %v1220_v5  ;;  %v1256_v59 = vcvt.s32.f32 %v1254_v45  ;;  %v1266_v60 = vand.u32 65535, %v1206_v32 }
  0xdf   : > { %v368_v22 = vpop.xlane.xlu0 %367 }
  0xe0   : > { %vm411_vm5 = vcmp.eq.s32.totalorder %v350_v11, %v3479_v1  ;;  %vm412_vm6 = vcmp.eq.s32.totalorder %v350_v11, %v3712_v31  ;;  %v361_v41 = vshll.u32 %v360_v12, 16  ;;  %1224 = vadd.xlane.f32.xlu1 %v1221_v53  ;;  %v371_v36 = vcvt.f32.s32 %v368_v22 }
  0xe1   : > { %v3027_v18 = vsel %vm411_vm5, 1.0, %v3408_v62  ;;  %v3028_v20 = vsel %vm412_vm6, 1.0, %v3408_v62  ;;  %v370_v21 = vpop.xlane.xlu1 %369  ;;  %vm4985_vm5 = vnez %v4964_v33 }
  0xe2   : > { %507 = vst [vmem:[%s3733_s27 + $0xc0] sm:$0xff] %v3027_v18  ;;  %508 = vst [vmem:[%s3733_s27 + $0xc8] sm:$0xff] %v3028_v20  ;;  %v362_v27 = vadd.s32 %v361_v41, %v359_v16  ;;  %v372_v28 = vcvt.f32.s32 %v370_v21  ;;  %1234 = vadd.xlane.f32.xlu0 %v1232_v23  ;;  %v1207_v2 = vsel %vm4985_vm5, %v3800_v7, 0  ;;  %v1268_v16 = vcvt.s32.f32 %v1266_v60 }
  0xe3   : > { %v380_v43 = vpop.xlane.xlu0 %379  ;;  %v1279_v5 = vshrl.u32 %v1207_v2, 16  ;;  %v1278_v18 = vand.u32 65535, %v1207_v2  ;;  %v1211_v60 = vsel %vm3574_vm9, %v3800_v7, 0 }
  0xe4   : > { %vm413_vm7 = vcmp.eq.s32.totalorder %v362_v27, %v3479_v1  ;;  %vm414_vm8 = vcmp.eq.s32.totalorder %v362_v27, %v3712_v31  ;;  %v373_v35 = vshll.u32 %v372_v28, 16  ;;  %1236 = vadd.xlane.f32.xlu1 %v1233_v13  ;;  %v383_v56 = vcvt.f32.s32 %v380_v43 }
  0xe5   : > { %v3029_v37 = vsel %vm413_vm7, 1.0, %v3408_v62  ;;  %v3030_v38 = vsel %vm414_vm8, 1.0, %v3408_v62  ;;  %v382_v39 = vpop.xlane.xlu1 %381  ;;  %vm4986_vm8 = vnez %v4966_v40  ;;  %v1281_v22 = vcvt.s32.f32 %v1279_v5 }
  0xe6   : > { %509 = vst [vmem:[%s3733_s27 + $0xd0] sm:$0xff] %v3029_v37  ;;  %510 = vst [vmem:[%s3733_s27 + $0xd8] sm:$0xff] %v3030_v38  ;;  %v374_v46 = vadd.s32 %v373_v35, %v371_v36  ;;  %v384_v48 = vcvt.f32.s32 %v382_v39  ;;  %1246 = vadd.xlane.f32.xlu0 %v1244_v44  ;;  %v1208_v9 = vsel %vm4986_vm8, %v3800_v7, 0  ;;  %vm4987_vm8 = vnez %v4968_v47 }
  0xe7   : > { %v541_v58 = vpop.xlane.xlu0 %540  ;;  %v1291_v23 = vshrl.u32 %v1208_v9, 16  ;;  %v1209_v24 = vsel %vm4987_vm8, %v3800_v7, 0  ;;  %v1280_v36 = vcvt.s32.f32 %v1278_v18  ;;  %v1290_v37 = vand.u32 65535, %v1208_v9 }
  0xe8   : > { %vm415_vm6 = vcmp.eq.s32.totalorder %v374_v46, %v3479_v1  ;;  %vm416_vm7 = vcmp.eq.s32.totalorder %v374_v46, %v3712_v31  ;;  %v385_v52 = vshll.u32 %v384_v48, 16  ;;  %1248 = vadd.xlane.f32.xlu1 %v1245_v29  ;;  %v544_v12 = vcvt.f32.s32 %v541_v58 }
  0xe9   : > { %v3031_v53 = vsel %vm415_vm6, 1.0, %v3408_v62  ;;  %v3032_v55 = vsel %vm416_vm7, 1.0, %v3408_v62  ;;  %v543_v57 = vpop.xlane.xlu1 %542  ;;  %v1293_v43 = vcvt.s32.f32 %v1291_v23  ;;  %v1303_v44 = vshrl.u32 %v1209_v24, 16 }
  0xea   : > { %511 = vst [vmem:[%s3733_s27 + $0xe0] sm:$0xff] %v3031_v53  ;;  %512 = vst [vmem:[%s3733_s27 + $0xe8] sm:$0xff] %v3032_v55  ;;  %v386_v63 = vadd.s32 %v385_v52, %v383_v56  ;;  %v545_v0 = vcvt.f32.s32 %v543_v57  ;;  %1258 = vadd.xlane.f32.xlu0 %v1256_v59  ;;  %vm4988_vm8 = vnez %v4970_v54  ;;  %v1292_v56 = vcvt.s32.f32 %v1290_v37 }
  0xeb   : > { %v553_v41 = vpop.xlane.xlu0 %552  ;;  %v1210_v45 = vsel %vm4988_vm8, %v3800_v7, 0  ;;  %v1302_v53 = vand.u32 65535, %v1209_v24  ;;  %v1305_v58 = vcvt.s32.f32 %v1303_v44  ;;  %v1212_v18 = vsel %vm3583_vm10, %v3800_v7, 0 }
  0xec   : > { %vm417_vm6 = vcmp.eq.s32.totalorder %v386_v63, %v3479_v1  ;;  %vm418_vm7 = vcmp.eq.s32.totalorder %v386_v63, %v3712_v31  ;;  %v546_v11 = vshll.u32 %v545_v0, 16  ;;  %1260 = vadd.xlane.f32.xlu1 %v1257_v49  ;;  %v556_v28 = vcvt.f32.s32 %v553_v41 }
  0xed   : > { %v3033_v13 = vsel %vm417_vm6, 1.0, %v3408_v62  ;;  %v3034_v14 = vsel %vm418_vm7, 1.0, %v3408_v62  ;;  %v555_v15 = vpop.xlane.xlu1 %554  ;;  %v1315_v59 = vshrl.u32 %v1210_v45, 16  ;;  %v1213_v37 = vsel %vm3592_vm11, %v3800_v7, 0 }
  0xee   : > { %513 = vst [vmem:[%s3733_s27 + $0xf0] sm:$0xff] %v3033_v13  ;;  %514 = vst [vmem:[%s3733_s27 + $0xf8] sm:$0xff] %v3034_v14  ;;  %v547_v20 = vadd.s32 %v546_v11, %v544_v12  ;;  %v557_v21 = vcvt.f32.s32 %v555_v15  ;;  %1270 = vadd.xlane.f32.xlu0 %v1268_v16  ;;  %v1304_v12 = vcvt.s32.f32 %v1302_v53  ;;  %v1314_v13 = vand.u32 65535, %v1210_v45 }
  0xef   : > { %v565_v35 = vpop.xlane.xlu0 %564  ;;  %v1317_v41 = vcvt.s32.f32 %v1315_v59  ;;  %v1327_v16 = vshrl.u32 %v1211_v60, 16  ;;  %v1214_v53 = vsel %vm3601_vm12, %v3800_v7, 0 }
  0xf0   : > { %vm728_vm6 = vcmp.eq.s32.totalorder %v547_v20, %v3479_v1  ;;  %vm729_vm7 = vcmp.eq.s32.totalorder %v547_v20, %v3712_v31  ;;  %v558_v27 = vshll.u32 %v557_v21, 16  ;;  %1272 = vadd.xlane.f32.xlu1 %v1269_v3  ;;  %v568_v48 = vcvt.f32.s32 %v565_v35 }
  0xf1   : > { %v3036_v29 = vsel %vm728_vm6, 1.0, %v3408_v62  ;;  %v3037_v30 = vsel %vm729_vm7, 1.0, %v3408_v62  ;;  %v567_v32 = vpop.xlane.xlu1 %566  ;;  %v1329_v35 = vcvt.s32.f32 %v1327_v16 }
  0xf2   : > { %824 = vst [vmem:[%s3733_s27 + $0x100] sm:$0xff] %v3036_v29  ;;  %825 = vst [vmem:[%s3733_s27 + $0x108] sm:$0xff] %v3037_v30  ;;  %v559_v38 = vadd.s32 %v558_v27, %v556_v28  ;;  %v569_v39 = vcvt.f32.s32 %v567_v32  ;;  %1282 = vadd.xlane.f32.xlu0 %v1280_v36  ;;  %v1316_v28 = vcvt.s32.f32 %v1314_v13  ;;  %v1326_v29 = vand.u32 65535, %v1211_v60 }
  0xf3   : > { %v577_v52 = vpop.xlane.xlu0 %576  ;;  %v1339_v36 = vshrl.u32 %v1212_v18, 16  ;;  %v1215_v13 = vsel %vm3610_vm13, %v3800_v7, 0 }
  0xf4   : > { %vm730_vm6 = vcmp.eq.s32.totalorder %v559_v38, %v3479_v1  ;;  %vm731_vm7 = vcmp.eq.s32.totalorder %v559_v38, %v3712_v31  ;;  %v570_v46 = vshll.u32 %v569_v39, 16  ;;  %1284 = vadd.xlane.f32.xlu1 %v1281_v22  ;;  %v580_v0 = vcvt.f32.s32 %v577_v52 }
  0xf5   : > { %v3038_v49 = vsel %vm730_vm6, 1.0, %v3408_v62  ;;  %v3039_v51 = vsel %vm731_vm7, 1.0, %v3408_v62  ;;  %v579_v2 = vpop.xlane.xlu1 %578  ;;  %v1341_v52 = vcvt.s32.f32 %v1339_v36 }
  0xf6   : > { %826 = vst [vmem:[%s3733_s27 + $0x110] sm:$0xff] %v3038_v49  ;;  %827 = vst [vmem:[%s3733_s27 + $0x118] sm:$0xff] %v3039_v51  ;;  %v571_v55 = vadd.s32 %v570_v46, %v568_v48  ;;  %v581_v57 = vcvt.f32.s32 %v579_v2  ;;  %1294 = vadd.xlane.f32.xlu0 %v1292_v56  ;;  %v1328_v48 = vcvt.s32.f32 %v1326_v29  ;;  %v1338_v49 = vand.u32 65535, %v1212_v18 }
  0xf7   : > { %v589_v11 = vpop.xlane.xlu0 %588  ;;  %v1351_v56 = vshrl.u32 %v1213_v37, 16  ;;  %v1216_v29 = vsel %vm3619_vm14, %v3800_v7, 0 }
  0xf8   : > { %vm732_vm6 = vcmp.eq.s32.totalorder %v571_v55, %v3479_v1  ;;  %vm733_vm7 = vcmp.eq.s32.totalorder %v571_v55, %v3712_v31  ;;  %v582_v63 = vshll.u32 %v581_v57, 16  ;;  %1296 = vadd.xlane.f32.xlu1 %v1293_v43  ;;  %v592_v21 = vcvt.f32.s32 %v589_v11 }
  0xf9   : > { %v3040_v3 = vsel %vm732_vm6, 1.0, %v3408_v62  ;;  %v3041_v5 = vsel %vm733_vm7, 1.0, %v3408_v62  ;;  %v591_v9 = vpop.xlane.xlu1 %590  ;;  %v1353_v11 = vcvt.s32.f32 %v1351_v56 }
  0xfa   : > { %828 = vst [vmem:[%s3733_s27 + $0x120] sm:$0xff] %v3040_v3  ;;  %829 = vst [vmem:[%s3733_s27 + $0x128] sm:$0xff] %v3041_v5  ;;  %v583_v14 = vadd.s32 %v582_v63, %v580_v0  ;;  %v593_v15 = vcvt.f32.s32 %v591_v9  ;;  %1306 = vadd.xlane.f32.xlu0 %v1304_v12  ;;  %v1340_v0 = vcvt.s32.f32 %v1338_v49  ;;  %v1350_v3 = vand.u32 65535, %v1213_v37 }
  0xfb   : > { %v601_v27 = vpop.xlane.xlu0 %600  ;;  %v1363_v12 = vshrl.u32 %v1214_v53, 16  ;;  %v1217_v49 = vsel %vm3628_vm15, %v3800_v7, 0 }
  0xfc   : > { %vm734_vm6 = vcmp.eq.s32.totalorder %v583_v14, %v3479_v1  ;;  %vm735_vm7 = vcmp.eq.s32.totalorder %v583_v14, %v3712_v31  ;;  %v594_v20 = vshll.u32 %v593_v15, 16  ;;  %1308 = vadd.xlane.f32.xlu1 %v1305_v58  ;;  %v604_v39 = vcvt.f32.s32 %v601_v27 }
  0xfd   : > { %v3042_v22 = vsel %vm734_vm6, 1.0, %v3408_v62  ;;  %v3043_v23 = vsel %vm735_vm7, 1.0, %v3408_v62  ;;  %v603_v24 = vpop.xlane.xlu1 %602  ;;  %v1365_v27 = vcvt.s32.f32 %v1363_v12 }
  0xfe   : > { %830 = vst [vmem:[%s3733_s27 + $0x130] sm:$0xff] %v3042_v22  ;;  %831 = vst [vmem:[%s3733_s27 + $0x138] sm:$0xff] %v3043_v23  ;;  %v595_v30 = vadd.s32 %v594_v20, %v592_v21  ;;  %v605_v32 = vcvt.f32.s32 %v603_v24  ;;  %1318 = vadd.xlane.f32.xlu0 %v1316_v28  ;;  %v1352_v21 = vcvt.s32.f32 %v1350_v3  ;;  %v1362_v22 = vand.u32 65535, %v1214_v53 }
  0xff   : > { %v613_v46 = vpop.xlane.xlu0 %612  ;;  %v1375_v28 = vshrl.u32 %v1215_v13, 16 }
 0x100   : > { %vm736_vm6 = vcmp.eq.s32.totalorder %v595_v30, %v3479_v1  ;;  %vm737_vm7 = vcmp.eq.s32.totalorder %v595_v30, %v3712_v31  ;;  %v606_v38 = vshll.u32 %v605_v32, 16  ;;  %1320 = vadd.xlane.f32.xlu1 %v1317_v41  ;;  %v616_v57 = vcvt.f32.s32 %v613_v46 }
 0x101   : > { %v3044_v43 = vsel %vm736_vm6, 1.0, %v3408_v62  ;;  %v3045_v44 = vsel %vm737_vm7, 1.0, %v3408_v62  ;;  %v615_v45 = vpop.xlane.xlu1 %614  ;;  %v1377_v46 = vcvt.s32.f32 %v1375_v28 }
 0x102   : > { %832 = vst [vmem:[%s3733_s27 + $0x140] sm:$0xff] %v3044_v43  ;;  %833 = vst [vmem:[%s3733_s27 + $0x148] sm:$0xff] %v3045_v44  ;;  %v607_v51 = vadd.s32 %v606_v38, %v604_v39  ;;  %v617_v2 = vcvt.f32.s32 %v615_v45  ;;  %1330 = vadd.xlane.f32.xlu0 %v1328_v48  ;;  %v1364_v39 = vcvt.s32.f32 %v1362_v22  ;;  %v1374_v43 = vand.u32 65535, %v1215_v13 }
 0x103   : > { %v625_v63 = vpop.xlane.xlu0 %624  ;;  %v1387_v48 = vshrl.u32 %v1216_v29, 16 }
 0x104   : > { %vm738_vm6 = vcmp.eq.s32.totalorder %v607_v51, %v3479_v1  ;;  %vm739_vm7 = vcmp.eq.s32.totalorder %v607_v51, %v3712_v31  ;;  %v618_v55 = vshll.u32 %v617_v2, 16  ;;  %1332 = vadd.xlane.f32.xlu1 %v1329_v35  ;;  %v628_v15 = vcvt.f32.s32 %v625_v63 }
 0x105   : > { %v3046_v58 = vsel %vm738_vm6, 1.0, %v3408_v62  ;;  %v3047_v59 = vsel %vm739_vm7, 1.0, %v3408_v62  ;;  %v627_v60 = vpop.xlane.xlu1 %626  ;;  %v1389_v63 = vcvt.s32.f32 %v1387_v48 }
 0x106   : > { %834 = vst [vmem:[%s3733_s27 + $0x150] sm:$0xff] %v3046_v58  ;;  %835 = vst [vmem:[%s3733_s27 + $0x158] sm:$0xff] %v3047_v59  ;;  %v619_v5 = vadd.s32 %v618_v55, %v616_v57  ;;  %v629_v9 = vcvt.f32.s32 %v627_v60  ;;  %1342 = vadd.xlane.f32.xlu0 %v1340_v0  ;;  %v1376_v58 = vcvt.s32.f32 %v1374_v43  ;;  %v1386_v59 = vand.u32 65535, %v1216_v29 }
 0x107   : > { %v637_v20 = vpop.xlane.xlu0 %636  ;;  %v1399_v0 = vshrl.u32 %v1217_v49, 16 }
 0x108   : > { %vm740_vm6 = vcmp.eq.s32.totalorder %v619_v5, %v3479_v1  ;;  %vm741_vm7 = vcmp.eq.s32.totalorder %v619_v5, %v3712_v31  ;;  %v630_v14 = vshll.u32 %v629_v9, 16  ;;  %1344 = vadd.xlane.f32.xlu1 %v1341_v52  ;;  %v640_v32 = vcvt.f32.s32 %v637_v20  ;;  %v3947_v52 = vld [vmem:[%s3494_s24 + $0x4] ss:$0 sm:$0xff] }
 0x109   : > { %v3048_v41 = vsel %vm740_vm6, 1.0, %v3408_v62  ;;  %v3049_v16 = vsel %vm741_vm7, 1.0, %v3408_v62  ;;  %v639_v18 = vpop.xlane.xlu1 %638  ;;  %v1543_v3 = vsel %vm3486_vm0, %v3947_v52, 0  ;;  %v1401_v20 = vcvt.s32.f32 %v1399_v0 }
 0x10a   : > { %836 = vst [vmem:[%s3733_s27 + $0x160] sm:$0xff] %v3048_v41  ;;  %837 = vst [vmem:[%s3733_s27 + $0x168] sm:$0xff] %v3049_v16  ;;  %v631_v23 = vadd.s32 %v630_v14, %v628_v15  ;;  %v641_v24 = vcvt.f32.s32 %v639_v18  ;;  %1354 = vadd.xlane.f32.xlu0 %v1352_v21  ;;  %v1388_v15 = vcvt.s32.f32 %v1386_v59  ;;  %v1398_v41 = vand.u32 65535, %v1217_v49 }
 0x10b   : > { %v649_v38 = vpop.xlane.xlu0 %648  ;;  %v1560_v21 = vshrl.u32 %v1543_v3, 16  ;;  %v1544_v22 = vsel %vm3497_vm1, %v3947_v52, 0  ;;  %v1545_v43 = vsel %vm3505_vm2, %v3947_v52, 0  ;;  %v1546_v59 = vsel %vm3520_vm3, %v3947_v52, 0 }
 0x10c   : > { %vm742_vm6 = vcmp.eq.s32.totalorder %v631_v23, %v3479_v1  ;;  %vm743_vm7 = vcmp.eq.s32.totalorder %v631_v23, %v3712_v31  ;;  %v642_v30 = vshll.u32 %v641_v24, 16  ;;  %1356 = vadd.xlane.f32.xlu1 %v1353_v11  ;;  %v652_v2 = vcvt.f32.s32 %v649_v38 }
 0x10d   : > { %v3050_v35 = vsel %vm742_vm6, 1.0, %v3408_v62  ;;  %v3051_v36 = vsel %vm743_vm7, 1.0, %v3408_v62  ;;  %v651_v37 = vpop.xlane.xlu1 %650  ;;  %v1562_v38 = vcvt.s32.f32 %v1560_v21 }
 0x10e   : > { %838 = vst [vmem:[%s3733_s27 + $0x170] sm:$0xff] %v3050_v35  ;;  %839 = vst [vmem:[%s3733_s27 + $0x178] sm:$0xff] %v3051_v36  ;;  %v643_v44 = vadd.s32 %v642_v30, %v640_v32  ;;  %v653_v45 = vcvt.f32.s32 %v651_v37  ;;  %1366 = vadd.xlane.f32.xlu0 %v1364_v39  ;;  %v1400_v32 = vcvt.s32.f32 %v1398_v41  ;;  %v1559_v35 = vand.u32 65535, %v1543_v3 }
 0x10f   : > { %v661_v57 = vpop.xlane.xlu0 %660  ;;  %v1572_v39 = vshrl.u32 %v1544_v22, 16  ;;  %v1547_v41 = vsel %vm3529_vm4, %v3947_v52, 0 }
 0x110   : > { %vm744_vm6 = vcmp.eq.s32.totalorder %v643_v44, %v3479_v1  ;;  %vm745_vm7 = vcmp.eq.s32.totalorder %v643_v44, %v3712_v31  ;;  %v654_v51 = vshll.u32 %v653_v45, 16  ;;  %1368 = vadd.xlane.f32.xlu1 %v1365_v27  ;;  %v664_v9 = vcvt.f32.s32 %v661_v57 }
 0x111   : > { %v3052_v56 = vsel %vm744_vm6, 1.0, %v3408_v62  ;;  %v3053_v53 = vsel %vm745_vm7, 1.0, %v3408_v62  ;;  %v663_v55 = vpop.xlane.xlu1 %662  ;;  %v1574_v57 = vcvt.s32.f32 %v1572_v39 }
 0x112   : > { %840 = vst [vmem:[%s3733_s27 + $0x180] sm:$0xff] %v3052_v56  ;;  %841 = vst [vmem:[%s3733_s27 + $0x188] sm:$0xff] %v3053_v53  ;;  %v655_v7 = vadd.s32 %v654_v51, %v652_v2  ;;  %v665_v60 = vcvt.f32.s32 %v663_v55  ;;  %1378 = vadd.xlane.f32.xlu0 %v1376_v58  ;;  %v1561_v2 = vcvt.s32.f32 %v1559_v35  ;;  %v1571_v56 = vand.u32 65535, %v1544_v22 }
 0x113   : > { %v673_v14 = vpop.xlane.xlu0 %672  ;;  %v1584_v58 = vshrl.u32 %v1545_v43, 16  ;;  %v1548_v35 = vsel %vm4985_vm5, %v3947_v52, 0  ;;  %vm4989_vm5 = vnez %v4966_v40 }
 0x114   : > { %vm746_vm6 = vcmp.eq.s32.totalorder %v655_v7, %v3479_v1  ;;  %vm747_vm7 = vcmp.eq.s32.totalorder %v655_v7, %v3712_v31  ;;  %v666_v5 = vshll.u32 %v665_v60, 16  ;;  %1380 = vadd.xlane.f32.xlu1 %v1377_v46  ;;  %v676_v24 = vcvt.f32.s32 %v673_v14 }
 0x115   : > { %v3054_v11 = vsel %vm746_vm6, 1.0, %v3408_v62  ;;  %v3055_v12 = vsel %vm747_vm7, 1.0, %v3408_v62  ;;  %v675_v13 = vpop.xlane.xlu1 %674  ;;  %v1586_v14 = vcvt.s32.f32 %v1584_v58 }
 0x116   : > { %842 = vst [vmem:[%s3733_s27 + $0x190] sm:$0xff] %v3054_v11  ;;  %843 = vst [vmem:[%s3733_s27 + $0x198] sm:$0xff] %v3055_v12  ;;  %v667_v16 = vadd.s32 %v666_v5, %v664_v9  ;;  %v677_v18 = vcvt.f32.s32 %v675_v13  ;;  %1390 = vadd.xlane.f32.xlu0 %v1388_v15  ;;  %v1573_v9 = vcvt.s32.f32 %v1571_v56  ;;  %v1583_v11 = vand.u32 65535, %v1545_v43 }
 0x117   : > { %v685_v30 = vpop.xlane.xlu0 %684  ;;  %v1596_v15 = vshrl.u32 %v1546_v59, 16  ;;  %v1549_v56 = vsel %vm4989_vm5, %v3947_v52, 0  ;;  %vm4990_vm5 = vnez %v4968_v47 }
 0x118   : > { %vm748_vm6 = vcmp.eq.s32.totalorder %v667_v16, %v3479_v1  ;;  %vm749_vm7 = vcmp.eq.s32.totalorder %v667_v16, %v3712_v31  ;;  %v678_v23 = vshll.u32 %v677_v18, 16  ;;  %1392 = vadd.xlane.f32.xlu1 %v1389_v63  ;;  %v688_v45 = vcvt.f32.s32 %v685_v30 }
 0x119   : > { %v3056_v27 = vsel %vm748_vm6, 1.0, %v3408_v62  ;;  %v3057_v28 = vsel %vm749_vm7, 1.0, %v3408_v62  ;;  %v687_v29 = vpop.xlane.xlu1 %686  ;;  %v1598_v30 = vcvt.s32.f32 %v1596_v15 }
 0x11a   : > { %844 = vst [vmem:[%s3733_s27 + $0x1a0] sm:$0xff] %v3056_v27  ;;  %845 = vst [vmem:[%s3733_s27 + $0x1a8] sm:$0xff] %v3057_v28  ;;  %v679_v36 = vadd.s32 %v678_v23, %v676_v24  ;;  %v689_v37 = vcvt.f32.s32 %v687_v29  ;;  %1402 = vadd.xlane.f32.xlu0 %v1400_v32  ;;  %v1585_v24 = vcvt.s32.f32 %v1583_v11  ;;  %v1595_v27 = vand.u32 65535, %v1546_v59 }
 0x11b   : > { %v697_v51 = vpop.xlane.xlu0 %696  ;;  %v1608_v32 = vshrl.u32 %v1547_v41, 16  ;;  %v1550_v11 = vsel %vm4990_vm5, %v3947_v52, 0 }
 0x11c   : > { %vm750_vm6 = vcmp.eq.s32.totalorder %v679_v36, %v3479_v1  ;;  %vm751_vm7 = vcmp.eq.s32.totalorder %v679_v36, %v3712_v31  ;;  %v690_v44 = vshll.u32 %v689_v37, 16  ;;  %1404 = vadd.xlane.f32.xlu1 %v1401_v20  ;;  %v700_v60 = vcvt.f32.s32 %v697_v51 }
 0x11d   : > { %v3058_v46 = vsel %vm750_vm6, 1.0, %v3408_v62  ;;  %v3059_v48 = vsel %vm751_vm7, 1.0, %v3408_v62  ;;  %v699_v49 = vpop.xlane.xlu1 %698  ;;  %v1610_v51 = vcvt.s32.f32 %v1608_v32 }
 0x11e   : > { %846 = vst [vmem:[%s3733_s27 + $0x1b0] sm:$0xff] %v3058_v46  ;;  %847 = vst [vmem:[%s3733_s27 + $0x1b8] sm:$0xff] %v3059_v48  ;;  %v691_v53 = vadd.s32 %v690_v44, %v688_v45  ;;  %v701_v55 = vcvt.f32.s32 %v699_v49  ;;  %1563 = vadd.xlane.f32.xlu0 %v1561_v2  ;;  %v1597_v45 = vcvt.s32.f32 %v1595_v27  ;;  %v1607_v46 = vand.u32 65535, %v1547_v41 }
 0x11f   : > { %v709_v5 = vpop.xlane.xlu0 %708  ;;  %v1620_v2 = vshrl.u32 %v1548_v35, 16  ;;  %v1551_v27 = vsel %vm4988_vm8, %v3947_v52, 0 }
 0x120   : > { %vm752_vm6 = vcmp.eq.s32.totalorder %v691_v53, %v3479_v1  ;;  %vm753_vm7 = vcmp.eq.s32.totalorder %v691_v53, %v3712_v31  ;;  %v702_v7 = vshll.u32 %v701_v55, 16  ;;  %1565 = vadd.xlane.f32.xlu1 %v1562_v38  ;;  %v712_v18 = vcvt.f32.s32 %v709_v5 }
 0x121   : > { %v3060_v63 = vsel %vm752_vm6, 1.0, %v3408_v62  ;;  %v3061_v0 = vsel %vm753_vm7, 1.0, %v3408_v62  ;;  %v711_v3 = vpop.xlane.xlu1 %710  ;;  %v1622_v5 = vcvt.s32.f32 %v1620_v2 }
 0x122   : > { %848 = vst [vmem:[%s3733_s27 + $0x1c0] sm:$0xff] %v3060_v63  ;;  %849 = vst [vmem:[%s3733_s27 + $0x1c8] sm:$0xff] %v3061_v0  ;;  %v703_v12 = vadd.s32 %v702_v7, %v700_v60  ;;  %v713_v13 = vcvt.f32.s32 %v711_v3  ;;  %1575 = vadd.xlane.f32.xlu0 %v1573_v9  ;;  %v1609_v60 = vcvt.s32.f32 %v1607_v46  ;;  %v1619_v63 = vand.u32 65535, %v1548_v35 }
 0x123   : > { %v721_v23 = vpop.xlane.xlu0 %720  ;;  %v1632_v9 = vshrl.u32 %v1549_v56, 16  ;;  %v1552_v46 = vsel %vm3574_vm9, %v3947_v52, 0 }
 0x124   : > { %vm754_vm6 = vcmp.eq.s32.totalorder %v703_v12, %v3479_v1  ;;  %vm755_vm7 = vcmp.eq.s32.totalorder %v703_v12, %v3712_v31  ;;  %v714_v16 = vshll.u32 %v713_v13, 16  ;;  %1577 = vadd.xlane.f32.xlu1 %v1574_v57  ;;  %v724_v37 = vcvt.f32.s32 %v721_v23 }
 0x125   : > { %v3062_v20 = vsel %vm754_vm6, 1.0, %v3408_v62  ;;  %v3063_v21 = vsel %vm755_vm7, 1.0, %v3408_v62  ;;  %v723_v22 = vpop.xlane.xlu1 %722  ;;  %v1634_v23 = vcvt.s32.f32 %v1632_v9 }
 0x126   : > { %850 = vst [vmem:[%s3733_s27 + $0x1d0] sm:$0xff] %v3062_v20  ;;  %851 = vst [vmem:[%s3733_s27 + $0x1d8] sm:$0xff] %v3063_v21  ;;  %v715_v28 = vadd.s32 %v714_v16, %v712_v18  ;;  %v725_v29 = vcvt.f32.s32 %v723_v22  ;;  %1587 = vadd.xlane.f32.xlu0 %v1585_v24  ;;  %v1621_v18 = vcvt.s32.f32 %v1619_v63  ;;  %v1631_v20 = vand.u32 65535, %v1549_v56 }
 0x127   : > { %v882_v44 = vpop.xlane.xlu0 %881  ;;  %v1644_v24 = vshrl.u32 %v1550_v11, 16  ;;  %v1553_v63 = vsel %vm3583_vm10, %v3947_v52, 0 }
 0x128   : > { %vm756_vm6 = vcmp.eq.s32.totalorder %v715_v28, %v3479_v1  ;;  %vm757_vm7 = vcmp.eq.s32.totalorder %v715_v28, %v3712_v31  ;;  %v726_v36 = vshll.u32 %v725_v29, 16  ;;  %1589 = vadd.xlane.f32.xlu1 %v1586_v14  ;;  %v885_v55 = vcvt.f32.s32 %v882_v44 }
 0x129   : > { %v3064_v38 = vsel %vm756_vm6, 1.0, %v3408_v62  ;;  %v3065_v39 = vsel %vm757_vm7, 1.0, %v3408_v62  ;;  %v884_v43 = vpop.xlane.xlu1 %883  ;;  %v1646_v44 = vcvt.s32.f32 %v1644_v24 }
 0x12a   : > { %852 = vst [vmem:[%s3733_s27 + $0x1e0] sm:$0xff] %v3064_v38  ;;  %853 = vst [vmem:[%s3733_s27 + $0x1e8] sm:$0xff] %v3065_v39  ;;  %v727_v48 = vadd.s32 %v726_v36, %v724_v37  ;;  %v886_v49 = vcvt.f32.s32 %v884_v43  ;;  %1599 = vadd.xlane.f32.xlu0 %v1597_v45  ;;  %v1633_v37 = vcvt.s32.f32 %v1631_v20  ;;  %v1643_v38 = vand.u32 65535, %v1550_v11 }
 0x12b   : > { %v894_v7 = vpop.xlane.xlu0 %893  ;;  %v1656_v45 = vshrl.u32 %v1551_v27, 16  ;;  %v1554_v20 = vsel %vm3592_vm11, %v3947_v52, 0 }
 0x12c   : > { %vm758_vm6 = vcmp.eq.s32.totalorder %v727_v48, %v3479_v1  ;;  %vm759_vm7 = vcmp.eq.s32.totalorder %v727_v48, %v3712_v31  ;;  %v887_v53 = vshll.u32 %v886_v49, 16  ;;  %1601 = vadd.xlane.f32.xlu1 %v1598_v30  ;;  %v897_v13 = vcvt.f32.s32 %v894_v7 }
 0x12d   : > { %v3066_v57 = vsel %vm758_vm6, 1.0, %v3408_v62  ;;  %v3067_v58 = vsel %vm759_vm7, 1.0, %v3408_v62  ;;  %v896_v59 = vpop.xlane.xlu1 %895  ;;  %v1658_v7 = vcvt.s32.f32 %v1656_v45 }
 0x12e   : > { %854 = vst [vmem:[%s3733_s27 + $0x1f0] sm:$0xff] %v3066_v57  ;;  %855 = vst [vmem:[%s3733_s27 + $0x1f8] sm:$0xff] %v3067_v58  ;;  %v888_v0 = vadd.s32 %v887_v53, %v885_v55  ;;  %v898_v3 = vcvt.f32.s32 %v896_v59  ;;  %1611 = vadd.xlane.f32.xlu0 %v1609_v60  ;;  %v1645_v55 = vcvt.s32.f32 %v1643_v38  ;;  %v1655_v57 = vand.u32 65535, %v1551_v27 }
 0x12f   : > { %v906_v16 = vpop.xlane.xlu0 %905  ;;  %v1668_v60 = vshrl.u32 %v1552_v46, 16  ;;  %v1555_v38 = vsel %vm3601_vm12, %v3947_v52, 0 }
 0x130   : > { %vm1069_vm6 = vcmp.eq.s32.totalorder %v888_v0, %v3479_v1  ;;  %vm1070_vm7 = vcmp.eq.s32.totalorder %v888_v0, %v3712_v31  ;;  %v899_v12 = vshll.u32 %v898_v3, 16  ;;  %1613 = vadd.xlane.f32.xlu1 %v1610_v51  ;;  %v909_v29 = vcvt.f32.s32 %v906_v16 }
 0x131   : > { %v3069_v14 = vsel %vm1069_vm6, 1.0, %v3408_v62  ;;  %v3070_v15 = vsel %vm1070_vm7, 1.0, %v3408_v62  ;;  %v908_v41 = vpop.xlane.xlu1 %907  ;;  %v1670_v16 = vcvt.s32.f32 %v1668_v60 }
 0x132   : > { %1165 = vst [vmem:[%s3733_s27 + $0x200] sm:$0xff] %v3069_v14  ;;  %1166 = vst [vmem:[%s3733_s27 + $0x208] sm:$0xff] %v3070_v15  ;;  %v900_v21 = vadd.s32 %v899_v12, %v897_v13  ;;  %v910_v22 = vcvt.f32.s32 %v908_v41  ;;  %1623 = vadd.xlane.f32.xlu0 %v1621_v18  ;;  %v1657_v12 = vcvt.s32.f32 %v1655_v57  ;;  %v1667_v13 = vand.u32 65535, %v1552_v46 }
 0x133   : > { %v918_v36 = vpop.xlane.xlu0 %917  ;;  %v1680_v18 = vshrl.u32 %v1553_v63, 16  ;;  %v1556_v57 = vsel %vm3610_vm13, %v3947_v52, 0 }
 0x134   : > { %vm1071_vm6 = vcmp.eq.s32.totalorder %v900_v21, %v3479_v1  ;;  %vm1072_vm7 = vcmp.eq.s32.totalorder %v900_v21, %v3712_v31  ;;  %v911_v28 = vshll.u32 %v910_v22, 16  ;;  %1625 = vadd.xlane.f32.xlu1 %v1622_v5  ;;  %v921_v49 = vcvt.f32.s32 %v918_v36 }
 0x135   : > { %v3071_v30 = vsel %vm1071_vm6, 1.0, %v3408_v62  ;;  %v3072_v32 = vsel %vm1072_vm7, 1.0, %v3408_v62  ;;  %v920_v35 = vpop.xlane.xlu1 %919  ;;  %v1682_v36 = vcvt.s32.f32 %v1680_v18 }
 0x136   : > { %1167 = vst [vmem:[%s3733_s27 + $0x210] sm:$0xff] %v3071_v30  ;;  %1168 = vst [vmem:[%s3733_s27 + $0x218] sm:$0xff] %v3072_v32  ;;  %v912_v39 = vadd.s32 %v911_v28, %v909_v29  ;;  %v922_v43 = vcvt.f32.s32 %v920_v35  ;;  %1635 = vadd.xlane.f32.xlu0 %v1633_v37  ;;  %v1669_v28 = vcvt.s32.f32 %v1667_v13  ;;  %v1679_v29 = vand.u32 65535, %v1553_v63 }
 0x137   : > { %v930_v53 = vpop.xlane.xlu0 %929  ;;  %v1692_v37 = vshrl.u32 %v1554_v20, 16  ;;  %v1716_v13 = vshrl.u32 %v1556_v57, 16 }
 0x138   : > { %vm1073_vm6 = vcmp.eq.s32.totalorder %v912_v39, %v3479_v1  ;;  %vm1074_vm7 = vcmp.eq.s32.totalorder %v912_v39, %v3712_v31  ;;  %v923_v48 = vshll.u32 %v922_v43, 16  ;;  %1637 = vadd.xlane.f32.xlu1 %v1634_v23  ;;  %v933_v3 = vcvt.f32.s32 %v930_v53 }
 0x139   : > { %v3073_v51 = vsel %vm1073_vm6, 1.0, %v3408_v62  ;;  %v3074_v2 = vsel %vm1074_vm7, 1.0, %v3408_v62  ;;  %v932_v56 = vpop.xlane.xlu1 %931  ;;  %v1694_v53 = vcvt.s32.f32 %v1692_v37 }
 0x13a   : > { %1169 = vst [vmem:[%s3733_s27 + $0x220] sm:$0xff] %v3073_v51  ;;  %1170 = vst [vmem:[%s3733_s27 + $0x228] sm:$0xff] %v3074_v2  ;;  %v924_v58 = vadd.s32 %v923_v48, %v921_v49  ;;  %v934_v59 = vcvt.f32.s32 %v932_v56  ;;  %1647 = vadd.xlane.f32.xlu0 %v1645_v55  ;;  %v1681_v48 = vcvt.s32.f32 %v1679_v29  ;;  %v1691_v49 = vand.u32 65535, %v1554_v20 }
 0x13b   : > { %v942_v41 = vpop.xlane.xlu0 %941  ;;  %v1704_v55 = vshrl.u32 %v1555_v38, 16 }
 0x13c   : > { %vm1075_vm6 = vcmp.eq.s32.totalorder %v924_v58, %v3479_v1  ;;  %vm1076_vm7 = vcmp.eq.s32.totalorder %v924_v58, %v3712_v31  ;;  %v935_v0 = vshll.u32 %v934_v59, 16  ;;  %1649 = vadd.xlane.f32.xlu1 %v1646_v44  ;;  %v945_v22 = vcvt.f32.s32 %v942_v41 }
 0x13d   : > { %v3075_v5 = vsel %vm1075_vm6, 1.0, %v3408_v62  ;;  %v3076_v9 = vsel %vm1076_vm7, 1.0, %v3408_v62  ;;  %v944_v11 = vpop.xlane.xlu1 %943 }
 0x13e   : > { %1171 = vst [vmem:[%s3733_s27 + $0x230] sm:$0xff] %v3075_v5  ;;  %1172 = vst [vmem:[%s3733_s27 + $0x238] sm:$0xff] %v3076_v9  ;;  %v936_v14 = vadd.s32 %v935_v0, %v933_v3  ;;  %v946_v15 = vcvt.f32.s32 %v944_v11  ;;  %1659 = vadd.xlane.f32.xlu0 %v1657_v12  ;;  %v1693_v0 = vcvt.s32.f32 %v1691_v49  ;;  %v1703_v3 = vand.u32 65535, %v1555_v38 }
 0x13f   : > { %v954_v35 = vpop.xlane.xlu0 %953  ;;  %v1706_v12 = vcvt.s32.f32 %v1704_v55 }
 0x140   : > { %vm1077_vm6 = vcmp.eq.s32.totalorder %v936_v14, %v3479_v1  ;;  %vm1078_vm7 = vcmp.eq.s32.totalorder %v936_v14, %v3712_v31  ;;  %v947_v21 = vshll.u32 %v946_v15, 16  ;;  %1661 = vadd.xlane.f32.xlu1 %v1658_v7  ;;  %v957_v43 = vcvt.f32.s32 %v954_v35 }
 0x141   : > { %v3077_v23 = vsel %vm1077_vm6, 1.0, %v3408_v62  ;;  %v3078_v24 = vsel %vm1078_vm7, 1.0, %v3408_v62  ;;  %v956_v27 = vpop.xlane.xlu1 %955  ;;  %v1557_v14 = vsel %vm3619_vm14, %v3947_v52, 0 }
 0x142   : > { %1173 = vst [vmem:[%s3733_s27 + $0x240] sm:$0xff] %v3077_v23  ;;  %1174 = vst [vmem:[%s3733_s27 + $0x248] sm:$0xff] %v3078_v24  ;;  %v948_v30 = vadd.s32 %v947_v21, %v945_v22  ;;  %v958_v32 = vcvt.f32.s32 %v956_v27  ;;  %1671 = vadd.xlane.f32.xlu0 %v1669_v28  ;;  %v1705_v21 = vcvt.s32.f32 %v1703_v3  ;;  %v1715_v22 = vand.u32 65535, %v1556_v57 }
 0x143   : > { %v966_v56 = vpop.xlane.xlu0 %965  ;;  %v1718_v28 = vcvt.s32.f32 %v1716_v13  ;;  %v1728_v29 = vshrl.u32 %v1557_v14, 16 }
 0x144   : > { %vm1079_vm6 = vcmp.eq.s32.totalorder %v948_v30, %v3479_v1  ;;  %vm1080_vm7 = vcmp.eq.s32.totalorder %v948_v30, %v3712_v31  ;;  %v959_v39 = vshll.u32 %v958_v32, 16  ;;  %1673 = vadd.xlane.f32.xlu1 %v1670_v16  ;;  %v969_v59 = vcvt.f32.s32 %v966_v56 }
 0x145   : > { %v3079_v44 = vsel %vm1079_vm6, 1.0, %v3408_v62  ;;  %v3080_v45 = vsel %vm1080_vm7, 1.0, %v3408_v62  ;;  %v968_v46 = vpop.xlane.xlu1 %967  ;;  %v1558_v30 = vsel %vm3628_vm15, %v3947_v52, 0 }
 0x146   : > { %1175 = vst [vmem:[%s3733_s27 + $0x250] sm:$0xff] %v3079_v44  ;;  %1176 = vst [vmem:[%s3733_s27 + $0x258] sm:$0xff] %v3080_v45  ;;  %v960_v51 = vadd.s32 %v959_v39, %v957_v43  ;;  %v970_v2 = vcvt.f32.s32 %v968_v46  ;;  %1683 = vadd.xlane.f32.xlu0 %v1681_v48  ;;  %v1717_v43 = vcvt.s32.f32 %v1715_v22  ;;  %v1727_v44 = vand.u32 65535, %v1557_v14 }
 0x147   : > { %v978_v11 = vpop.xlane.xlu0 %977  ;;  %v1730_v48 = vcvt.s32.f32 %v1728_v29  ;;  %v1740_v49 = vshrl.u32 %v1558_v30, 16 }
 0x148   : > { %vm1081_vm6 = vcmp.eq.s32.totalorder %v960_v51, %v3479_v1  ;;  %vm1082_vm7 = vcmp.eq.s32.totalorder %v960_v51, %v3712_v31  ;;  %v971_v58 = vshll.u32 %v970_v2, 16  ;;  %1685 = vadd.xlane.f32.xlu1 %v1682_v36  ;;  %v981_v41 = vcvt.f32.s32 %v978_v11  ;;  %v4094_v36 = vld [vmem:[%s3494_s24 + $0x5] ss:$0 sm:$0xff] }
 0x149   : > { %v3081_v7 = vsel %vm1081_vm6, 1.0, %v3408_v62  ;;  %v3082_v60 = vsel %vm1082_vm7, 1.0, %v3408_v62  ;;  %v980_v63 = vpop.xlane.xlu1 %979  ;;  %v1884_v51 = vsel %vm3486_vm0, %v4094_v36, 0 }
 0x14a   : > { %1177 = vst [vmem:[%s3733_s27 + $0x260] sm:$0xff] %v3081_v7  ;;  %1178 = vst [vmem:[%s3733_s27 + $0x268] sm:$0xff] %v3082_v60  ;;  %v972_v5 = vadd.s32 %v971_v58, %v969_v59  ;;  %v982_v9 = vcvt.f32.s32 %v980_v63  ;;  %1695 = vadd.xlane.f32.xlu0 %v1693_v0  ;;  %v1729_v58 = vcvt.s32.f32 %v1727_v44  ;;  %v1739_v59 = vand.u32 65535, %v1558_v30 }
 0x14b   : > { %v990_v27 = vpop.xlane.xlu0 %989  ;;  %v1742_v0 = vcvt.s32.f32 %v1740_v49  ;;  %v1901_v3 = vshrl.u32 %v1884_v51, 16 }
 0x14c   : > { %vm1083_vm6 = vcmp.eq.s32.totalorder %v972_v5, %v3479_v1  ;;  %vm1084_vm7 = vcmp.eq.s32.totalorder %v972_v5, %v3712_v31  ;;  %v983_v15 = vshll.u32 %v982_v9, 16  ;;  %1697 = vadd.xlane.f32.xlu1 %v1694_v53  ;;  %v993_v35 = vcvt.f32.s32 %v990_v27 }
 0x14d   : > { %v3083_v16 = vsel %vm1083_vm6, 1.0, %v3408_v62  ;;  %v3084_v18 = vsel %vm1084_vm7, 1.0, %v3408_v62  ;;  %v992_v20 = vpop.xlane.xlu1 %991  ;;  %v1885_v5 = vsel %vm3497_vm1, %v4094_v36, 0 }
 0x14e   : > { %1179 = vst [vmem:[%s3733_s27 + $0x270] sm:$0xff] %v3083_v16  ;;  %1180 = vst [vmem:[%s3733_s27 + $0x278] sm:$0xff] %v3084_v18  ;;  %v984_v23 = vadd.s32 %v983_v15, %v981_v41  ;;  %v994_v24 = vcvt.f32.s32 %v992_v20  ;;  %1707 = vadd.xlane.f32.xlu0 %v1705_v21  ;;  %v1741_v15 = vcvt.s32.f32 %v1739_v59  ;;  %v1900_v41 = vand.u32 65535, %v1884_v51 }
 0x14f   : > { %v1002_v46 = vpop.xlane.xlu0 %1001  ;;  %v1903_v21 = vcvt.s32.f32 %v1901_v3  ;;  %v1913_v22 = vshrl.u32 %v1885_v5, 16 }
 0x150   : > { %vm1085_vm6 = vcmp.eq.s32.totalorder %v984_v23, %v3479_v1  ;;  %vm1086_vm7 = vcmp.eq.s32.totalorder %v984_v23, %v3712_v31  ;;  %v995_v32 = vshll.u32 %v994_v24, 16  ;;  %1709 = vadd.xlane.f32.xlu1 %v1706_v12  ;;  %v1005_v56 = vcvt.f32.s32 %v1002_v46 }
 0x151   : > { %v3085_v37 = vsel %vm1085_vm6, 1.0, %v3408_v62  ;;  %v3086_v38 = vsel %vm1086_vm7, 1.0, %v3408_v62  ;;  %v1004_v39 = vpop.xlane.xlu1 %1003  ;;  %v1886_v23 = vsel %vm3505_vm2, %v4094_v36, 0 }
 0x152   : > { %1181 = vst [vmem:[%s3733_s27 + $0x280] sm:$0xff] %v3085_v37  ;;  %1182 = vst [vmem:[%s3733_s27 + $0x288] sm:$0xff] %v3086_v38  ;;  %v996_v52 = vadd.s32 %v995_v32, %v993_v35  ;;  %v1006_v45 = vcvt.f32.s32 %v1004_v39  ;;  %1719 = vadd.xlane.f32.xlu0 %v1717_v43  ;;  %v1902_v32 = vcvt.s32.f32 %v1900_v41  ;;  %v1912_v35 = vand.u32 65535, %v1885_v5 }
 0x153   : > { %v1014_v63 = vpop.xlane.xlu0 %1013  ;;  %v1915_v43 = vcvt.s32.f32 %v1913_v22  ;;  %v1925_v44 = vshrl.u32 %v1886_v23, 16 }
 0x154   : > { %vm1087_vm6 = vcmp.eq.s32.totalorder %v996_v52, %v3479_v1  ;;  %vm1088_vm7 = vcmp.eq.s32.totalorder %v996_v52, %v3712_v31  ;;  %v1007_v2 = vshll.u32 %v1006_v45, 16  ;;  %1721 = vadd.xlane.f32.xlu1 %v1718_v28  ;;  %v1017_v11 = vcvt.f32.s32 %v1014_v63 }
 0x155   : > { %v3087_v53 = vsel %vm1087_vm6, 1.0, %v3408_v62  ;;  %v3088_v55 = vsel %vm1088_vm7, 1.0, %v3408_v62  ;;  %v1016_v57 = vpop.xlane.xlu1 %1015  ;;  %v1887_v52 = vsel %vm3520_vm3, %v4094_v36, 0 }
 0x156   : > { %1183 = vst [vmem:[%s3733_s27 + $0x290] sm:$0xff] %v3087_v53  ;;  %1184 = vst [vmem:[%s3733_s27 + $0x298] sm:$0xff] %v3088_v55  ;;  %v1008_v7 = vadd.s32 %v1007_v2, %v1005_v56  ;;  %v1018_v60 = vcvt.f32.s32 %v1016_v57  ;;  %1731 = vadd.xlane.f32.xlu0 %v1729_v58  ;;  %v1914_v2 = vcvt.s32.f32 %v1912_v35  ;;  %v1924_v56 = vand.u32 65535, %v1886_v23 }
 0x157   : > { %v1026_v20 = vpop.xlane.xlu0 %1025  ;;  %v1927_v58 = vcvt.s32.f32 %v1925_v44  ;;  %v1937_v59 = vshrl.u32 %v1887_v52, 16 }
 0x158   : > { %vm1089_vm6 = vcmp.eq.s32.totalorder %v1008_v7, %v3479_v1  ;;  %vm1090_vm7 = vcmp.eq.s32.totalorder %v1008_v7, %v3712_v31  ;;  %v1019_v9 = vshll.u32 %v1018_v60, 16  ;;  %1733 = vadd.xlane.f32.xlu1 %v1730_v48  ;;  %v1029_v27 = vcvt.f32.s32 %v1026_v20 }
 0x159   : > { %v3089_v12 = vsel %vm1089_vm6, 1.0, %v3408_v62  ;;  %v3090_v13 = vsel %vm1090_vm7, 1.0, %v3408_v62  ;;  %v1028_v14 = vpop.xlane.xlu1 %1027  ;;  %v1888_v7 = vsel %vm3529_vm4, %v4094_v36, 0  ;;  %vm4991_vm4 = vnez %v4964_v33 }
 0x15a   : > { %1185 = vst [vmem:[%s3733_s27 + $0x2a0] sm:$0xff] %v3089_v12  ;;  %1186 = vst [vmem:[%s3733_s27 + $0x2a8] sm:$0xff] %v3090_v13  ;;  %v1020_v16 = vadd.s32 %v1019_v9, %v1017_v11  ;;  %v1030_v18 = vcvt.f32.s32 %v1028_v14  ;;  %1743 = vadd.xlane.f32.xlu0 %v1741_v15  ;;  %v1926_v9 = vcvt.s32.f32 %v1924_v56  ;;  %v1936_v11 = vand.u32 65535, %v1887_v52 }
 0x15b   : > { %v1038_v39 = vpop.xlane.xlu0 %1037  ;;  %v1939_v15 = vcvt.s32.f32 %v1937_v59  ;;  %v1949_v41 = vshrl.u32 %v1888_v7, 16 }
 0x15c   : > { %vm1091_vm6 = vcmp.eq.s32.totalorder %v1020_v16, %v3479_v1  ;;  %vm1092_vm7 = vcmp.eq.s32.totalorder %v1020_v16, %v3712_v31  ;;  %v1031_v24 = vshll.u32 %v1030_v18, 16  ;;  %1745 = vadd.xlane.f32.xlu1 %v1742_v0  ;;  %v1041_v46 = vcvt.f32.s32 %v1038_v39 }
 0x15d   : > { %v3091_v28 = vsel %vm1091_vm6, 1.0, %v3408_v62  ;;  %v3092_v29 = vsel %vm1092_vm7, 1.0, %v3408_v62  ;;  %v1040_v30 = vpop.xlane.xlu1 %1039  ;;  %v1889_v16 = vsel %vm4991_vm4, %v4094_v36, 0  ;;  %vm4992_vm4 = vnez %v4966_v40 }
 0x15e   : > { %1187 = vst [vmem:[%s3733_s27 + $0x2b0] sm:$0xff] %v3091_v28  ;;  %1188 = vst [vmem:[%s3733_s27 + $0x2b8] sm:$0xff] %v3092_v29  ;;  %v1032_v37 = vadd.s32 %v1031_v24, %v1029_v27  ;;  %v1042_v38 = vcvt.f32.s32 %v1040_v30  ;;  %1904 = vadd.xlane.f32.xlu0 %v1902_v32  ;;  %v1938_v24 = vcvt.s32.f32 %v1936_v11  ;;  %v1948_v27 = vand.u32 65535, %v1888_v7 }
 0x15f   : > { %v1050_v57 = vpop.xlane.xlu0 %1049  ;;  %v1951_v32 = vcvt.s32.f32 %v1949_v41  ;;  %v1961_v35 = vshrl.u32 %v1889_v16, 16 }
 0x160   : > { %vm1093_vm6 = vcmp.eq.s32.totalorder %v1032_v37, %v3479_v1  ;;  %vm1094_vm7 = vcmp.eq.s32.totalorder %v1032_v37, %v3712_v31  ;;  %v1043_v45 = vshll.u32 %v1042_v38, 16  ;;  %1906 = vadd.xlane.f32.xlu1 %v1903_v21  ;;  %v1053_v63 = vcvt.f32.s32 %v1050_v57 }
 0x161   : > { %v3093_v48 = vsel %vm1093_vm6, 1.0, %v3408_v62  ;;  %v3094_v49 = vsel %vm1094_vm7, 1.0, %v3408_v62  ;;  %v1052_v51 = vpop.xlane.xlu1 %1051  ;;  %v1890_v37 = vsel %vm4992_vm4, %v4094_v36, 0 }
 0x162   : > { %1189 = vst [vmem:[%s3733_s27 + $0x2c0] sm:$0xff] %v3093_v48  ;;  %1190 = vst [vmem:[%s3733_s27 + $0x2c8] sm:$0xff] %v3094_v49  ;;  %v1044_v53 = vadd.s32 %v1043_v45, %v1041_v46  ;;  %v1054_v55 = vcvt.f32.s32 %v1052_v51  ;;  %1916 = vadd.xlane.f32.xlu0 %v1914_v2  ;;  %v1950_v45 = vcvt.s32.f32 %v1948_v27  ;;  %v1960_v46 = vand.u32 65535, %v1889_v16 }
 0x163   : > { %v1062_v14 = vpop.xlane.xlu0 %1061  ;;  %v1963_v2 = vcvt.s32.f32 %v1961_v35  ;;  %v1973_v56 = vshrl.u32 %v1890_v37, 16 }
 0x164   : > { %vm1095_vm6 = vcmp.eq.s32.totalorder %v1044_v53, %v3479_v1  ;;  %vm1096_vm7 = vcmp.eq.s32.totalorder %v1044_v53, %v3712_v31  ;;  %v1055_v60 = vshll.u32 %v1054_v55, 16  ;;  %1918 = vadd.xlane.f32.xlu1 %v1915_v43  ;;  %v1065_v20 = vcvt.f32.s32 %v1062_v14 }
 0x165   : > { %v3095_v0 = vsel %vm1095_vm6, 1.0, %v3408_v62  ;;  %v3096_v3 = vsel %vm1096_vm7, 1.0, %v3408_v62  ;;  %v1064_v5 = vpop.xlane.xlu1 %1063  ;;  %v1891_v53 = vsel %vm4990_vm5, %v4094_v36, 0 }
 0x166   : > { %1191 = vst [vmem:[%s3733_s27 + $0x2d0] sm:$0xff] %v3095_v0  ;;  %1192 = vst [vmem:[%s3733_s27 + $0x2d8] sm:$0xff] %v3096_v3  ;;  %v1056_v12 = vadd.s32 %v1055_v60, %v1053_v63  ;;  %v1066_v13 = vcvt.f32.s32 %v1064_v5  ;;  %1928 = vadd.xlane.f32.xlu0 %v1926_v9  ;;  %v1962_v60 = vcvt.s32.f32 %v1960_v46  ;;  %v1972_v63 = vand.u32 65535, %v1890_v37 }
 0x167   : > { %v1223_v30 = vpop.xlane.xlu0 %1222  ;;  %v1975_v9 = vcvt.s32.f32 %v1973_v56  ;;  %v1985_v11 = vshrl.u32 %v1891_v53, 16 }
 0x168   : > { %vm1097_vm6 = vcmp.eq.s32.totalorder %v1056_v12, %v3479_v1  ;;  %vm1098_vm7 = vcmp.eq.s32.totalorder %v1056_v12, %v3712_v31  ;;  %v1067_v18 = vshll.u32 %v1066_v13, 16  ;;  %1930 = vadd.xlane.f32.xlu1 %v1927_v58  ;;  %v1226_v39 = vcvt.f32.s32 %v1223_v30 }
 0x169   : > { %v3097_v21 = vsel %vm1097_vm6, 1.0, %v3408_v62  ;;  %v3098_v22 = vsel %vm1098_vm7, 1.0, %v3408_v62  ;;  %v1225_v23 = vpop.xlane.xlu1 %1224  ;;  %v1892_v12 = vsel %vm4988_vm8, %v4094_v36, 0 }
 0x16a   : > { %1193 = vst [vmem:[%s3733_s27 + $0x2e0] sm:$0xff] %v3097_v21  ;;  %1194 = vst [vmem:[%s3733_s27 + $0x2e8] sm:$0xff] %v3098_v22  ;;  %v1068_v28 = vadd.s32 %v1067_v18, %v1065_v20  ;;  %v1227_v29 = vcvt.f32.s32 %v1225_v23  ;;  %1940 = vadd.xlane.f32.xlu0 %v1938_v24  ;;  %v1974_v18 = vcvt.s32.f32 %v1972_v63  ;;  %v1984_v20 = vand.u32 65535, %v1891_v53 }
 0x16b   : > { %v1235_v51 = vpop.xlane.xlu0 %1234  ;;  %v1987_v24 = vcvt.s32.f32 %v1985_v11  ;;  %v1997_v27 = vshrl.u32 %v1892_v12, 16 }
 0x16c   : > { %vm1099_vm6 = vcmp.eq.s32.totalorder %v1068_v28, %v3479_v1  ;;  %vm1100_vm7 = vcmp.eq.s32.totalorder %v1068_v28, %v3712_v31  ;;  %v1228_v38 = vshll.u32 %v1227_v29, 16  ;;  %1942 = vadd.xlane.f32.xlu1 %v1939_v15  ;;  %v1238_v57 = vcvt.f32.s32 %v1235_v51 }
 0x16d   : > { %v3099_v43 = vsel %vm1099_vm6, 1.0, %v3408_v62  ;;  %v3100_v44 = vsel %vm1100_vm7, 1.0, %v3408_v62  ;;  %v1237_v52 = vpop.xlane.xlu1 %1236  ;;  %v1893_v28 = vsel %vm3574_vm9, %v4094_v36, 0 }
 0x16e   : > { %1195 = vst [vmem:[%s3733_s27 + $0x2f0] sm:$0xff] %v3099_v43  ;;  %1196 = vst [vmem:[%s3733_s27 + $0x2f8] sm:$0xff] %v3100_v44  ;;  %v1229_v48 = vadd.s32 %v1228_v38, %v1226_v39  ;;  %v1239_v49 = vcvt.f32.s32 %v1237_v52  ;;  %1952 = vadd.xlane.f32.xlu0 %v1950_v45  ;;  %v1986_v38 = vcvt.s32.f32 %v1984_v20  ;;  %v1996_v39 = vand.u32 65535, %v1892_v12 }
 0x16f   : > { %v1247_v5 = vpop.xlane.xlu0 %1246  ;;  %v1999_v45 = vcvt.s32.f32 %v1997_v27  ;;  %v2009_v46 = vshrl.u32 %v1893_v28, 16 }
 0x170   : > { %vm1410_vm6 = vcmp.eq.s32.totalorder %v1229_v48, %v3479_v1  ;;  %vm1411_vm7 = vcmp.eq.s32.totalorder %v1229_v48, %v3712_v31  ;;  %v1240_v55 = vshll.u32 %v1239_v49, 16  ;;  %1954 = vadd.xlane.f32.xlu1 %v1951_v32  ;;  %v1250_v14 = vcvt.f32.s32 %v1247_v5 }
 0x171   : > { %v3102_v58 = vsel %vm1410_vm6, 1.0, %v3408_v62  ;;  %v3103_v59 = vsel %vm1411_vm7, 1.0, %v3408_v62  ;;  %v1249_v7 = vpop.xlane.xlu1 %1248  ;;  %v1894_v48 = vsel %vm3583_vm10, %v4094_v36, 0 }
 0x172   : > { %1506 = vst [vmem:[%s3733_s27 + $0x300] sm:$0xff] %v3102_v58  ;;  %1507 = vst [vmem:[%s3733_s27 + $0x308] sm:$0xff] %v3103_v59  ;;  %v1241_v0 = vadd.s32 %v1240_v55, %v1238_v57  ;;  %v1251_v3 = vcvt.f32.s32 %v1249_v7  ;;  %1964 = vadd.xlane.f32.xlu0 %v1962_v60  ;;  %v1998_v55 = vcvt.s32.f32 %v1996_v39  ;;  %v2008_v57 = vand.u32 65535, %v1893_v28 }
 0x173   : > { %v1259_v23 = vpop.xlane.xlu0 %1258  ;;  %v2011_v60 = vcvt.s32.f32 %v2009_v46  ;;  %v2021_v63 = vshrl.u32 %v1894_v48, 16 }
 0x174   : > { %vm1412_vm6 = vcmp.eq.s32.totalorder %v1241_v0, %v3479_v1  ;;  %vm1413_vm7 = vcmp.eq.s32.totalorder %v1241_v0, %v3712_v31  ;;  %v1252_v13 = vshll.u32 %v1251_v3, 16  ;;  %1966 = vadd.xlane.f32.xlu1 %v1963_v2  ;;  %v1262_v30 = vcvt.f32.s32 %v1259_v23 }
 0x175   : > { %v3104_v15 = vsel %vm1412_vm6, 1.0, %v3408_v62  ;;  %v3105_v41 = vsel %vm1413_vm7, 1.0, %v3408_v62  ;;  %v1261_v16 = vpop.xlane.xlu1 %1260  ;;  %v1895_v0 = vsel %vm3592_vm11, %v4094_v36, 0 }
 0x176   : > { %1508 = vst [vmem:[%s3733_s27 + $0x310] sm:$0xff] %v3104_v15  ;;  %1509 = vst [vmem:[%s3733_s27 + $0x318] sm:$0xff] %v3105_v41  ;;  %v1253_v21 = vadd.s32 %v1252_v13, %v1250_v14  ;;  %v1263_v22 = vcvt.f32.s32 %v1261_v16  ;;  %1976 = vadd.xlane.f32.xlu0 %v1974_v18  ;;  %v2010_v13 = vcvt.s32.f32 %v2008_v57  ;;  %v2020_v14 = vand.u32 65535, %v1894_v48 }
 0x177   : > { %v1271_v52 = vpop.xlane.xlu0 %1270  ;;  %v2023_v18 = vcvt.s32.f32 %v2021_v63  ;;  %v2033_v20 = vshrl.u32 %v1895_v0, 16 }
 0x178   : > { %vm1414_vm6 = vcmp.eq.s32.totalorder %v1253_v21, %v3479_v1  ;;  %vm1415_vm7 = vcmp.eq.s32.totalorder %v1253_v21, %v3712_v31  ;;  %v1264_v29 = vshll.u32 %v1263_v22, 16  ;;  %1978 = vadd.xlane.f32.xlu1 %v1975_v9  ;;  %v1274_v51 = vcvt.f32.s32 %v1271_v52 }
 0x179   : > { %v3106_v32 = vsel %vm1414_vm6, 1.0, %v3408_v62  ;;  %v3107_v35 = vsel %vm1415_vm7, 1.0, %v3408_v62  ;;  %v1273_v37 = vpop.xlane.xlu1 %1272  ;;  %v1896_v21 = vsel %vm3601_vm12, %v4094_v36, 0 }
 0x17a   : > { %1510 = vst [vmem:[%s3733_s27 + $0x320] sm:$0xff] %v3106_v32  ;;  %1511 = vst [vmem:[%s3733_s27 + $0x328] sm:$0xff] %v3107_v35  ;;  %v1265_v43 = vadd.s32 %v1264_v29, %v1262_v30  ;;  %v1275_v44 = vcvt.f32.s32 %v1273_v37  ;;  %1988 = vadd.xlane.f32.xlu0 %v1986_v38  ;;  %v2022_v29 = vcvt.s32.f32 %v2020_v14  ;;  %v2032_v30 = vand.u32 65535, %v1895_v0 }
 0x17b   : > { %v1283_v7 = vpop.xlane.xlu0 %1282  ;;  %v2035_v38 = vcvt.s32.f32 %v2033_v20  ;;  %v2045_v39 = vshrl.u32 %v1896_v21, 16 }
 0x17c   : > { %vm1416_vm6 = vcmp.eq.s32.totalorder %v1265_v43, %v3479_v1  ;;  %vm1417_vm7 = vcmp.eq.s32.totalorder %v1265_v43, %v3712_v31  ;;  %v1276_v49 = vshll.u32 %v1275_v44, 16  ;;  %1990 = vadd.xlane.f32.xlu1 %v1987_v24  ;;  %v1286_v5 = vcvt.f32.s32 %v1283_v7 }
 0x17d   : > { %v3108_v2 = vsel %vm1416_vm6, 1.0, %v3408_v62  ;;  %v3109_v56 = vsel %vm1417_vm7, 1.0, %v3408_v62  ;;  %v1285_v53 = vpop.xlane.xlu1 %1284  ;;  %v1897_v43 = vsel %vm3610_vm13, %v4094_v36, 0 }
 0x17e   : > { %1512 = vst [vmem:[%s3733_s27 + $0x330] sm:$0xff] %v3108_v2  ;;  %1513 = vst [vmem:[%s3733_s27 + $0x338] sm:$0xff] %v3109_v56  ;;  %v1277_v58 = vadd.s32 %v1276_v49, %v1274_v51  ;;  %v1287_v59 = vcvt.f32.s32 %v1285_v53  ;;  %2000 = vadd.xlane.f32.xlu0 %v1998_v55  ;;  %v2034_v49 = vcvt.s32.f32 %v2032_v30  ;;  %v2044_v51 = vand.u32 65535, %v1896_v21 }
 0x17f   : > { %v1295_v16 = vpop.xlane.xlu0 %1294  ;;  %v2047_v55 = vcvt.s32.f32 %v2045_v39  ;;  %v2057_v57 = vshrl.u32 %v1897_v43, 16 }
 0x180   : > { %vm1418_vm6 = vcmp.eq.s32.totalorder %v1277_v58, %v3479_v1  ;;  %vm1419_vm7 = vcmp.eq.s32.totalorder %v1277_v58, %v3712_v31  ;;  %v1288_v3 = vshll.u32 %v1287_v59, 16  ;;  %2002 = vadd.xlane.f32.xlu1 %v1999_v45  ;;  %v1298_v23 = vcvt.f32.s32 %v1295_v16 }
 0x181   : > { %v3110_v9 = vsel %vm1418_vm6, 1.0, %v3408_v62  ;;  %v3111_v11 = vsel %vm1419_vm7, 1.0, %v3408_v62  ;;  %v1297_v12 = vpop.xlane.xlu1 %1296  ;;  %v1898_v58 = vsel %vm3619_vm14, %v4094_v36, 0 }
 0x182   : > { %1514 = vst [vmem:[%s3733_s27 + $0x340] sm:$0xff] %v3110_v9  ;;  %1515 = vst [vmem:[%s3733_s27 + $0x348] sm:$0xff] %v3111_v11  ;;  %v1289_v15 = vadd.s32 %v1288_v3, %v1286_v5  ;;  %v1299_v41 = vcvt.f32.s32 %v1297_v12  ;;  %2012 = vadd.xlane.f32.xlu0 %v2010_v13  ;;  %v2046_v3 = vcvt.s32.f32 %v2044_v51  ;;  %v2056_v5 = vand.u32 65535, %v1897_v43 }
 0x183   : > { %v1307_v37 = vpop.xlane.xlu0 %1306  ;;  %v2059_v13 = vcvt.s32.f32 %v2057_v57  ;;  %v2069_v14 = vshrl.u32 %v1898_v58, 16 }
 0x184   : > { %vm1420_vm6 = vcmp.eq.s32.totalorder %v1289_v15, %v3479_v1  ;;  %vm1421_vm7 = vcmp.eq.s32.totalorder %v1289_v15, %v3712_v31  ;;  %v1300_v22 = vshll.u32 %v1299_v41, 16  ;;  %2014 = vadd.xlane.f32.xlu1 %v2011_v60  ;;  %v1310_v52 = vcvt.f32.s32 %v1307_v37 }
 0x185   : > { %v3112_v24 = vsel %vm1420_vm6, 1.0, %v3408_v62  ;;  %v3113_v27 = vsel %vm1421_vm7, 1.0, %v3408_v62  ;;  %v1309_v28 = vpop.xlane.xlu1 %1308  ;;  %v1899_v15 = vsel %vm3628_vm15, %v4094_v36, 0 }
 0x186   : > { %1516 = vst [vmem:[%s3733_s27 + $0x350] sm:$0xff] %v3112_v24  ;;  %1517 = vst [vmem:[%s3733_s27 + $0x358] sm:$0xff] %v3113_v27  ;;  %v1301_v32 = vadd.s32 %v1300_v22, %v1298_v23  ;;  %v1311_v35 = vcvt.f32.s32 %v1309_v28  ;;  %2024 = vadd.xlane.f32.xlu0 %v2022_v29  ;;  %v2058_v23 = vcvt.s32.f32 %v2056_v5  ;;  %v2068_v24 = vand.u32 65535, %v1898_v58 }
 0x187   : > { %v1319_v53 = vpop.xlane.xlu0 %1318  ;;  %v2071_v29 = vcvt.s32.f32 %v2069_v14  ;;  %v2081_v30 = vshrl.u32 %v1899_v15, 16 }
 0x188   : > { %vm1422_vm6 = vcmp.eq.s32.totalorder %v1301_v32, %v3479_v1  ;;  %vm1423_vm7 = vcmp.eq.s32.totalorder %v1301_v32, %v3712_v31  ;;  %v1312_v44 = vshll.u32 %v1311_v35, 16  ;;  %2026 = vadd.xlane.f32.xlu1 %v2023_v18  ;;  %v1322_v7 = vcvt.f32.s32 %v1319_v53  ;;  %v4241_v18 = vld [vmem:[%s3494_s24 + $0x6] ss:$0 sm:$0xff] }
 0x189   : > { %v3114_v45 = vsel %vm1422_vm6, 1.0, %v3408_v62  ;;  %v3115_v46 = vsel %vm1423_vm7, 1.0, %v3408_v62  ;;  %v1321_v48 = vpop.xlane.xlu1 %1320  ;;  %v2225_v32 = vsel %vm3486_vm0, %v4241_v18, 0 }
 0x18a   : > { %1518 = vst [vmem:[%s3733_s27 + $0x360] sm:$0xff] %v3114_v45  ;;  %1519 = vst [vmem:[%s3733_s27 + $0x368] sm:$0xff] %v3115_v46  ;;  %v1313_v2 = vadd.s32 %v1312_v44, %v1310_v52  ;;  %v1323_v56 = vcvt.f32.s32 %v1321_v48  ;;  %2036 = vadd.xlane.f32.xlu0 %v2034_v49  ;;  %v2070_v44 = vcvt.s32.f32 %v2068_v24  ;;  %v2080_v52 = vand.u32 65535, %v1899_v15 }
 0x18b   : > { %v1331_v12 = vpop.xlane.xlu0 %1330  ;;  %v2083_v49 = vcvt.s32.f32 %v2081_v30  ;;  %v2242_v51 = vshrl.u32 %v2225_v32, 16 }
 0x18c   : > { %vm1424_vm6 = vcmp.eq.s32.totalorder %v1313_v2, %v3479_v1  ;;  %vm1425_vm7 = vcmp.eq.s32.totalorder %v1313_v2, %v3712_v31  ;;  %v1324_v59 = vshll.u32 %v1323_v56, 16  ;;  %2038 = vadd.xlane.f32.xlu1 %v2035_v38  ;;  %v1334_v16 = vcvt.f32.s32 %v1331_v12 }
 0x18d   : > { %v3116_v60 = vsel %vm1424_vm6, 1.0, %v3408_v62  ;;  %v3117_v63 = vsel %vm1425_vm7, 1.0, %v3408_v62  ;;  %v1333_v0 = vpop.xlane.xlu1 %1332  ;;  %v2226_v2 = vsel %vm3497_vm1, %v4241_v18, 0 }
 0x18e   : > { %1520 = vst [vmem:[%s3733_s27 + $0x370] sm:$0xff] %v3116_v60  ;;  %1521 = vst [vmem:[%s3733_s27 + $0x378] sm:$0xff] %v3117_v63  ;;  %v1325_v9 = vadd.s32 %v1324_v59, %v1322_v7  ;;  %v1335_v11 = vcvt.f32.s32 %v1333_v0  ;;  %2048 = vadd.xlane.f32.xlu0 %v2046_v3  ;;  %v2082_v59 = vcvt.s32.f32 %v2080_v52  ;;  %v2241_v7 = vand.u32 65535, %v2225_v32 }
 0x18f   : > { %v1343_v28 = vpop.xlane.xlu0 %1342  ;;  %v2244_v3 = vcvt.s32.f32 %v2242_v51  ;;  %v2254_v5 = vshrl.u32 %v2226_v2, 16 }
 0x190   : > { %vm1426_vm6 = vcmp.eq.s32.totalorder %v1325_v9, %v3479_v1  ;;  %vm1427_vm7 = vcmp.eq.s32.totalorder %v1325_v9, %v3712_v31  ;;  %v1336_v41 = vshll.u32 %v1335_v11, 16  ;;  %2050 = vadd.xlane.f32.xlu1 %v2047_v55  ;;  %v1346_v37 = vcvt.f32.s32 %v1343_v28 }
 0x191   : > { %v3118_v20 = vsel %vm1426_vm6, 1.0, %v3408_v62  ;;  %v3119_v21 = vsel %vm1427_vm7, 1.0, %v3408_v62  ;;  %v1345_v22 = vpop.xlane.xlu1 %1344  ;;  %v2227_v9 = vsel %vm3505_vm2, %v4241_v18, 0 }
 0x192   : > { %1522 = vst [vmem:[%s3733_s27 + $0x380] sm:$0xff] %v3118_v20  ;;  %1523 = vst [vmem:[%s3733_s27 + $0x388] sm:$0xff] %v3119_v21  ;;  %v1337_v36 = vadd.s32 %v1336_v41, %v1334_v16  ;;  %v1347_v27 = vcvt.f32.s32 %v1345_v22  ;;  %2060 = vadd.xlane.f32.xlu0 %v2058_v23  ;;  %v2243_v41 = vcvt.s32.f32 %v2241_v7  ;;  %v2253_v16 = vand.u32 65535, %v2226_v2 }
 0x193   : > { %v1355_v48 = vpop.xlane.xlu0 %1354  ;;  %v2256_v23 = vcvt.s32.f32 %v2254_v5  ;;  %v2266_v24 = vshrl.u32 %v2227_v9, 16 }
 0x194   : > { %vm1428_vm6 = vcmp.eq.s32.totalorder %v1337_v36, %v3479_v1  ;;  %vm1429_vm7 = vcmp.eq.s32.totalorder %v1337_v36, %v3712_v31  ;;  %v1348_v35 = vshll.u32 %v1347_v27, 16  ;;  %2062 = vadd.xlane.f32.xlu1 %v2059_v13  ;;  %v1358_v53 = vcvt.f32.s32 %v1355_v48 }
 0x195   : > { %v3120_v38 = vsel %vm1428_vm6, 1.0, %v3408_v62  ;;  %v3121_v39 = vsel %vm1429_vm7, 1.0, %v3408_v62  ;;  %v1357_v43 = vpop.xlane.xlu1 %1356  ;;  %v2228_v36 = vsel %vm3520_vm3, %v4241_v18, 0  ;;  %vm4993_vm3 = vnez %v4962_v26 }
 0x196   : > { %1524 = vst [vmem:[%s3733_s27 + $0x390] sm:$0xff] %v3120_v38  ;;  %1525 = vst [vmem:[%s3733_s27 + $0x398] sm:$0xff] %v3121_v39  ;;  %v1349_v45 = vadd.s32 %v1348_v35, %v1346_v37  ;;  %v1359_v46 = vcvt.f32.s32 %v1357_v43  ;;  %2072 = vadd.xlane.f32.xlu0 %v2070_v44  ;;  %v2255_v35 = vcvt.s32.f32 %v2253_v16  ;;  %v2265_v37 = vand.u32 65535, %v2227_v9 }
 0x197   : > { %v1367_v0 = vpop.xlane.xlu0 %1366  ;;  %v2268_v44 = vcvt.s32.f32 %v2266_v24  ;;  %v2278_v52 = vshrl.u32 %v2228_v36, 16 }
 0x198   : > { %vm1430_vm6 = vcmp.eq.s32.totalorder %v1349_v45, %v3479_v1  ;;  %vm1431_vm7 = vcmp.eq.s32.totalorder %v1349_v45, %v3712_v31  ;;  %v1360_v56 = vshll.u32 %v1359_v46, 16  ;;  %2074 = vadd.xlane.f32.xlu1 %v2071_v29  ;;  %v1370_v12 = vcvt.f32.s32 %v1367_v0 }
 0x199   : > { %v3122_v55 = vsel %vm1430_vm6, 1.0, %v3408_v62  ;;  %v3123_v57 = vsel %vm1431_vm7, 1.0, %v3408_v62  ;;  %v1369_v58 = vpop.xlane.xlu1 %1368  ;;  %v2229_v45 = vsel %vm4993_vm3, %v4241_v18, 0  ;;  %vm4994_vm3 = vnez %v4964_v33 }
 0x19a   : > { %1526 = vst [vmem:[%s3733_s27 + $0x3a0] sm:$0xff] %v3122_v55  ;;  %1527 = vst [vmem:[%s3733_s27 + $0x3a8] sm:$0xff] %v3123_v57  ;;  %v1361_v60 = vadd.s32 %v1360_v56, %v1358_v53  ;;  %v1371_v63 = vcvt.f32.s32 %v1369_v58  ;;  %2084 = vadd.xlane.f32.xlu0 %v2082_v59  ;;  %v2267_v56 = vcvt.s32.f32 %v2265_v37  ;;  %v2277_v53 = vand.u32 65535, %v2228_v36 }
 0x19b   : > { %v1379_v22 = vpop.xlane.xlu0 %1378  ;;  %v2280_v59 = vcvt.s32.f32 %v2278_v52  ;;  %v2290_v7 = vshrl.u32 %v2229_v45, 16 }
 0x19c   : > { %vm1432_vm6 = vcmp.eq.s32.totalorder %v1361_v60, %v3479_v1  ;;  %vm1433_vm7 = vcmp.eq.s32.totalorder %v1361_v60, %v3712_v31  ;;  %v1372_v11 = vshll.u32 %v1371_v63, 16  ;;  %2086 = vadd.xlane.f32.xlu1 %v2083_v49  ;;  %v1382_v28 = vcvt.f32.s32 %v1379_v22 }
 0x19d   : > { %v3124_v13 = vsel %vm1432_vm6, 1.0, %v3408_v62  ;;  %v3125_v14 = vsel %vm1433_vm7, 1.0, %v3408_v62  ;;  %v1381_v15 = vpop.xlane.xlu1 %1380  ;;  %v2230_v60 = vsel %vm4994_vm3, %v4241_v18, 0 }
 0x19e   : > { %1528 = vst [vmem:[%s3733_s27 + $0x3b0] sm:$0xff] %v3124_v13  ;;  %1529 = vst [vmem:[%s3733_s27 + $0x3b8] sm:$0xff] %v3125_v14  ;;  %v1373_v20 = vadd.s32 %v1372_v11, %v1370_v12  ;;  %v1383_v21 = vcvt.f32.s32 %v1381_v15  ;;  %2245 = vadd.xlane.f32.xlu0 %v2243_v41  ;;  %v2279_v11 = vcvt.s32.f32 %v2277_v53  ;;  %v2289_v12 = vand.u32 65535, %v2229_v45 }
 0x19f   : > { %v1391_v43 = vpop.xlane.xlu0 %1390  ;;  %v2292_v41 = vcvt.s32.f32 %v2290_v7  ;;  %v2302_v16 = vshrl.u32 %v2230_v60, 16 }
 0x1a0   : > { %vm1434_vm6 = vcmp.eq.s32.totalorder %v1373_v20, %v3479_v1  ;;  %vm1435_vm7 = vcmp.eq.s32.totalorder %v1373_v20, %v3712_v31  ;;  %v1384_v27 = vshll.u32 %v1383_v21, 16  ;;  %2247 = vadd.xlane.f32.xlu1 %v2244_v3  ;;  %v1394_v48 = vcvt.f32.s32 %v1391_v43 }
 0x1a1   : > { %v3126_v29 = vsel %vm1434_vm6, 1.0, %v3408_v62  ;;  %v3127_v30 = vsel %vm1435_vm7, 1.0, %v3408_v62  ;;  %v1393_v32 = vpop.xlane.xlu1 %1392  ;;  %v2231_v20 = vsel %vm4992_vm4, %v4241_v18, 0 }
 0x1a2   : > { %1530 = vst [vmem:[%s3733_s27 + $0x3c0] sm:$0xff] %v3126_v29  ;;  %1531 = vst [vmem:[%s3733_s27 + $0x3c8] sm:$0xff] %v3127_v30  ;;  %v1385_v38 = vadd.s32 %v1384_v27, %v1382_v28  ;;  %v1395_v39 = vcvt.f32.s32 %v1393_v32  ;;  %2257 = vadd.xlane.f32.xlu0 %v2255_v35  ;;  %v2291_v27 = vcvt.s32.f32 %v2289_v12  ;;  %v2301_v28 = vand.u32 65535, %v2230_v60 }
 0x1a3   : > { %v1403_v58 = vpop.xlane.xlu0 %1402  ;;  %v2304_v35 = vcvt.s32.f32 %v2302_v16  ;;  %v2314_v37 = vshrl.u32 %v2231_v20, 16 }
 0x1a4   : > { %vm1436_vm6 = vcmp.eq.s32.totalorder %v1385_v38, %v3479_v1  ;;  %vm1437_vm7 = vcmp.eq.s32.totalorder %v1385_v38, %v3712_v31  ;;  %v1396_v46 = vshll.u32 %v1395_v39, 16  ;;  %2259 = vadd.xlane.f32.xlu1 %v2256_v23  ;;  %v1406_v0 = vcvt.f32.s32 %v1403_v58 }
 0x1a5   : > { %v3128_v49 = vsel %vm1436_vm6, 1.0, %v3408_v62  ;;  %v3129_v51 = vsel %vm1437_vm7, 1.0, %v3408_v62  ;;  %v1405_v2 = vpop.xlane.xlu1 %1404  ;;  %v2232_v38 = vsel %vm4990_vm5, %v4241_v18, 0 }
 0x1a6   : > { %1532 = vst [vmem:[%s3733_s27 + $0x3d0] sm:$0xff] %v3128_v49  ;;  %1533 = vst [vmem:[%s3733_s27 + $0x3d8] sm:$0xff] %v3129_v51  ;;  %v1397_v55 = vadd.s32 %v1396_v46, %v1394_v48  ;;  %v1407_v57 = vcvt.f32.s32 %v1405_v2  ;;  %2269 = vadd.xlane.f32.xlu0 %v2267_v56  ;;  %v2303_v46 = vcvt.s32.f32 %v2301_v28  ;;  %v2313_v48 = vand.u32 65535, %v2231_v20 }
 0x1a7   : > { %v1564_v15 = vpop.xlane.xlu0 %1563  ;;  %v2316_v56 = vcvt.s32.f32 %v2314_v37  ;;  %v2326_v53 = vshrl.u32 %v2232_v38, 16 }
 0x1a8   : > { %vm1438_vm6 = vcmp.eq.s32.totalorder %v1397_v55, %v3479_v1  ;;  %vm1439_vm7 = vcmp.eq.s32.totalorder %v1397_v55, %v3712_v31  ;;  %v1408_v63 = vshll.u32 %v1407_v57, 16  ;;  %2271 = vadd.xlane.f32.xlu1 %v2268_v44  ;;  %v1567_v22 = vcvt.f32.s32 %v1564_v15 }
 0x1a9   : > { %v3130_v3 = vsel %vm1438_vm6, 1.0, %v3408_v62  ;;  %v3131_v5 = vsel %vm1439_vm7, 1.0, %v3408_v62  ;;  %v1566_v9 = vpop.xlane.xlu1 %1565  ;;  %v2233_v55 = vsel %vm4988_vm8, %v4241_v18, 0 }
 0x1aa   : > { %1534 = vst [vmem:[%s3733_s27 + $0x3e0] sm:$0xff] %v3130_v3  ;;  %1535 = vst [vmem:[%s3733_s27 + $0x3e8] sm:$0xff] %v3131_v5  ;;  %v1409_v13 = vadd.s32 %v1408_v63, %v1406_v0  ;;  %v1568_v14 = vcvt.f32.s32 %v1566_v9  ;;  %2281 = vadd.xlane.f32.xlu0 %v2279_v11  ;;  %v2315_v63 = vcvt.s32.f32 %v2313_v48  ;;  %v2325_v0 = vand.u32 65535, %v2232_v38 }
 0x1ab   : > { %v1576_v32 = vpop.xlane.xlu0 %1575  ;;  %v2328_v11 = vcvt.s32.f32 %v2326_v53  ;;  %v2338_v12 = vshrl.u32 %v2233_v55, 16 }
 0x1ac   : > { %vm1440_vm6 = vcmp.eq.s32.totalorder %v1409_v13, %v3479_v1  ;;  %vm1441_vm7 = vcmp.eq.s32.totalorder %v1409_v13, %v3712_v31  ;;  %v1569_v21 = vshll.u32 %v1568_v14, 16  ;;  %2283 = vadd.xlane.f32.xlu1 %v2280_v59  ;;  %v1579_v43 = vcvt.f32.s32 %v1576_v32 }
 0x1ad   : > { %v3132_v23 = vsel %vm1440_vm6, 1.0, %v3408_v62  ;;  %v3133_v24 = vsel %vm1441_vm7, 1.0, %v3408_v62  ;;  %v1578_v36 = vpop.xlane.xlu1 %1577  ;;  %v2234_v13 = vsel %vm3574_vm9, %v4241_v18, 0 }
 0x1ae   : > { %1536 = vst [vmem:[%s3733_s27 + $0x3f0] sm:$0xff] %v3132_v23  ;;  %1537 = vst [vmem:[%s3733_s27 + $0x3f8] sm:$0xff] %v3133_v24  ;;  %v1570_v29 = vadd.s32 %v1569_v21, %v1567_v22  ;;  %v1580_v30 = vcvt.f32.s32 %v1578_v36  ;;  %2293 = vadd.xlane.f32.xlu0 %v2291_v27  ;;  %v2327_v21 = vcvt.s32.f32 %v2325_v0  ;;  %v2337_v22 = vand.u32 65535, %v2233_v55 }
 0x1af   : > { %v1588_v2 = vpop.xlane.xlu0 %1587  ;;  %v2340_v27 = vcvt.s32.f32 %v2338_v12  ;;  %v2350_v28 = vshrl.u32 %v2234_v13, 16 }
 0x1b0   : > { %vm1751_vm6 = vcmp.eq.s32.totalorder %v1570_v29, %v3479_v1  ;;  %vm1752_vm7 = vcmp.eq.s32.totalorder %v1570_v29, %v3712_v31  ;;  %v1581_v39 = vshll.u32 %v1580_v30, 16  ;;  %2295 = vadd.xlane.f32.xlu1 %v2292_v41  ;;  %v1591_v58 = vcvt.f32.s32 %v1588_v2 }
 0x1b1   : > { %v3135_v44 = vsel %vm1751_vm6, 1.0, %v3408_v62  ;;  %v3136_v52 = vsel %vm1752_vm7, 1.0, %v3408_v62  ;;  %v1590_v45 = vpop.xlane.xlu1 %1589  ;;  %v2235_v29 = vsel %vm3583_vm10, %v4241_v18, 0 }
 0x1b2   : > { %1847 = vst [vmem:[%s3733_s27 + $0x400] sm:$0xff] %v3135_v44  ;;  %1848 = vst [vmem:[%s3733_s27 + $0x408] sm:$0xff] %v3136_v52  ;;  %v1582_v49 = vadd.s32 %v1581_v39, %v1579_v43  ;;  %v1592_v51 = vcvt.f32.s32 %v1590_v45  ;;  %2305 = vadd.xlane.f32.xlu0 %v2303_v46  ;;  %v2339_v39 = vcvt.s32.f32 %v2337_v22  ;;  %v2349_v43 = vand.u32 65535, %v2234_v13 }
 0x1b3   : > { %v1600_v9 = vpop.xlane.xlu0 %1599  ;;  %v2352_v46 = vcvt.s32.f32 %v2350_v28  ;;  %v2362_v48 = vshrl.u32 %v2235_v29, 16 }
 0x1b4   : > { %vm1753_vm6 = vcmp.eq.s32.totalorder %v1582_v49, %v3479_v1  ;;  %vm1754_vm7 = vcmp.eq.s32.totalorder %v1582_v49, %v3712_v31  ;;  %v1593_v57 = vshll.u32 %v1592_v51, 16  ;;  %2307 = vadd.xlane.f32.xlu1 %v2304_v35  ;;  %v1603_v15 = vcvt.f32.s32 %v1600_v9 }
 0x1b5   : > { %v3137_v59 = vsel %vm1753_vm6, 1.0, %v3408_v62  ;;  %v3138_v7 = vsel %vm1754_vm7, 1.0, %v3408_v62  ;;  %v1602_v60 = vpop.xlane.xlu1 %1601  ;;  %v2236_v49 = vsel %vm3592_vm11, %v4241_v18, 0 }
 0x1b6   : > { %1849 = vst [vmem:[%s3733_s27 + $0x410] sm:$0xff] %v3137_v59  ;;  %1850 = vst [vmem:[%s3733_s27 + $0x418] sm:$0xff] %v3138_v7  ;;  %v1594_v3 = vadd.s32 %v1593_v57, %v1591_v58  ;;  %v1604_v5 = vcvt.f32.s32 %v1602_v60  ;;  %2317 = vadd.xlane.f32.xlu0 %v2315_v63  ;;  %v2351_v57 = vcvt.s32.f32 %v2349_v43  ;;  %v2361_v58 = vand.u32 65535, %v2235_v29 }
 0x1b7   : > { %v1612_v36 = vpop.xlane.xlu0 %1611  ;;  %v2364_v63 = vcvt.s32.f32 %v2362_v48  ;;  %v2374_v0 = vshrl.u32 %v2236_v49, 16  ;;  %v4381_v43 = vsel %vm3610_vm13, %v4241_v18, 0 }
 0x1b8   : > { %vm1755_vm6 = vcmp.eq.s32.totalorder %v1594_v3, %v3479_v1  ;;  %vm1756_vm7 = vcmp.eq.s32.totalorder %v1594_v3, %v3712_v31  ;;  %v1605_v14 = vshll.u32 %v1604_v5, 16  ;;  %2319 = vadd.xlane.f32.xlu1 %v2316_v56  ;;  %v1615_v32 = vcvt.f32.s32 %v1612_v36 }
 0x1b9   : > { %v3139_v41 = vsel %vm1755_vm6, 1.0, %v3408_v62  ;;  %v3140_v16 = vsel %vm1756_vm7, 1.0, %v3408_v62  ;;  %v1614_v20 = vpop.xlane.xlu1 %1613  ;;  %v2237_v3 = vsel %vm3601_vm12, %v4241_v18, 0 }
 0x1ba   : > { %1851 = vst [vmem:[%s3733_s27 + $0x420] sm:$0xff] %v3139_v41  ;;  %1852 = vst [vmem:[%s3733_s27 + $0x428] sm:$0xff] %v3140_v16  ;;  %v1606_v23 = vadd.s32 %v1605_v14, %v1603_v15  ;;  %v1616_v24 = vcvt.f32.s32 %v1614_v20  ;;  %2329 = vadd.xlane.f32.xlu0 %v2327_v21  ;;  %v2363_v14 = vcvt.s32.f32 %v2361_v58  ;;  %v2373_v15 = vand.u32 65535, %v2236_v49 }
 0x1bb   : > { %v1624_v45 = vpop.xlane.xlu0 %1623  ;;  %v2376_v21 = vcvt.s32.f32 %v2374_v0  ;;  %v2386_v22 = vshrl.u32 %v2237_v3, 16  ;;  %v4399_v58 = vsel %vm3628_vm15, %v4241_v18, 0 }
 0x1bc   : > { %vm1757_vm6 = vcmp.eq.s32.totalorder %v1606_v23, %v3479_v1  ;;  %vm1758_vm7 = vcmp.eq.s32.totalorder %v1606_v23, %v3712_v31  ;;  %v1617_v30 = vshll.u32 %v1616_v24, 16  ;;  %2331 = vadd.xlane.f32.xlu1 %v2328_v11  ;;  %v1627_v2 = vcvt.f32.s32 %v1624_v45 }
 0x1bd   : > { %v3141_v35 = vsel %vm1757_vm6, 1.0, %v3408_v62  ;;  %v3142_v37 = vsel %vm1758_vm7, 1.0, %v3408_v62  ;;  %v1626_v38 = vpop.xlane.xlu1 %1625  ;;  %v4367_v23 = vsel %vm3619_vm14, %v4241_v18, 0 }
 0x1be   : > { %1853 = vst [vmem:[%s3733_s27 + $0x430] sm:$0xff] %v3141_v35  ;;  %1854 = vst [vmem:[%s3733_s27 + $0x438] sm:$0xff] %v3142_v37  ;;  %v1618_v44 = vadd.s32 %v1617_v30, %v1615_v32  ;;  %v1628_v52 = vcvt.f32.s32 %v1626_v38  ;;  %2341 = vadd.xlane.f32.xlu0 %v2339_v39  ;;  %v2375_v32 = vcvt.s32.f32 %v2373_v15  ;;  %v2385_v35 = vand.u32 65535, %v2237_v3 }
 0x1bf   : > { %v1636_v60 = vpop.xlane.xlu0 %1635 }
 0x1c0   : > { %vm1759_vm6 = vcmp.eq.s32.totalorder %v1618_v44, %v3479_v1  ;;  %vm1760_vm7 = vcmp.eq.s32.totalorder %v1618_v44, %v3712_v31  ;;  %v1629_v51 = vshll.u32 %v1628_v52, 16  ;;  %2343 = vadd.xlane.f32.xlu1 %v2340_v27  ;;  %v1639_v9 = vcvt.f32.s32 %v1636_v60  ;;  %v4372_v27 = vld [vmem:[%s3494_s24 + $0x7] ss:$0 sm:$0xff] }
 0x1c1   : > { %v3143_v56 = vsel %vm1759_vm6, 1.0, %v3408_v62  ;;  %v3144_v53 = vsel %vm1760_vm7, 1.0, %v3408_v62  ;;  %v1638_v55 = vpop.xlane.xlu1 %1637  ;;  %v2388_v44 = vcvt.s32.f32 %v2386_v22  ;;  %v2410_v52 = vshrl.u32 %v4367_v23, 16 }
 0x1c2   : > { %1855 = vst [vmem:[%s3733_s27 + $0x440] sm:$0xff] %v3143_v56  ;;  %1856 = vst [vmem:[%s3733_s27 + $0x448] sm:$0xff] %v3144_v53  ;;  %v1630_v59 = vadd.s32 %v1629_v51, %v1627_v2  ;;  %v1640_v7 = vcvt.f32.s32 %v1638_v55  ;;  %2353 = vadd.xlane.f32.xlu0 %v2351_v57  ;;  %v4387_v45 = vsel %vm3486_vm0, %v4372_v27, 0  ;;  %v2387_v56 = vcvt.s32.f32 %v2385_v35 }
 0x1c3   : > { %v1648_v20 = vpop.xlane.xlu0 %1647  ;;  %v2398_v53 = vshrl.u32 %v4381_v43, 16  ;;  %v4405_v60 = vsel %vm3505_vm2, %v4372_v27, 0  ;;  %vm4995_vm2 = vnez %v4962_v26 }
 0x1c4   : > { %vm1761_vm6 = vcmp.eq.s32.totalorder %v1630_v59, %v3479_v1  ;;  %vm1762_vm7 = vcmp.eq.s32.totalorder %v1630_v59, %v3712_v31  ;;  %v1641_v5 = vshll.u32 %v1640_v7, 16  ;;  %2355 = vadd.xlane.f32.xlu1 %v2352_v46  ;;  %v1651_v36 = vcvt.f32.s32 %v1648_v20 }
 0x1c5   : > { %v3145_v11 = vsel %vm1761_vm6, 1.0, %v3408_v62  ;;  %v3146_v12 = vsel %vm1762_vm7, 1.0, %v3408_v62  ;;  %v1650_v13 = vpop.xlane.xlu1 %1649  ;;  %v2412_v59 = vcvt.s32.f32 %v2410_v52  ;;  %v2583_v7 = vshrl.u32 %v4387_v45, 16 }
 0x1c6   : > { %1857 = vst [vmem:[%s3733_s27 + $0x450] sm:$0xff] %v3145_v11  ;;  %1858 = vst [vmem:[%s3733_s27 + $0x458] sm:$0xff] %v3146_v12  ;;  %v1642_v41 = vadd.s32 %v1641_v5, %v1639_v9  ;;  %v1652_v16 = vcvt.f32.s32 %v1650_v13  ;;  %2365 = vadd.xlane.f32.xlu0 %v2363_v14  ;;  %v2400_v9 = vcvt.s32.f32 %v2398_v53  ;;  %v2422_v11 = vshrl.u32 %v4399_v58, 16 }
 0x1c7   : > { %v1660_v39 = vpop.xlane.xlu0 %1659  ;;  %v4417_v14 = vsel %vm3497_vm1, %v4372_v27, 0  ;;  %v2585_v15 = vcvt.s32.f32 %v2583_v7  ;;  %vm4996_vm1 = vnez %v4960_v19 }
 0x1c8   : > { %vm1763_vm6 = vcmp.eq.s32.totalorder %v1642_v41, %v3479_v1  ;;  %vm1764_vm7 = vcmp.eq.s32.totalorder %v1642_v41, %v3712_v31  ;;  %v1653_v24 = vshll.u32 %v1652_v16, 16  ;;  %2367 = vadd.xlane.f32.xlu1 %v2364_v63  ;;  %v1663_v48 = vcvt.f32.s32 %v1660_v39 }
 0x1c9   : > { %v3147_v28 = vsel %vm1763_vm6, 1.0, %v3408_v62  ;;  %v3148_v29 = vsel %vm1764_vm7, 1.0, %v3408_v62  ;;  %v1662_v30 = vpop.xlane.xlu1 %1661  ;;  %v2607_v41 = vshrl.u32 %v4405_v60, 16  ;;  %v4423_v16 = vsel %vm4995_vm2, %v4372_v27, 0 }
 0x1ca   : > { %1859 = vst [vmem:[%s3733_s27 + $0x460] sm:$0xff] %v3147_v28  ;;  %1860 = vst [vmem:[%s3733_s27 + $0x468] sm:$0xff] %v3148_v29  ;;  %v1654_v37 = vadd.s32 %v1653_v24, %v1651_v36  ;;  %v1664_v38 = vcvt.f32.s32 %v1662_v30  ;;  %2377 = vadd.xlane.f32.xlu0 %v2375_v32  ;;  %v2424_v36 = vcvt.s32.f32 %v2422_v11  ;;  %v2595_v28 = vshrl.u32 %v4417_v14, 16 }
 0x1cb   : > { %v1672_v57 = vpop.xlane.xlu0 %1671  ;;  %v4435_v32 = vsel %vm4996_vm1, %v4372_v27, 0  ;;  %v2609_v35 = vcvt.s32.f32 %v2607_v41 }
 0x1cc   : > { %vm1765_vm6 = vcmp.eq.s32.totalorder %v1654_v37, %v3479_v1  ;;  %vm1766_vm7 = vcmp.eq.s32.totalorder %v1654_v37, %v3712_v31  ;;  %v1665_v46 = vshll.u32 %v1664_v38, 16  ;;  %2379 = vadd.xlane.f32.xlu1 %v2376_v21  ;;  %v1675_v0 = vcvt.f32.s32 %v1672_v57 }
 0x1cd   : > { %v3149_v49 = vsel %vm1765_vm6, 1.0, %v3408_v62  ;;  %v3150_v51 = vsel %vm1766_vm7, 1.0, %v3408_v62  ;;  %v1674_v2 = vpop.xlane.xlu1 %1673  ;;  %v2631_v37 = vshrl.u32 %v4423_v16, 16  ;;  %v4441_v38 = vsel %vm4992_vm4, %v4372_v27, 0 }
 0x1ce   : > { %1861 = vst [vmem:[%s3733_s27 + $0x470] sm:$0xff] %v3149_v49  ;;  %1862 = vst [vmem:[%s3733_s27 + $0x478] sm:$0xff] %v3150_v51  ;;  %v1666_v4 = vadd.s32 %v1665_v46, %v1663_v48  ;;  %v1676_v55 = vcvt.f32.s32 %v1674_v2  ;;  %2389 = vadd.xlane.f32.xlu0 %v2387_v56  ;;  %v2597_v48 = vcvt.s32.f32 %v2595_v28  ;;  %v2619_v49 = vshrl.u32 %v4435_v32, 16 }
 0x1cf   : > { %v1684_v13 = vpop.xlane.xlu0 %1683  ;;  %v4453_v56 = vsel %vm4994_vm3, %v4372_v27, 0  ;;  %v2633_v53 = vcvt.s32.f32 %v2631_v37 }
 0x1d0   : > { %vm1767_vm0 = vcmp.eq.s32.totalorder %v1666_v4, %v3479_v1  ;;  %vm1768_vm6 = vcmp.eq.s32.totalorder %v1666_v4, %v3712_v31  ;;  %v1677_v63 = vshll.u32 %v1676_v55, 16  ;;  %2391 = vadd.xlane.f32.xlu1 %v2388_v44  ;;  %v1687_v21 = vcvt.f32.s32 %v1684_v13 }
 0x1d1   : > { %v3151_v3 = vsel %vm1767_vm0, 1.0, %v3408_v62  ;;  %v3152_v18 = vsel %vm1768_vm6, 1.0, %v3408_v62  ;;  %v1686_v5 = vpop.xlane.xlu1 %1685  ;;  %v2655_v4 = vshrl.u32 %v4441_v38, 16  ;;  %v4459_v55 = vsel %vm4988_vm8, %v4372_v27, 0 }
 0x1d2   : > { %1863 = vst [vmem:[%s3733_s27 + $0x480] sm:$0xff] %v3151_v3  ;;  %1864 = vst [vmem:[%s3733_s27 + $0x488] sm:$0xff] %v3152_v18  ;;  %v1678_v8 = vadd.s32 %v1677_v63, %v1675_v0  ;;  %v1688_v12 = vcvt.f32.s32 %v1686_v5  ;;  %2403 = vadd.xlane.f32.xlu0 %v2400_v9  ;;  %v2621_v0 = vcvt.s32.f32 %v2619_v49  ;;  %v2643_v3 = vshrl.u32 %v4453_v56, 16 }
 0x1d3   : > { %v1696_v30 = vpop.xlane.xlu0 %1695  ;;  %v4471_v9 = vsel %vm4990_vm5, %v4372_v27, 0  ;;  %v2657_v11 = vcvt.s32.f32 %v2655_v4 }
 0x1d4   : > { %vm1769_vm7 = vcmp.eq.s32.totalorder %v1678_v8, %v3479_v1  ;;  %vm1770_vm0 = vcmp.eq.s32.totalorder %v1678_v8, %v3712_v31  ;;  %v1689_v20 = vshll.u32 %v1688_v12, 16  ;;  %2415 = vadd.xlane.f32.xlu1 %v2412_v59  ;;  %v1699_v44 = vcvt.f32.s32 %v1696_v30 }
 0x1d5   : > { %v3153_v6 = vsel %vm1769_vm7, 1.0, %v3408_v62  ;;  %v3154_v22 = vsel %vm1770_vm0, 1.0, %v3408_v62  ;;  %v1698_v24 = vpop.xlane.xlu1 %1697  ;;  %v2679_v8 = vshrl.u32 %v4459_v55, 16  ;;  %v4477_v12 = vsel %vm3583_vm10, %v4372_v27, 0 }
 0x1d6   : > { %1865 = vst [vmem:[%s3733_s27 + $0x490] sm:$0xff] %v3153_v6  ;;  %1866 = vst [vmem:[%s3733_s27 + $0x498] sm:$0xff] %v3154_v22  ;;  %v1690_v26 = vadd.s32 %v1689_v20, %v1687_v21  ;;  %v1700_v29 = vcvt.f32.s32 %v1698_v24  ;;  %2427 = vadd.xlane.f32.xlu0 %v2424_v36  ;;  %v2645_v21 = vcvt.s32.f32 %v2643_v3  ;;  %v2667_v6 = vshrl.u32 %v4471_v9, 16 }
 0x1d7   : > { %v1708_v2 = vpop.xlane.xlu0 %1707  ;;  %v4489_v36 = vsel %vm3574_vm9, %v4372_v27, 0  ;;  %v2681_v28 = vcvt.s32.f32 %v2679_v8 }
 0x1d8   : > { %vm1771_vm6 = vcmp.eq.s32.totalorder %v1690_v26, %v3479_v1  ;;  %vm1772_vm2 = vcmp.eq.s32.totalorder %v1690_v26, %v3712_v31  ;;  %v1701_v39 = vshll.u32 %v1700_v29, 16  ;;  %2588 = vadd.xlane.f32.xlu1 %v2585_v15  ;;  %v1711_v59 = vcvt.f32.s32 %v1708_v2 }
 0x1d9   : > { %v3155_v19 = vsel %vm1771_vm6, 1.0, %v3408_v62  ;;  %v3156_v52 = vsel %vm1772_vm2, 1.0, %v3408_v62  ;;  %v1710_v46 = vpop.xlane.xlu1 %1709  ;;  %v2703_v26 = vshrl.u32 %v4477_v12, 16  ;;  %v4495_v29 = vsel %vm3601_vm12, %v4372_v27, 0 }
 0x1da   : > { %1867 = vst [vmem:[%s3733_s27 + $0x4a0] sm:$0xff] %v3155_v19  ;;  %1868 = vst [vmem:[%s3733_s27 + $0x4a8] sm:$0xff] %v3156_v52  ;;  %v1702_v40 = vadd.s32 %v1701_v39, %v1699_v44  ;;  %v1712_v51 = vcvt.f32.s32 %v1710_v46  ;;  %2600 = vadd.xlane.f32.xlu0 %v2597_v48  ;;  %v2669_v44 = vcvt.s32.f32 %v2667_v6  ;;  %v2691_v19 = vshrl.u32 %v4489_v36, 16 }
 0x1db   : > { %v1720_v5 = vpop.xlane.xlu0 %1719  ;;  %v4507_v48 = vsel %vm3592_vm11, %v4372_v27, 0  ;;  %v2705_v49 = vcvt.s32.f32 %v2703_v26 }
 0x1dc   : > { %vm1773_vm4 = vcmp.eq.s32.totalorder %v1702_v40, %v3479_v1  ;;  %vm1774_vm7 = vcmp.eq.s32.totalorder %v1702_v40, %v3712_v31  ;;  %v1713_v57 = vshll.u32 %v1712_v51, 16  ;;  %2612 = vadd.xlane.f32.xlu1 %v2609_v35  ;;  %v1723_v15 = vcvt.f32.s32 %v1720_v5 }
 0x1dd   : > { %v3157_v33 = vsel %vm1773_vm4, 1.0, %v3408_v62  ;;  %v3158_v7 = vsel %vm1774_vm7, 1.0, %v3408_v62  ;;  %v1722_v63 = vpop.xlane.xlu1 %1721  ;;  %v2727_v40 = vshrl.u32 %v4495_v29, 16  ;;  %v4513_v51 = vsel %vm3619_vm14, %v4372_v27, 0 }
 0x1de   : > { %1869 = vst [vmem:[%s3733_s27 + $0x4b0] sm:$0xff] %v3157_v33  ;;  %1870 = vst [vmem:[%s3733_s27 + $0x4b8] sm:$0xff] %v3158_v7  ;;  %v1714_v54 = vadd.s32 %v1713_v57, %v1711_v59  ;;  %v1724_v18 = vcvt.f32.s32 %v1722_v63  ;;  %2624 = vadd.xlane.f32.xlu0 %v2621_v0  ;;  %v2693_v59 = vcvt.s32.f32 %v2691_v19  ;;  %v2715_v33 = vshrl.u32 %v4507_v48, 16 }
 0x1df   : > { %v1732_v24 = vpop.xlane.xlu0 %1731  ;;  %v4525_v0 = vsel %vm3610_vm13, %v4372_v27, 0  ;;  %v2729_v3 = vcvt.s32.f32 %v2727_v40  ;;  %v2409_v40 = vand.u32 65535, %v4367_v23 }
 0x1e0   : > { %vm1775_vm3 = vcmp.eq.s32.totalorder %v1714_v54, %v3479_v1  ;;  %vm1776_vm8 = vcmp.eq.s32.totalorder %v1714_v54, %v3712_v31  ;;  %v1725_v13 = vshll.u32 %v1724_v18, 16  ;;  %2636 = vadd.xlane.f32.xlu1 %v2633_v53  ;;  %v1735_v35 = vcvt.f32.s32 %v1732_v24 }
 0x1e1   : > { %v3159_v47 = vsel %vm1775_vm3, 1.0, %v3408_v62  ;;  %v3160_v41 = vsel %vm1776_vm8, 1.0, %v3408_v62  ;;  %v1734_v20 = vpop.xlane.xlu1 %1733  ;;  %v2751_v54 = vshrl.u32 %v4513_v51, 16  ;;  %v2717_v34 = vcvt.s32.f32 %v2715_v33 }
 0x1e2   : > { %1871 = vst [vmem:[%s3733_s27 + $0x4c0] sm:$0xff] %v3159_v47  ;;  %1872 = vst [vmem:[%s3733_s27 + $0x4c8] sm:$0xff] %v3160_v41  ;;  %v1726_v10 = vadd.s32 %v1725_v13, %v1723_v15  ;;  %v1736_v22 = vcvt.f32.s32 %v1734_v20  ;;  %2648 = vadd.xlane.f32.xlu0 %v2645_v21  ;;  %v2739_v15 = vshrl.u32 %v4525_v0, 16  ;;  %v4538_v21 = vsel %vm3628_vm15, %v4372_v27, 0 }
 0x1e3   : > { %v1744_v46 = vpop.xlane.xlu0 %1743  ;;  %v2753_v6 = vcvt.s32.f32 %v2751_v54  ;;  %v2763_v27 = vshrl.u32 %v4538_v21, 16 }
 0x1e4   : > { %vm1777_vm10 = vcmp.eq.s32.totalorder %v1726_v10, %v3479_v1  ;;  %vm1778_vm5 = vcmp.eq.s32.totalorder %v1726_v10, %v3712_v31  ;;  %v1737_v30 = vshll.u32 %v1736_v22, 16  ;;  %2660 = vadd.xlane.f32.xlu1 %v2657_v11  ;;  %v1747_v53 = vcvt.f32.s32 %v1744_v46 }
 0x1e5   : > { %v3161_v61 = vsel %vm1777_vm10, 1.0, %v3408_v62  ;;  %v3162_v37 = vsel %vm1778_vm5, 1.0, %v3408_v62  ;;  %v1746_v39 = vpop.xlane.xlu1 %1745  ;;  %v2397_v10 = vand.u32 65535, %v4381_v43  ;;  %v2741_v50 = vcvt.s32.f32 %v2739_v15 }
 0x1e6   : > { %1873 = vst [vmem:[%s3733_s27 + $0x4d0] sm:$0xff] %v3161_v61  ;;  %1874 = vst [vmem:[%s3733_s27 + $0x4d8] sm:$0xff] %v3162_v37  ;;  %v1738_v25 = vadd.s32 %v1737_v30, %v1735_v35  ;;  %v1748_v52 = vcvt.f32.s32 %v1746_v39  ;;  %2672 = vadd.xlane.f32.xlu0 %v2669_v44  ;;  %v2421_v39 = vand.u32 65535, %v4399_v58 }
 0x1e7   : > { %v1905_v63 = vpop.xlane.xlu0 %1904  ;;  %v2399_v37 = vcvt.s32.f32 %v2397_v10  ;;  %v2642_v10 = vand.u32 65535, %v4453_v56 }
 0x1e8   : > { %vm1779_vm9 = vcmp.eq.s32.totalorder %v1738_v25, %v3479_v1  ;;  %vm1780_vm12 = vcmp.eq.s32.totalorder %v1738_v25, %v3712_v31  ;;  %v1749_v2 = vshll.u32 %v1748_v52, 16  ;;  %2684 = vadd.xlane.f32.xlu1 %v2681_v28  ;;  %v1908_v5 = vcvt.f32.s32 %v1905_v63 }
 0x1e9   : > { %v3163_v17 = vsel %vm1779_vm9, 1.0, %v3408_v62  ;;  %v3164_v4 = vsel %vm1780_vm12, 1.0, %v3408_v62  ;;  %v1907_v57 = vpop.xlane.xlu1 %1906  ;;  %v2582_v63 = vand.u32 65535, %v4387_v45 }
 0x1ea   : > { %1875 = vst [vmem:[%s3733_s27 + $0x4e0] sm:$0xff] %v3163_v17  ;;  %1876 = vst [vmem:[%s3733_s27 + $0x4e8] sm:$0xff] %v3164_v4  ;;  %v1750_v42 = vadd.s32 %v1749_v2, %v1747_v53  ;;  %v1909_v7 = vcvt.f32.s32 %v1907_v57  ;;  %2696 = vadd.xlane.f32.xlu0 %v2693_v59  ;;  %v2423_v17 = vcvt.s32.f32 %v2421_v39  ;;  %v2594_v4 = vand.u32 65535, %v4417_v14 }
 0x1eb   : > { %v1917_v20 = vpop.xlane.xlu0 %1916  ;;  %v2584_v15 = vcvt.s32.f32 %v2582_v63 }
 0x1ec   : > { %vm1781_vm11 = vcmp.eq.s32.totalorder %v1750_v42, %v3479_v1  ;;  %vm1782_vm14 = vcmp.eq.s32.totalorder %v1750_v42, %v3712_v31  ;;  %v1910_v18 = vshll.u32 %v1909_v7, 16  ;;  %2708 = vadd.xlane.f32.xlu1 %v2705_v49  ;;  %v1920_v24 = vcvt.f32.s32 %v1917_v20 }
 0x1ed   : > { %v3165_v11 = vsel %vm1781_vm11, 1.0, %v3408_v62  ;;  %v3166_v8 = vsel %vm1782_vm14, 1.0, %v3408_v62  ;;  %v1919_v13 = vpop.xlane.xlu1 %1918  ;;  %v2765_v49 = vcvt.s32.f32 %v2763_v27  ;;  %v2411_v7 = vcvt.s32.f32 %v2409_v40 }
 0x1ee   : > { %1877 = vst [vmem:[%s3733_s27 + $0x4f0] sm:$0xff] %v3165_v11  ;;  %1878 = vst [vmem:[%s3733_s27 + $0x4f8] sm:$0xff] %v3166_v8  ;;  %v1911_v47 = vadd.s32 %v1910_v18, %v1908_v5  ;;  %v1921_v41 = vcvt.f32.s32 %v1919_v13  ;;  %2720 = vadd.xlane.f32.xlu0 %v2717_v34  ;;  %v2596_v18 = vcvt.s32.f32 %v2594_v4  ;;  %v2618_v5 = vand.u32 65535, %v4435_v32 }
 0x1ef   : > { %v1929_v61 = vpop.xlane.xlu0 %1928 }
 0x1f0   : > { %vm2092_vm13 = vcmp.eq.s32.totalorder %v1911_v47, %v3479_v1  ;;  %vm2093_vm0 = vcmp.eq.s32.totalorder %v1911_v47, %v3712_v31  ;;  %v1922_v22 = vshll.u32 %v1921_v41, 16  ;;  %2732 = vadd.xlane.f32.xlu1 %v2729_v3  ;;  %v1932_v19 = vcvt.f32.s32 %v1929_v61 }
 0x1f1   : > { %v3168_v28 = vsel %vm2092_vm13, 1.0, %v3408_v62  ;;  %v3169_v26 = vsel %vm2093_vm0, 1.0, %v3408_v62  ;;  %v1931_v30 = vpop.xlane.xlu1 %1930  ;;  %v2606_v47 = vand.u32 65535, %v4405_v60  ;;  %v2666_v61 = vand.u32 65535, %v4471_v9 }
 0x1f2   : > { %2188 = vst [vmem:[%s3733_s27 + $0x500] sm:$0xff] %v3168_v28  ;;  %2189 = vst [vmem:[%s3733_s27 + $0x508] sm:$0xff] %v3169_v26  ;;  %v1923_v35 = vadd.s32 %v1922_v22, %v1920_v24  ;;  %v1933_v43 = vcvt.f32.s32 %v1931_v30  ;;  %2744 = vadd.xlane.f32.xlu0 %v2741_v50  ;;  %v2630_v50 = vand.u32 65535, %v4423_v16 }
 0x1f3   : > { %v1941_v53 = vpop.xlane.xlu0 %1940  ;;  %v2608_v30 = vcvt.s32.f32 %v2606_v47  ;;  %v2668_v40 = vcvt.s32.f32 %v2666_v61 }
 0x1f4   : > { %vm2094_vm15 = vcmp.eq.s32.totalorder %v1923_v35, %v3479_v1  ;;  %vm2095_vm1 = vcmp.eq.s32.totalorder %v1923_v35, %v3712_v31  ;;  %v1934_v44 = vshll.u32 %v1933_v43, 16  ;;  %2756 = vadd.xlane.f32.xlu1 %v2753_v6  ;;  %v1944_v59 = vcvt.f32.s32 %v1941_v53 }
 0x1f5   : > { %v3170_v25 = vsel %vm2094_vm15, 1.0, %v3408_v62  ;;  %v3171_v52 = vsel %vm2095_vm1, 1.0, %v3408_v62  ;;  %v1943_v46 = vpop.xlane.xlu1 %1942  ;;  %v2620_v6 = vcvt.s32.f32 %v2618_v5  ;;  %v2644_v43 = vcvt.s32.f32 %v2642_v10 }
 0x1f6   : > { %2190 = vst [vmem:[%s3733_s27 + $0x510] sm:$0xff] %v3170_v25  ;;  %2191 = vst [vmem:[%s3733_s27 + $0x518] sm:$0xff] %v3171_v52  ;;  %v1935_v2 = vadd.s32 %v1934_v44, %v1932_v19  ;;  %v1945_v58 = vcvt.f32.s32 %v1943_v46  ;;  %2768 = vadd.xlane.f32.xlu0 %v2765_v49  ;;  %v2632_v25 = vcvt.s32.f32 %v2630_v50  ;;  %v2654_v52 = vand.u32 65535, %v4441_v38 }
 0x1f7   : > { %v1953_v54 = vpop.xlane.xlu0 %1952  ;;  %v2702_v5 = vand.u32 65535, %v4477_v12 }
 0x1f8   : > { %vm2096_vm6 = vcmp.eq.s32.totalorder %v1935_v2, %v3479_v1  ;;  %vm2097_vm2 = vcmp.eq.s32.totalorder %v1935_v2, %v3712_v31  ;;  %v1946_v57 = vshll.u32 %v1945_v58, 16  ;;  %2401 = vadd.xlane.f32.xlu1 %v2399_v37  ;;  %v1956_v8 = vcvt.f32.s32 %v1953_v54 }
 0x1f9   : > { %v3172_v33 = vsel %vm2096_vm6, 1.0, %v3408_v62  ;;  %v3173_v23 = vsel %vm2097_vm2, 1.0, %v3408_v62  ;;  %v1955_v42 = vpop.xlane.xlu1 %1954  ;;  %v2690_v2 = vand.u32 65535, %v4489_v36 }
 0x1fa   : > { %2192 = vst [vmem:[%s3733_s27 + $0x520] sm:$0xff] %v3172_v33  ;;  %2193 = vst [vmem:[%s3733_s27 + $0x528] sm:$0xff] %v3173_v23  ;;  %v1947_v3 = vadd.s32 %v1946_v57, %v1944_v59  ;;  %v1957_v14 = vcvt.f32.s32 %v1955_v42  ;;  %2413 = vadd.xlane.f32.xlu0 %v2411_v7  ;;  %v2656_v57 = vcvt.s32.f32 %v2654_v52  ;;  %v2678_v59 = vand.u32 65535, %v4459_v55 }
 0x1fb   : > { %v1965_v20 = vpop.xlane.xlu0 %1964  ;;  %v2692_v42 = vcvt.s32.f32 %v2690_v2  ;;  %v2714_v7 = vand.u32 65535, %v4507_v48 }
 0x1fc   : > { %vm2098_vm4 = vcmp.eq.s32.totalorder %v1947_v3, %v3479_v1  ;;  %vm2099_vm7 = vcmp.eq.s32.totalorder %v1947_v3, %v3712_v31  ;;  %v1958_v11 = vshll.u32 %v1957_v14, 16  ;;  %2425 = vadd.xlane.f32.xlu1 %v2423_v17  ;;  %v1968_v24 = vcvt.f32.s32 %v1965_v20 }
 0x1fd   : > { %v3174_v13 = vsel %vm2098_vm4, 1.0, %v3408_v62  ;;  %v3175_v45 = vsel %vm2099_vm7, 1.0, %v3408_v62  ;;  %v1967_v34 = vpop.xlane.xlu1 %1966  ;;  %v2726_v20 = vand.u32 65535, %v4495_v29 }
 0x1fe   : > { %2194 = vst [vmem:[%s3733_s27 + $0x530] sm:$0xff] %v3174_v13  ;;  %2195 = vst [vmem:[%s3733_s27 + $0x538] sm:$0xff] %v3175_v45  ;;  %v1959_v41 = vadd.s32 %v1958_v11, %v1956_v8  ;;  %v1969_v32 = vcvt.f32.s32 %v1967_v34  ;;  %2586 = vadd.xlane.f32.xlu0 %v2584_v15  ;;  %v2716_v13 = vcvt.s32.f32 %v2714_v7  ;;  %v2738_v45 = vand.u32 65535, %v4525_v0 }
 0x1ff   : > { %v1977_v35 = vpop.xlane.xlu0 %1976  ;;  %v2728_v50 = vcvt.s32.f32 %v2726_v20 }
 0x200   : > { %vm2100_vm3 = vcmp.eq.s32.totalorder %v1959_v41, %v3479_v1  ;;  %vm2101_vm8 = vcmp.eq.s32.totalorder %v1959_v41, %v3712_v31  ;;  %v1970_v22 = vshll.u32 %v1969_v32, 16  ;;  %2598 = vadd.xlane.f32.xlu1 %v2596_v18  ;;  %v1980_v39 = vcvt.f32.s32 %v1977_v35 }
 0x201   : > { %v3176_v28 = vsel %vm2100_vm3, 1.0, %v3408_v62  ;;  %v3177_v60 = vsel %vm2101_vm8, 1.0, %v3408_v62  ;;  %v1979_v26 = vpop.xlane.xlu1 %1978  ;;  %v2680_v18 = vcvt.s32.f32 %v2678_v59  ;;  %v2704_v32 = vcvt.s32.f32 %v2702_v5 }
 0x202   : > { %2196 = vst [vmem:[%s3733_s27 + $0x540] sm:$0xff] %v3176_v28  ;;  %2197 = vst [vmem:[%s3733_s27 + $0x548] sm:$0xff] %v3177_v60  ;;  %v1971_v27 = vadd.s32 %v1970_v22, %v1968_v24  ;;  %v1981_v56 = vcvt.f32.s32 %v1979_v26  ;;  %2610 = vadd.xlane.f32.xlu0 %v2608_v30  ;;  %v2740_v22 = vcvt.s32.f32 %v2738_v45  ;;  %v2762_v24 = vand.u32 65535, %v4538_v21 }
 0x203   : > { %v1989_v49 = vpop.xlane.xlu0 %1988 }
 0x204   : > { %vm2102_vm10 = vcmp.eq.s32.totalorder %v1971_v27, %v3479_v1  ;;  %vm2103_vm5 = vcmp.eq.s32.totalorder %v1971_v27, %v3712_v31  ;;  %v1982_v37 = vshll.u32 %v1981_v56, 16  ;;  %2622 = vadd.xlane.f32.xlu1 %v2620_v6  ;;  %v1992_v53 = vcvt.f32.s32 %v1989_v49 }
 0x205   : > { %v3178_v44 = vsel %vm2102_vm10, 1.0, %v3408_v62  ;;  %v3179_v16 = vsel %vm2103_vm5, 1.0, %v3408_v62  ;;  %v1991_v19 = vpop.xlane.xlu1 %1990  ;;  %v2750_v27 = vand.u32 65535, %v4513_v51 }
 0x206   : > { %2198 = vst [vmem:[%s3733_s27 + $0x550] sm:$0xff] %v3178_v44  ;;  %2199 = vst [vmem:[%s3733_s27 + $0x558] sm:$0xff] %v3179_v16  ;;  %v1983_v46 = vadd.s32 %v1982_v37, %v1980_v39  ;;  %v1993_v9 = vcvt.f32.s32 %v1991_v19  ;;  %2634 = vadd.xlane.f32.xlu0 %v2632_v25 }
 0x207   : > { %v2001_v23 = vpop.xlane.xlu0 %2000  ;;  %v2752_v16 = vcvt.s32.f32 %v2750_v27 }
 0x208   : > { %vm2104_vm9 = vcmp.eq.s32.totalorder %v1983_v46, %v3479_v1  ;;  %vm2105_vm12 = vcmp.eq.s32.totalorder %v1983_v46, %v3712_v31  ;;  %v1994_v58 = vshll.u32 %v1993_v9, 16  ;;  %2646 = vadd.xlane.f32.xlu1 %v2644_v43  ;;  %v2004_v3 = vcvt.f32.s32 %v2001_v23 }
 0x209   : > { %v3180_v17 = vsel %vm2104_vm9, 1.0, %v3408_v62  ;;  %v3181_v38 = vsel %vm2105_vm12, 1.0, %v3408_v62  ;;  %v2003_v4 = vpop.xlane.xlu1 %2002  ;;  %v2764_v43 = vcvt.s32.f32 %v2762_v24 }
 0x20a   : > { %2200 = vst [vmem:[%s3733_s27 + $0x560] sm:$0xff] %v3180_v17  ;;  %2201 = vst [vmem:[%s3733_s27 + $0x568] sm:$0xff] %v3181_v38  ;;  %v1995_v33 = vadd.s32 %v1994_v58, %v1992_v53  ;;  %v2005_v36 = vcvt.f32.s32 %v2003_v4  ;;  %2658 = vadd.xlane.f32.xlu0 %v2656_v57 }
 0x20b   : > { %v2013_v8 = vpop.xlane.xlu0 %2012 }
 0x20c   : > { %vm2106_vm11 = vcmp.eq.s32.totalorder %v1995_v33, %v3479_v1  ;;  %vm2107_vm14 = vcmp.eq.s32.totalorder %v1995_v33, %v3712_v31  ;;  %v2006_v63 = vshll.u32 %v2005_v36, 16  ;;  %2670 = vadd.xlane.f32.xlu1 %v2668_v40  ;;  %v2016_v15 = vcvt.f32.s32 %v2013_v8 }
 0x20d   : > { %v3182_v14 = vsel %vm2106_vm11, 1.0, %v3408_v62  ;;  %v3183_v55 = vsel %vm2107_vm14, 1.0, %v3408_v62  ;;  %v2015_v54 = vpop.xlane.xlu1 %2014 }
 0x20e   : > { %2202 = vst [vmem:[%s3733_s27 + $0x570] sm:$0xff] %v3182_v14  ;;  %2203 = vst [vmem:[%s3733_s27 + $0x578] sm:$0xff] %v3183_v55  ;;  %v2007_v11 = vadd.s32 %v2006_v63, %v2004_v3  ;;  %v2017_v48 = vcvt.f32.s32 %v2015_v54  ;;  %2682 = vadd.xlane.f32.xlu0 %v2680_v18 }
 0x20f   : > { %v2025_v10 = vpop.xlane.xlu0 %2024 }
 0x210   : > { %vm2108_vm13 = vcmp.eq.s32.totalorder %v2007_v11, %v3479_v1  ;;  %vm2109_vm0 = vcmp.eq.s32.totalorder %v2007_v11, %v3712_v31  ;;  %v2018_v34 = vshll.u32 %v2017_v48, 16  ;;  %2694 = vadd.xlane.f32.xlu1 %v2692_v42  ;;  %v2028_v60 = vcvt.f32.s32 %v2025_v10 }
 0x211   : > { %v3184_v47 = vsel %vm2108_vm13, 1.0, %v3408_v62  ;;  %v3185_v12 = vsel %vm2109_vm0, 1.0, %v3408_v62  ;;  %v2027_v41 = vpop.xlane.xlu1 %2026 }
 0x212   : > { %2204 = vst [vmem:[%s3733_s27 + $0x580] sm:$0xff] %v3184_v47  ;;  %2205 = vst [vmem:[%s3733_s27 + $0x588] sm:$0xff] %v3185_v12  ;;  %v2019_v6 = vadd.s32 %v2018_v34, %v2016_v15  ;;  %v2029_v0 = vcvt.f32.s32 %v2027_v41  ;;  %2706 = vadd.xlane.f32.xlu0 %v2704_v32 }
 0x213   : > { %v2037_v35 = vpop.xlane.xlu0 %2036 }
 0x214   : > { %vm2110_vm15 = vcmp.eq.s32.totalorder %v2019_v6, %v3479_v1  ;;  %vm2111_vm1 = vcmp.eq.s32.totalorder %v2019_v6, %v3712_v31  ;;  %v2030_v28 = vshll.u32 %v2029_v0, 16  ;;  %2718 = vadd.xlane.f32.xlu1 %v2716_v13  ;;  %v2040_v37 = vcvt.f32.s32 %v2037_v35 }
 0x215   : > { %v3186_v26 = vsel %vm2110_vm15, 1.0, %v3408_v62  ;;  %v3187_v29 = vsel %vm2111_vm1, 1.0, %v3408_v62  ;;  %v2039_v30 = vpop.xlane.xlu1 %2038 }
 0x216   : > { %2206 = vst [vmem:[%s3733_s27 + $0x590] sm:$0xff] %v3186_v26  ;;  %2207 = vst [vmem:[%s3733_s27 + $0x598] sm:$0xff] %v3187_v29  ;;  %v2031_v21 = vadd.s32 %v2030_v28, %v2028_v60  ;;  %v2041_v56 = vcvt.f32.s32 %v2039_v30  ;;  %2730 = vadd.xlane.f32.xlu0 %v2728_v50 }
 0x217   : > { %v2049_v52 = vpop.xlane.xlu0 %2048 }
 0x218   : > { %vm2112_vm6 = vcmp.eq.s32.totalorder %v2031_v21, %v3479_v1  ;;  %vm2113_vm2 = vcmp.eq.s32.totalorder %v2031_v21, %v3712_v31  ;;  %v2042_v61 = vshll.u32 %v2041_v56, 16  ;;  %2742 = vadd.xlane.f32.xlu1 %v2740_v22  ;;  %v2052_v9 = vcvt.f32.s32 %v2049_v52 }
 0x219   : > { %v3188_v39 = vsel %vm2112_vm6, 1.0, %v3408_v62  ;;  %v3189_v44 = vsel %vm2113_vm2, 1.0, %v3408_v62  ;;  %v2051_v51 = vpop.xlane.xlu1 %2050 }
 0x21a   : > { %2208 = vst [vmem:[%s3733_s27 + $0x5a0] sm:$0xff] %v3188_v39  ;;  %2209 = vst [vmem:[%s3733_s27 + $0x5a8] sm:$0xff] %v3189_v44  ;;  %v2043_v19 = vadd.s32 %v2042_v61, %v2040_v37  ;;  %v2053_v25 = vcvt.f32.s32 %v2051_v51  ;;  %2754 = vadd.xlane.f32.xlu0 %v2752_v16 }
 0x21b   : > { %v2061_v17 = vpop.xlane.xlu0 %2060 }
 0x21c   : > { %vm2114_vm4 = vcmp.eq.s32.totalorder %v2043_v19, %v3479_v1  ;;  %vm2115_vm7 = vcmp.eq.s32.totalorder %v2043_v19, %v3712_v31  ;;  %v2054_v46 = vshll.u32 %v2053_v25, 16  ;;  %2766 = vadd.xlane.f32.xlu1 %v2764_v43  ;;  %v2064_v4 = vcvt.f32.s32 %v2061_v17 }
 0x21d   : > { %v3190_v49 = vsel %vm2114_vm4, 1.0, %v3408_v62  ;;  %v3191_v40 = vsel %vm2115_vm7, 1.0, %v3408_v62  ;;  %v2063_v2 = vpop.xlane.xlu1 %2062 }
 0x21e   : > { %2210 = vst [vmem:[%s3733_s27 + $0x5b0] sm:$0xff] %v3190_v49  ;;  %2211 = vst [vmem:[%s3733_s27 + $0x5b8] sm:$0xff] %v3191_v40  ;;  %v2055_v58 = vadd.s32 %v2054_v46, %v2052_v9  ;;  %v2065_v53 = vcvt.f32.s32 %v2063_v2 }
 0x21f   : > { %v2073_v42 = vpop.xlane.xlu0 %2072 }
 0x220   : > { %vm2116_vm3 = vcmp.eq.s32.totalorder %v2055_v58, %v3479_v1  ;;  %vm2117_vm8 = vcmp.eq.s32.totalorder %v2055_v58, %v3712_v31  ;;  %v2066_v38 = vshll.u32 %v2065_v53, 16  ;;  %v2076_v63 = vcvt.f32.s32 %v2073_v42 }
 0x221   : > { %v3192_v57 = vsel %vm2116_vm3, 1.0, %v3408_v62  ;;  %v3193_v59 = vsel %vm2117_vm8, 1.0, %v3408_v62  ;;  %v2075_v33 = vpop.xlane.xlu1 %2074 }
 0x222   : > { %2212 = vst [vmem:[%s3733_s27 + $0x5c0] sm:$0xff] %v3192_v57  ;;  %2213 = vst [vmem:[%s3733_s27 + $0x5c8] sm:$0xff] %v3193_v59  ;;  %v2067_v36 = vadd.s32 %v2066_v38, %v2064_v4  ;;  %v2077_v23 = vcvt.f32.s32 %v2075_v33 }
 0x223   : > { %v2085_v5 = vpop.xlane.xlu0 %2084 }
 0x224   : > { %vm2118_vm10 = vcmp.eq.s32.totalorder %v2067_v36, %v3479_v1  ;;  %vm2119_vm5 = vcmp.eq.s32.totalorder %v2067_v36, %v3712_v31  ;;  %v2078_v7 = vshll.u32 %v2077_v23, 16  ;;  %v2088_v48 = vcvt.f32.s32 %v2085_v5 }
 0x225   : > { %v3194_v3 = vsel %vm2118_vm10, 1.0, %v3408_v62  ;;  %v3195_v14 = vsel %vm2119_vm5, 1.0, %v3408_v62  ;;  %v2087_v55 = vpop.xlane.xlu1 %2086 }
 0x226   : > { %2214 = vst [vmem:[%s3733_s27 + $0x5d0] sm:$0xff] %v3194_v3  ;;  %2215 = vst [vmem:[%s3733_s27 + $0x5d8] sm:$0xff] %v3195_v14  ;;  %v2079_v54 = vadd.s32 %v2078_v7, %v2076_v63  ;;  %v2089_v18 = vcvt.f32.s32 %v2087_v55 }
 0x227   : > { %v2246_v47 = vpop.xlane.xlu0 %2245 }
 0x228   : > { %vm2120_vm9 = vcmp.eq.s32.totalorder %v2079_v54, %v3479_v1  ;;  %vm2121_vm12 = vcmp.eq.s32.totalorder %v2079_v54, %v3712_v31  ;;  %v2090_v11 = vshll.u32 %v2089_v18, 16  ;;  %v2249_v41 = vcvt.f32.s32 %v2246_v47 }
 0x229   : > { %v3196_v8 = vsel %vm2120_vm9, 1.0, %v3408_v62  ;;  %v3197_v13 = vsel %vm2121_vm12, 1.0, %v3408_v62  ;;  %v2248_v45 = vpop.xlane.xlu1 %2247 }
 0x22a   : > { %2216 = vst [vmem:[%s3733_s27 + $0x5e0] sm:$0xff] %v3196_v8  ;;  %2217 = vst [vmem:[%s3733_s27 + $0x5e8] sm:$0xff] %v3197_v13  ;;  %v2091_v34 = vadd.s32 %v2090_v11, %v2088_v48  ;;  %v2250_v15 = vcvt.f32.s32 %v2248_v45 }
 0x22b   : > { %v2258_v22 = vpop.xlane.xlu0 %2257 }
 0x22c   : > { %vm2122_vm11 = vcmp.eq.s32.totalorder %v2091_v34, %v3479_v1  ;;  %vm2123_vm14 = vcmp.eq.s32.totalorder %v2091_v34, %v3712_v31  ;;  %v2251_v12 = vshll.u32 %v2250_v15, 16  ;;  %v2261_v28 = vcvt.f32.s32 %v2258_v22 }
 0x22d   : > { %v3198_v32 = vsel %vm2122_vm11, 1.0, %v3408_v62  ;;  %v3199_v20 = vsel %vm2123_vm14, 1.0, %v3408_v62  ;;  %v2260_v6 = vpop.xlane.xlu1 %2259 }
 0x22e   : > { %2218 = vst [vmem:[%s3733_s27 + $0x5f0] sm:$0xff] %v3198_v32  ;;  %2219 = vst [vmem:[%s3733_s27 + $0x5f8] sm:$0xff] %v3199_v20  ;;  %v2252_v0 = vadd.s32 %v2251_v12, %v2249_v41  ;;  %v2262_v10 = vcvt.f32.s32 %v2260_v6 }
 0x22f   : > { %v2270_v27 = vpop.xlane.xlu0 %2269 }
 0x230   : > { %vm2433_vm13 = vcmp.eq.s32.totalorder %v2252_v0, %v3479_v1  ;;  %vm2434_vm0 = vcmp.eq.s32.totalorder %v2252_v0, %v3712_v31  ;;  %v2263_v24 = vshll.u32 %v2262_v10, 16  ;;  %v2273_v56 = vcvt.f32.s32 %v2270_v27 }
 0x231   : > { %v3201_v60 = vsel %vm2433_vm13, 1.0, %v3408_v62  ;;  %v3202_v26 = vsel %vm2434_vm0, 1.0, %v3408_v62  ;;  %v2272_v29 = vpop.xlane.xlu1 %2271 }
 0x232   : > { %2529 = vst [vmem:[%s3733_s27 + $0x600] sm:$0xff] %v3201_v60  ;;  %2530 = vst [vmem:[%s3733_s27 + $0x608] sm:$0xff] %v3202_v26  ;;  %v2264_v30 = vadd.s32 %v2263_v24, %v2261_v28  ;;  %v2274_v50 = vcvt.f32.s32 %v2272_v29 }
 0x233   : > { %v2282_v44 = vpop.xlane.xlu0 %2281 }
 0x234   : > { %vm2435_vm15 = vcmp.eq.s32.totalorder %v2264_v30, %v3479_v1  ;;  %vm2436_vm1 = vcmp.eq.s32.totalorder %v2264_v30, %v3712_v31  ;;  %v2275_v21 = vshll.u32 %v2274_v50, 16  ;;  %v2285_v16 = vcvt.f32.s32 %v2282_v44 }
 0x235   : > { %v3203_v35 = vsel %vm2435_vm15, 1.0, %v3408_v62  ;;  %v3204_v43 = vsel %vm2436_vm1, 1.0, %v3408_v62  ;;  %v2284_v61 = vpop.xlane.xlu1 %2283 }
 0x236   : > { %2531 = vst [vmem:[%s3733_s27 + $0x610] sm:$0xff] %v3203_v35  ;;  %2532 = vst [vmem:[%s3733_s27 + $0x618] sm:$0xff] %v3204_v43  ;;  %v2276_v37 = vadd.s32 %v2275_v21, %v2273_v56  ;;  %v2286_v39 = vcvt.f32.s32 %v2284_v61 }
 0x237   : > { %v2294_v49 = vpop.xlane.xlu0 %2293 }
 0x238   : > { %vm2437_vm6 = vcmp.eq.s32.totalorder %v2276_v37, %v3479_v1  ;;  %vm2438_vm2 = vcmp.eq.s32.totalorder %v2276_v37, %v3712_v31  ;;  %v2287_v51 = vshll.u32 %v2286_v39, 16  ;;  %v2297_v2 = vcvt.f32.s32 %v2294_v49 }
 0x239   : > { %v3205_v19 = vsel %vm2437_vm6, 1.0, %v3408_v62  ;;  %v3206_v25 = vsel %vm2438_vm2, 1.0, %v3408_v62  ;;  %v2296_v52 = vpop.xlane.xlu1 %2295 }
 0x23a   : > { %2533 = vst [vmem:[%s3733_s27 + $0x620] sm:$0xff] %v3205_v19  ;;  %2534 = vst [vmem:[%s3733_s27 + $0x628] sm:$0xff] %v3206_v25  ;;  %v2288_v46 = vadd.s32 %v2287_v51, %v2285_v16  ;;  %v2298_v9 = vcvt.f32.s32 %v2296_v52 }
 0x23b   : > { %v2306_v57 = vpop.xlane.xlu0 %2305 }
 0x23c   : > { %vm2439_vm4 = vcmp.eq.s32.totalorder %v2288_v46, %v3479_v1  ;;  %vm2440_vm7 = vcmp.eq.s32.totalorder %v2288_v46, %v3712_v31  ;;  %v2299_v40 = vshll.u32 %v2298_v9, 16  ;;  %v2309_v33 = vcvt.f32.s32 %v2306_v57 }
 0x23d   : > { %v3207_v58 = vsel %vm2439_vm4, 1.0, %v3408_v62  ;;  %v3208_v53 = vsel %vm2440_vm7, 1.0, %v3408_v62  ;;  %v2308_v17 = vpop.xlane.xlu1 %2307 }
 0x23e   : > { %2535 = vst [vmem:[%s3733_s27 + $0x630] sm:$0xff] %v3207_v58  ;;  %2536 = vst [vmem:[%s3733_s27 + $0x638] sm:$0xff] %v3208_v53  ;;  %v2300_v38 = vadd.s32 %v2299_v40, %v2297_v2  ;;  %v2310_v4 = vcvt.f32.s32 %v2308_v17 }
 0x23f   : > { %v2318_v3 = vpop.xlane.xlu0 %2317 }
 0x240   : > { %vm2441_vm3 = vcmp.eq.s32.totalorder %v2300_v38, %v3479_v1  ;;  %vm2442_vm8 = vcmp.eq.s32.totalorder %v2300_v38, %v3712_v31  ;;  %v2311_v59 = vshll.u32 %v2310_v4, 16  ;;  %v2321_v55 = vcvt.f32.s32 %v2318_v3 }
 0x241   : > { %v3209_v36 = vsel %vm2441_vm3, 1.0, %v3408_v62  ;;  %v3210_v23 = vsel %vm2442_vm8, 1.0, %v3408_v62  ;;  %v2320_v42 = vpop.xlane.xlu1 %2319 }
 0x242   : > { %2537 = vst [vmem:[%s3733_s27 + $0x640] sm:$0xff] %v3209_v36  ;;  %2538 = vst [vmem:[%s3733_s27 + $0x648] sm:$0xff] %v3210_v23  ;;  %v2312_v7 = vadd.s32 %v2311_v59, %v2309_v33  ;;  %v2322_v63 = vcvt.f32.s32 %v2320_v42 }
 0x243   : > { %v2330_v8 = vpop.xlane.xlu0 %2329 }
 0x244   : > { %vm2443_vm10 = vcmp.eq.s32.totalorder %v2312_v7, %v3479_v1  ;;  %vm2444_vm5 = vcmp.eq.s32.totalorder %v2312_v7, %v3712_v31  ;;  %v2323_v14 = vshll.u32 %v2322_v63, 16  ;;  %v2333_v45 = vcvt.f32.s32 %v2330_v8 }
 0x245   : > { %v3211_v54 = vsel %vm2443_vm10, 1.0, %v3408_v62  ;;  %v3212_v18 = vsel %vm2444_vm5, 1.0, %v3408_v62  ;;  %v2332_v5 = vpop.xlane.xlu1 %2331 }
 0x246   : > { %2539 = vst [vmem:[%s3733_s27 + $0x650] sm:$0xff] %v3211_v54  ;;  %2540 = vst [vmem:[%s3733_s27 + $0x658] sm:$0xff] %v3212_v18  ;;  %v2324_v11 = vadd.s32 %v2323_v14, %v2321_v55  ;;  %v2334_v48 = vcvt.f32.s32 %v2332_v5 }
 0x247   : > { %v2342_v32 = vpop.xlane.xlu0 %2341 }
 0x248   : > { %vm2445_vm9 = vcmp.eq.s32.totalorder %v2324_v11, %v3479_v1  ;;  %vm2446_vm12 = vcmp.eq.s32.totalorder %v2324_v11, %v3712_v31  ;;  %v2335_v13 = vshll.u32 %v2334_v48, 16  ;;  %v2345_v6 = vcvt.f32.s32 %v2342_v32 }
 0x249   : > { %v3213_v34 = vsel %vm2445_vm9, 1.0, %v3408_v62  ;;  %v3214_v15 = vsel %vm2446_vm12, 1.0, %v3408_v62  ;;  %v2344_v47 = vpop.xlane.xlu1 %2343 }
 0x24a   : > { %2541 = vst [vmem:[%s3733_s27 + $0x660] sm:$0xff] %v3213_v34  ;;  %2542 = vst [vmem:[%s3733_s27 + $0x668] sm:$0xff] %v3214_v15  ;;  %v2336_v12 = vadd.s32 %v2335_v13, %v2333_v45  ;;  %v2346_v41 = vcvt.f32.s32 %v2344_v47 }
 0x24b   : > { %v2354_v60 = vpop.xlane.xlu0 %2353 }
 0x24c   : > { %vm2447_vm11 = vcmp.eq.s32.totalorder %v2336_v12, %v3479_v1  ;;  %vm2448_vm14 = vcmp.eq.s32.totalorder %v2336_v12, %v3712_v31  ;;  %v2347_v20 = vshll.u32 %v2346_v41, 16  ;;  %v2357_v29 = vcvt.f32.s32 %v2354_v60 }
 0x24d   : > { %v3215_v0 = vsel %vm2447_vm11, 1.0, %v3408_v62  ;;  %v3216_v10 = vsel %vm2448_vm14, 1.0, %v3408_v62  ;;  %v2356_v22 = vpop.xlane.xlu1 %2355 }
 0x24e   : > { %2543 = vst [vmem:[%s3733_s27 + $0x670] sm:$0xff] %v3215_v0  ;;  %2544 = vst [vmem:[%s3733_s27 + $0x678] sm:$0xff] %v3216_v10  ;;  %v2348_v24 = vadd.s32 %v2347_v20, %v2345_v6  ;;  %v2358_v28 = vcvt.f32.s32 %v2356_v22 }
 0x24f   : > { %v2366_v35 = vpop.xlane.xlu0 %2365 }
 0x250   : > { %vm2449_vm13 = vcmp.eq.s32.totalorder %v2348_v24, %v3479_v1  ;;  %vm2450_vm0 = vcmp.eq.s32.totalorder %v2348_v24, %v3712_v31  ;;  %v2359_v26 = vshll.u32 %v2358_v28, 16  ;;  %v2369_v61 = vcvt.f32.s32 %v2366_v35 }
 0x251   : > { %v3217_v30 = vsel %vm2449_vm13, 1.0, %v3408_v62  ;;  %v3218_v50 = vsel %vm2450_vm0, 1.0, %v3408_v62  ;;  %v2368_v27 = vpop.xlane.xlu1 %2367 }
 0x252   : > { %2545 = vst [vmem:[%s3733_s27 + $0x680] sm:$0xff] %v3217_v30  ;;  %2546 = vst [vmem:[%s3733_s27 + $0x688] sm:$0xff] %v3218_v50  ;;  %v2360_v21 = vadd.s32 %v2359_v26, %v2357_v29  ;;  %v2370_v56 = vcvt.f32.s32 %v2368_v27 }
 0x253   : > { %v2378_v19 = vpop.xlane.xlu0 %2377 }
 0x254   : > { %vm2451_vm15 = vcmp.eq.s32.totalorder %v2360_v21, %v3479_v1  ;;  %vm2452_vm1 = vcmp.eq.s32.totalorder %v2360_v21, %v3712_v31  ;;  %v2371_v43 = vshll.u32 %v2370_v56, 16  ;;  %v2381_v52 = vcvt.f32.s32 %v2378_v19 }
 0x255   : > { %v3219_v37 = vsel %vm2451_vm15, 1.0, %v3408_v62  ;;  %v3220_v39 = vsel %vm2452_vm1, 1.0, %v3408_v62  ;;  %v2380_v44 = vpop.xlane.xlu1 %2379 }
 0x256   : > { %2547 = vst [vmem:[%s3733_s27 + $0x690] sm:$0xff] %v3219_v37  ;;  %2548 = vst [vmem:[%s3733_s27 + $0x698] sm:$0xff] %v3220_v39  ;;  %v2372_v51 = vadd.s32 %v2371_v43, %v2369_v61  ;;  %v2382_v16 = vcvt.f32.s32 %v2380_v44 }
 0x257   : > { %v2390_v58 = vpop.xlane.xlu0 %2389 }
 0x258   : > { %vm2453_vm6 = vcmp.eq.s32.totalorder %v2372_v51, %v3479_v1  ;;  %vm2454_vm2 = vcmp.eq.s32.totalorder %v2372_v51, %v3712_v31  ;;  %v2383_v25 = vshll.u32 %v2382_v16, 16  ;;  %v2393_v17 = vcvt.f32.s32 %v2390_v58 }
 0x259   : > { %v3221_v46 = vsel %vm2453_vm6, 1.0, %v3408_v62  ;;  %v3222_v9 = vsel %vm2454_vm2, 1.0, %v3408_v62  ;;  %v2392_v49 = vpop.xlane.xlu1 %2391 }
 0x25a   : > { %2549 = vst [vmem:[%s3733_s27 + $0x6a0] sm:$0xff] %v3221_v46  ;;  %2550 = vst [vmem:[%s3733_s27 + $0x6a8] sm:$0xff] %v3222_v9  ;;  %v2384_v40 = vadd.s32 %v2383_v25, %v2381_v52  ;;  %v2394_v2 = vcvt.f32.s32 %v2392_v49 }
 0x25b   : > { %v2404_v33 = vpop.xlane.xlu0 %2403 }
 0x25c   : > { %vm2455_vm4 = vcmp.eq.s32.totalorder %v2384_v40, %v3479_v1  ;;  %vm2456_vm7 = vcmp.eq.s32.totalorder %v2384_v40, %v3712_v31  ;;  %v2395_v53 = vshll.u32 %v2394_v2, 16  ;;  %v2406_v15 = vcvt.f32.s32 %v2404_v33 }
 0x25d   : > { %v3223_v38 = vsel %vm2455_vm4, 1.0, %v3408_v62  ;;  %v3224_v4 = vsel %vm2456_vm7, 1.0, %v3408_v62  ;;  %v2416_v57 = vpop.xlane.xlu1 %2415 }
 0x25e   : > { %2551 = vst [vmem:[%s3733_s27 + $0x6b0] sm:$0xff] %v3223_v38  ;;  %2552 = vst [vmem:[%s3733_s27 + $0x6b8] sm:$0xff] %v3224_v4  ;;  %v2396_v59 = vadd.s32 %v2395_v53, %v2393_v17  ;;  %v2407_v41 = vshll.u32 %v2406_v15, 16  ;;  %v2418_v0 = vcvt.f32.s32 %v2416_v57 }
 0x25f   : > { %v2428_v7 = vpop.xlane.xlu0 %2427 }
 0x260   : > { %vm2457_vm3 = vcmp.eq.s32.totalorder %v2396_v59, %v3479_v1  ;;  %vm2458_vm8 = vcmp.eq.s32.totalorder %v2396_v59, %v3712_v31  ;;  %v2430_v32 = vcvt.f32.s32 %v2428_v7  ;;  %v2419_v30 = vshll.u32 %v2418_v0, 16 }
 0x261   : > { %v3225_v36 = vsel %vm2457_vm3, 1.0, %v3408_v62  ;;  %v3226_v23 = vsel %vm2458_vm8, 1.0, %v3408_v62  ;;  %v2589_v42 = vpop.xlane.xlu1 %2588 }
 0x262   : > { %2553 = vst [vmem:[%s3733_s27 + $0x6c0] sm:$0xff] %v3225_v36  ;;  %2554 = vst [vmem:[%s3733_s27 + $0x6c8] sm:$0xff] %v3226_v23  ;;  %v2591_v10 = vcvt.f32.s32 %v2589_v42  ;;  %v2431_v60 = vshll.u32 %v2430_v32, 16 }
 0x263   : > { %v2601_v3 = vpop.xlane.xlu0 %2600 }
 0x264   : > { %v2603_v24 = vcvt.f32.s32 %v2601_v3  ;;  %v2592_v56 = vshll.u32 %v2591_v10, 16 }
 0x265   : > { %v2613_v63 = vpop.xlane.xlu1 %2612 }
 0x266   : > { %v2615_v35 = vcvt.f32.s32 %v2613_v63  ;;  %v2604_v61 = vshll.u32 %v2603_v24, 16 }
 0x267   : > { %v2625_v55 = vpop.xlane.xlu0 %2624 }
 0x268   : > { %v2627_v39 = vcvt.f32.s32 %v2625_v55  ;;  %v2616_v58 = vshll.u32 %v2615_v35, 16 }
 0x269   : > { %v2637_v14 = vpop.xlane.xlu1 %2636 }
 0x26a   : > { %v2639_v37 = vcvt.f32.s32 %v2637_v14  ;;  %v2628_v17 = vshll.u32 %v2627_v39, 16 }
 0x26b   : > { %v4736_v18 = vpop.xlane.xlu0 %2648 }
 0x26c   : > { %v2651_v16 = vcvt.f32.s32 %v4736_v18  ;;  %v2640_v53 = vshll.u32 %v2639_v37, 16 }
 0x26d   : > { %v4734_v54 = vpop.xlane.xlu1 %2660 }
 0x26e   : > { %v2663_v38 = vcvt.f32.s32 %v4734_v54  ;;  %v2652_v36 = vshll.u32 %v2651_v16, 16 }
 0x26f   : > { %v4740_v11 = vpop.xlane.xlu0 %2672 }
 0x270   : > { %v2675_v14 = vcvt.f32.s32 %v4740_v11 }
 0x271   : > { %v4738_v5 = vpop.xlane.xlu1 %2684 }
 0x272   : > { %v2687_v63 = vcvt.f32.s32 %v4738_v5 }
 0x273   : > { %v4744_v8 = vpop.xlane.xlu0 %2696 }
 0x274   : > { %v2688_v24 = vshll.u32 %v2687_v63, 16 }
 0x275   : > { %v4742_v48 = vpop.xlane.xlu1 %2708 }
 0x277   : > { %v4748_v45 = vpop.xlane.xlu0 %2720 }
 0x279   : > { %v4746_v13 = vpop.xlane.xlu1 %2732 }
 0x27b   : > { %v4752_v47 = vpop.xlane.xlu0 %2744 }
 0x27d   : > { %v4750_v34 = vpop.xlane.xlu1 %2756 }
 0x27f   : > { %v4754_v6 = vpop.xlane.xlu0 %2768 }
 0x281   : > { %v2402_v12 = vpop.xlane.xlu1 %2401 }
 0x282   : > { %v2405_v20 = vcvt.f32.s32 %v2402_v12  ;;  %v2699_v12 = vcvt.f32.s32 %v4744_v8 }
 0x283   : > { %v2414_v29 = vpop.xlane.xlu0 %2413 }
 0x284   : > { %v2408_v22 = vadd.s32 %v2407_v41, %v2405_v20  ;;  %v2417_v21 = vcvt.f32.s32 %v2414_v29  ;;  %v2700_v35 = vshll.u32 %v2699_v12, 16 }
 0x285   : > { %v2426_v28 = vpop.xlane.xlu1 %2425 }
 0x286   : > { %vm2459_vm10 = vcmp.eq.s32.totalorder %v2408_v22, %v3479_v1  ;;  %vm2460_vm5 = vcmp.eq.s32.totalorder %v2408_v22, %v3712_v31  ;;  %v2429_v26 = vcvt.f32.s32 %v2426_v28  ;;  %v2420_v44 = vadd.s32 %v2419_v30, %v2417_v21 }
 0x287   : > { %v3227_v50 = vsel %vm2459_vm10, 1.0, %v3408_v62  ;;  %v3228_v27 = vsel %vm2460_vm5, 1.0, %v3408_v62  ;;  %v2587_v25 = vpop.xlane.xlu0 %2586  ;;  %v2664_v22 = vshll.u32 %v2663_v38, 16  ;;  %v2676_v28 = vshll.u32 %v2675_v14, 16 }
 0x288   : > { %2555 = vst [vmem:[%s3733_s27 + $0x6d0] sm:$0xff] %v3227_v50  ;;  %2556 = vst [vmem:[%s3733_s27 + $0x6d8] sm:$0xff] %v3228_v27  ;;  %v2432_v43 = vadd.s32 %v2431_v60, %v2429_v26  ;;  %vm2461_vm11 = vcmp.eq.s32.totalorder %v2420_v44, %v3479_v1  ;;  %vm2462_vm14 = vcmp.eq.s32.totalorder %v2420_v44, %v3712_v31  ;;  %v2590_v2 = vcvt.f32.s32 %v2587_v25 }
 0x289   : > { %v2599_v51 = vpop.xlane.xlu1 %2598  ;;  %v3229_v9 = vsel %vm2461_vm11, 1.0, %v3408_v62  ;;  %v3230_v49 = vsel %vm2462_vm14, 1.0, %v3408_v62  ;;  %v2711_v50 = vcvt.f32.s32 %v4742_v48 }
 0x28a   : > { %vm2463_vm9 = vcmp.eq.s32.totalorder %v2432_v43, %v3479_v1  ;;  %vm2464_vm12 = vcmp.eq.s32.totalorder %v2432_v43, %v3712_v31  ;;  %v2602_v19 = vcvt.f32.s32 %v2599_v51  ;;  %2557 = vst [vmem:[%s3733_s27 + $0x6e0] sm:$0xff] %v3229_v9  ;;  %2558 = vst [vmem:[%s3733_s27 + $0x6e8] sm:$0xff] %v3230_v49  ;;  %v2593_v57 = vadd.s32 %v2592_v56, %v2590_v2 }
 0x28b   : > { %v3231_v52 = vsel %vm2463_vm9, 1.0, %v3408_v62  ;;  %v3232_v46 = vsel %vm2464_vm12, 1.0, %v3408_v62  ;;  %v2611_v33 = vpop.xlane.xlu0 %2610  ;;  %v2735_v51 = vcvt.f32.s32 %v4746_v13  ;;  %v2712_v49 = vshll.u32 %v2711_v50, 16 }
 0x28c   : > { %2559 = vst [vmem:[%s3733_s27 + $0x6f0] sm:$0xff] %v3231_v52  ;;  %2560 = vst [vmem:[%s3733_s27 + $0x6f8] sm:$0xff] %v3232_v46  ;;  %v2605_v40 = vadd.s32 %v2604_v61, %v2602_v19  ;;  %v2614_v7 = vcvt.f32.s32 %v2611_v33  ;;  %vm2774_vm15 = vcmp.eq.s32.totalorder %v2593_v57, %v3479_v1  ;;  %vm2775_vm1 = vcmp.eq.s32.totalorder %v2593_v57, %v3712_v31 }
 0x28d   : > { %v2623_v4 = vpop.xlane.xlu1 %2622  ;;  %v3234_v55 = vsel %vm2774_vm15, 1.0, %v3408_v62  ;;  %v3235_v54 = vsel %vm2775_vm1, 1.0, %v3408_v62  ;;  %v2723_v61 = vcvt.f32.s32 %v4748_v45  ;;  %v2747_v2 = vcvt.f32.s32 %v4752_v47 }
 0x28e   : > { %vm2776_vm13 = vcmp.eq.s32.totalorder %v2605_v40, %v3479_v1  ;;  %vm2777_vm0 = vcmp.eq.s32.totalorder %v2605_v40, %v3712_v31  ;;  %v2626_v59 = vcvt.f32.s32 %v2623_v4  ;;  %v2617_v18 = vadd.s32 %v2616_v58, %v2614_v7  ;;  %2870 = vst [vmem:[%s3733_s27 + $0x700] sm:$0xff] %v3234_v55  ;;  %2871 = vst [vmem:[%s3733_s27 + $0x708] sm:$0xff] %v3235_v54 }
 0x28f   : > { %v3236_v23 = vsel %vm2776_vm13, 1.0, %v3408_v62  ;;  %v3237_v42 = vsel %vm2777_vm0, 1.0, %v3408_v62  ;;  %v2635_v11 = vpop.xlane.xlu0 %2634  ;;  %v2724_v40 = vshll.u32 %v2723_v61, 16  ;;  %v2736_v4 = vshll.u32 %v2735_v51, 16 }
 0x290   : > { %2872 = vst [vmem:[%s3733_s27 + $0x710] sm:$0xff] %v3236_v23  ;;  %2873 = vst [vmem:[%s3733_s27 + $0x718] sm:$0xff] %v3237_v42  ;;  %v2629_v3 = vadd.s32 %v2628_v17, %v2626_v59  ;;  %vm2778_vm4 = vcmp.eq.s32.totalorder %v2617_v18, %v3479_v1  ;;  %vm2779_vm7 = vcmp.eq.s32.totalorder %v2617_v18, %v3712_v31  ;;  %v2638_v10 = vcvt.f32.s32 %v2635_v11 }
 0x291   : > { %v2647_v15 = vpop.xlane.xlu1 %2646  ;;  %v3238_v8 = vsel %vm2778_vm4, 1.0, %v3408_v62  ;;  %v3239_v20 = vsel %vm2779_vm7, 1.0, %v3408_v62  ;;  %v2759_v47 = vcvt.f32.s32 %v4750_v34  ;;  %v2771_v23 = vcvt.f32.s32 %v4754_v6 }
 0x292   : > { %vm2780_vm6 = vcmp.eq.s32.totalorder %v2629_v3, %v3479_v1  ;;  %vm2781_vm2 = vcmp.eq.s32.totalorder %v2629_v3, %v3712_v31  ;;  %v2650_v5 = vcvt.f32.s32 %v2647_v15  ;;  %2874 = vst [vmem:[%s3733_s27 + $0x720] sm:$0xff] %v3238_v8  ;;  %2875 = vst [vmem:[%s3733_s27 + $0x728] sm:$0xff] %v3239_v20  ;;  %v2641_v26 = vadd.s32 %v2640_v53, %v2638_v10 }
 0x293   : > { %v3240_v41 = vsel %vm2780_vm6, 1.0, %v3408_v62  ;;  %v3241_v32 = vsel %vm2781_vm2, 1.0, %v3408_v62  ;;  %v2659_v30 = vpop.xlane.xlu0 %2658  ;;  %v2748_v14 = vshll.u32 %v2747_v2, 16  ;;  %v2772_v11 = vshll.u32 %v2771_v23, 16 }
 0x294   : > { %2876 = vst [vmem:[%s3733_s27 + $0x730] sm:$0xff] %v3240_v41  ;;  %2877 = vst [vmem:[%s3733_s27 + $0x738] sm:$0xff] %v3241_v32  ;;  %v2653_v0 = vadd.s32 %v2652_v36, %v2650_v5  ;;  %v2662_v56 = vcvt.f32.s32 %v2659_v30  ;;  %vm2782_vm10 = vcmp.eq.s32.totalorder %v2641_v26, %v3479_v1  ;;  %vm2783_vm5 = vcmp.eq.s32.totalorder %v2641_v26, %v3712_v31 }
 0x295   : > { %v2671_v60 = vpop.xlane.xlu1 %2670  ;;  %v3242_v48 = vsel %vm2782_vm10, 1.0, %v3408_v62  ;;  %v3243_v37 = vsel %vm2783_vm5, 1.0, %v3408_v62 }
 0x296   : > { %vm2784_vm3 = vcmp.eq.s32.totalorder %v2653_v0, %v3479_v1  ;;  %vm2785_vm8 = vcmp.eq.s32.totalorder %v2653_v0, %v3712_v31  ;;  %v2674_v29 = vcvt.f32.s32 %v2671_v60  ;;  %v2665_v39 = vadd.s32 %v2664_v22, %v2662_v56  ;;  %2878 = vst [vmem:[%s3733_s27 + $0x740] sm:$0xff] %v3242_v48  ;;  %2879 = vst [vmem:[%s3733_s27 + $0x748] sm:$0xff] %v3243_v37 }
 0x297   : > { %v3244_v27 = vsel %vm2784_vm3, 1.0, %v3408_v62  ;;  %v3245_v21 = vsel %vm2785_vm8, 1.0, %v3408_v62  ;;  %v2683_v45 = vpop.xlane.xlu0 %2682  ;;  %v2760_v0 = vshll.u32 %v2759_v47, 16 }
 0x298   : > { %2880 = vst [vmem:[%s3733_s27 + $0x750] sm:$0xff] %v3244_v27  ;;  %2881 = vst [vmem:[%s3733_s27 + $0x758] sm:$0xff] %v3245_v21  ;;  %v2677_v43 = vadd.s32 %v2676_v28, %v2674_v29  ;;  %vm2786_vm11 = vcmp.eq.s32.totalorder %v2665_v39, %v3479_v1  ;;  %vm2787_vm14 = vcmp.eq.s32.totalorder %v2665_v39, %v3712_v31  ;;  %v2686_v9 = vcvt.f32.s32 %v2683_v45 }
 0x299   : > { %v2695_v44 = vpop.xlane.xlu1 %2694  ;;  %v3246_v13 = vsel %vm2786_vm11, 1.0, %v3408_v62  ;;  %v3247_v52 = vsel %vm2787_vm14, 1.0, %v3408_v62 }
 0x29a   : > { %vm2788_vm9 = vcmp.eq.s32.totalorder %v2677_v43, %v3479_v1  ;;  %vm2789_vm12 = vcmp.eq.s32.totalorder %v2677_v43, %v3712_v31  ;;  %v2698_v16 = vcvt.f32.s32 %v2695_v44  ;;  %2882 = vst [vmem:[%s3733_s27 + $0x760] sm:$0xff] %v3246_v13  ;;  %2883 = vst [vmem:[%s3733_s27 + $0x768] sm:$0xff] %v3247_v52  ;;  %v2689_v53 = vadd.s32 %v2688_v24, %v2686_v9 }
 0x29b   : > { %v3248_v19 = vsel %vm2788_vm9, 1.0, %v3408_v62  ;;  %v3249_v25 = vsel %vm2789_vm12, 1.0, %v3408_v62  ;;  %v2707_v38 = vpop.xlane.xlu0 %2706 }
 0x29c   : > { %2884 = vst [vmem:[%s3733_s27 + $0x770] sm:$0xff] %v3248_v19  ;;  %2885 = vst [vmem:[%s3733_s27 + $0x778] sm:$0xff] %v3249_v25  ;;  %v2701_v46 = vadd.s32 %v2700_v35, %v2698_v16  ;;  %v2710_v33 = vcvt.f32.s32 %v2707_v38  ;;  %vm2790_vm15 = vcmp.eq.s32.totalorder %v2689_v53, %v3479_v1  ;;  %vm2791_vm1 = vcmp.eq.s32.totalorder %v2689_v53, %v3712_v31 }
 0x29d   : > { %v2719_v58 = vpop.xlane.xlu1 %2718  ;;  %v3250_v42 = vsel %vm2790_vm15, 1.0, %v3408_v62  ;;  %v3251_v7 = vsel %vm2791_vm1, 1.0, %v3408_v62 }
 0x29e   : > { %vm2792_vm13 = vcmp.eq.s32.totalorder %v2701_v46, %v3479_v1  ;;  %vm2793_vm0 = vcmp.eq.s32.totalorder %v2701_v46, %v3712_v31  ;;  %v2722_v17 = vcvt.f32.s32 %v2719_v58  ;;  %v2713_v63 = vadd.s32 %v2712_v49, %v2710_v33  ;;  %2886 = vst [vmem:[%s3733_s27 + $0x780] sm:$0xff] %v3250_v42  ;;  %2887 = vst [vmem:[%s3733_s27 + $0x788] sm:$0xff] %v3251_v7 }
 0x29f   : > { %v3252_v57 = vsel %vm2792_vm13, 1.0, %v3408_v62  ;;  %v3253_v59 = vsel %vm2793_vm0, 1.0, %v3408_v62  ;;  %v2731_v55 = vpop.xlane.xlu0 %2730 }
 0x2a0   : > { %2888 = vst [vmem:[%s3733_s27 + $0x790] sm:$0xff] %v3252_v57  ;;  %2889 = vst [vmem:[%s3733_s27 + $0x798] sm:$0xff] %v3253_v59  ;;  %v2725_v36 = vadd.s32 %v2724_v40, %v2722_v17  ;;  %vm2794_vm4 = vcmp.eq.s32.totalorder %v2713_v63, %v3479_v1  ;;  %vm2795_vm7 = vcmp.eq.s32.totalorder %v2713_v63, %v3712_v31  ;;  %v2734_v5 = vcvt.f32.s32 %v2731_v55 }
 0x2a1   : > { %v2743_v3 = vpop.xlane.xlu1 %2742  ;;  %v3254_v18 = vsel %vm2794_vm4, 1.0, %v3408_v62  ;;  %v3255_v15 = vsel %vm2795_vm7, 1.0, %v3408_v62 }
 0x2a2   : > { %vm2796_vm6 = vcmp.eq.s32.totalorder %v2725_v36, %v3479_v1  ;;  %vm2797_vm2 = vcmp.eq.s32.totalorder %v2725_v36, %v3712_v31  ;;  %v2746_v34 = vcvt.f32.s32 %v2743_v3  ;;  %2890 = vst [vmem:[%s3733_s27 + $0x7a0] sm:$0xff] %v3254_v18  ;;  %2891 = vst [vmem:[%s3733_s27 + $0x7a8] sm:$0xff] %v3255_v15  ;;  %v2737_v32 = vadd.s32 %v2736_v4, %v2734_v5 }
 0x2a3   : > { %v3256_v6 = vsel %vm2796_vm6, 1.0, %v3408_v62  ;;  %v3257_v54 = vsel %vm2797_vm2, 1.0, %v3408_v62  ;;  %v2755_v20 = vpop.xlane.xlu0 %2754 }
 0x2a4   : > { %2892 = vst [vmem:[%s3733_s27 + $0x7b0] sm:$0xff] %v3256_v6  ;;  %2893 = vst [vmem:[%s3733_s27 + $0x7b8] sm:$0xff] %v3257_v54  ;;  %v2749_v12 = vadd.s32 %v2748_v14, %v2746_v34  ;;  %v2758_v24 = vcvt.f32.s32 %v2755_v20  ;;  %vm2798_vm10 = vcmp.eq.s32.totalorder %v2737_v32, %v3479_v1  ;;  %vm2799_vm5 = vcmp.eq.s32.totalorder %v2737_v32, %v3712_v31 }
 0x2a5   : > { %v2767_v41 = vpop.xlane.xlu1 %2766  ;;  %v3258_v60 = vsel %vm2798_vm10, 1.0, %v3408_v62  ;;  %v3259_v26 = vsel %vm2799_vm5, 1.0, %v3408_v62 }
 0x2a6   : > { %vm2800_vm3 = vcmp.eq.s32.totalorder %v2749_v12, %v3479_v1  ;;  %vm2801_vm8 = vcmp.eq.s32.totalorder %v2749_v12, %v3712_v31  ;;  %v2770_v8 = vcvt.f32.s32 %v2767_v41  ;;  %v2761_v29 = vadd.s32 %v2760_v0, %v2758_v24  ;;  %2894 = vst [vmem:[%s3733_s27 + $0x7c0] sm:$0xff] %v3258_v60  ;;  %2895 = vst [vmem:[%s3733_s27 + $0x7c8] sm:$0xff] %v3259_v26 }
 0x2a7   : > { %v3260_v10 = vsel %vm2800_vm3, 1.0, %v3408_v62  ;;  %v3261_v22 = vsel %vm2801_vm8, 1.0, %v3408_v62 }
 0x2a8   : > { %2896 = vst [vmem:[%s3733_s27 + $0x7d0] sm:$0xff] %v3260_v10  ;;  %2897 = vst [vmem:[%s3733_s27 + $0x7d8] sm:$0xff] %v3261_v22  ;;  %v2773_v28 = vadd.s32 %v2772_v11, %v2770_v8  ;;  %vm2802_vm11 = vcmp.eq.s32.totalorder %v2761_v29, %v3479_v1  ;;  %vm2803_vm14 = vcmp.eq.s32.totalorder %v2761_v29, %v3712_v31 }
 0x2a9   : > { %v3262_v27 = vsel %vm2802_vm11, 1.0, %v3408_v62  ;;  %v3263_v21 = vsel %vm2803_vm14, 1.0, %v3408_v62 }
 0x2aa   : > { %vm2804_vm9 = vcmp.eq.s32.totalorder %v2773_v28, %v3479_v1  ;;  %vm2805_vm12 = vcmp.eq.s32.totalorder %v2773_v28, %v3712_v31  ;;  %2898 = vst [vmem:[%s3733_s27 + $0x7e0] sm:$0xff] %v3262_v27  ;;  %2899 = vst [vmem:[%s3733_s27 + $0x7e8] sm:$0xff] %v3263_v21 }
 0x2ab   : > { %v3264_v30 = vsel %vm2804_vm9, 1.0, %v3408_v62  ;;  %v3265_v50 = vsel %vm2805_vm12, 1.0, %v3408_v62 }
 0x2ac   : > { %2900 = vst [vmem:[%s3733_s27 + $0x7f0] sm:$0xff] %v3264_v30  ;;  %2901 = vst [vmem:[%s3733_s27 + $0x7f8] sm:$0xff] %v3265_v50 }
 0x2ad   : > { %3343 = shalt.err (!%p3340_p5)
}
 0x2ae   : > { %s3344_s15 = scalar_lea.hbm %s4876_s3, 32768  ;;  %s3348_s21 = scalar_lea.hbm %s4938_s1, 65536 }
 0x2af   : > { %p3345_p6 = scmp.ne.s32.totalorder %s4876_s3, %s3344_s15  ;;  %p3349_p10 = scmp.lt.s32.totalorder %s4876_s3, %s4938_s1 }
 0x2b0   : > { %p3350_p11 = scmp.lt.s32.totalorder %s3348_s21, %s3344_s15 }
 0x2b1   : > { %p3346_p7 = pnand %p3345_p6, %p3462_p4 }
 0x2b2   : > { %p3351_p12 = por %p3350_p11, %p3349_p10 }
 0x2b3   : > { %p3347_p9 = pneg %p3346_p7 }
 0x2b5   : > { %p3352_p13 = pnand %p3351_p12, %p3347_p9 }
 0x2b7   : > { %3355 = shalt.err (!%p3352_p13)
}
 0x2b8   : > { %s3410_s24 = smov 256   ;;  %s3411_s25 = smov 16  }
 0x2b9   : > { %3272 = dma.vmem_to_hbm [thread:$0]  (%p3462_p4), %s4878_s29, 32768, %s4876_s3, %s4892_s4, %s3410_s24, %s3410_s24, %s3411_s25  }
 0x2ba PF: > { %p3278_p0 = scmp.ge.s32.totalorder %s3406_s11, 2  ;;  %s2934_s26 = sand.u32 1, %s3386_s6  }
 0x2bb   : > { %s2935_s27 = scalar_lea.sflag [#allocation3], %s2934_s26 }
 0x2bc   : > { %p3275_p1 = pnand %p3278_p0, %p3469_p8 }
 0x2be   : > { %p3276_p2 = pneg %p3275_p1 }
 0x2c0   : > { %3381 = dma.done.wait (%p3276_p2), %s2935_s27, 32768  }
 0x2c1   : > { %3383 = vsyncadd (%p3276_p2), %s2935_s27, 4294934528  ;;  %s14_s11 = sadd.s32 1, %s3406_s11   ;;  %s4997_s6 = smov %s3390_s7 }
 0x2c2   : > { %p11_p3 = scmp.ge.s32.totalorder %s14_s11, 4   ;;  %s4998_s7 = smov %s3394_s8 }
 0x2c3   : > { %s4999_s8 = smov %s3475_s19  ;;  %s5000_s9 = smov %s3402_s10 }
 0x2c4   : > { %s5001_s10 = smov %s5003_s14  ;;  %13 = sbr.rel (!%p11_p3) target bundleno = 4 (0x4), region = 59 }
 0x2c9   :  { %2940 = vsyncpa [#allocation3], 1 }
 0x2ca   :  { %2942 = vsyncpa [#allocation3 + $0x1], 1 }

</bundles_post_ra>
